<compile_context>
chip_gen: v7x
topology: tpu7x:2x2x1
jax: 0.10.0
libtpu: 0.0.40
codegen_flags: <defaults>
</compile_context>

<pallas_src>
import functools

import jax
import jax.numpy as jnp
from jax.experimental import pallas as pl
from jax.experimental.pallas import tpu as pltpu

# ---- problem sizes (small, consistent with the module's forward) ----------
WIN = 5                # fixed window size: x is (N, 5)
EMB = 50               # emb_size default
VOCAB = 100            # vocab_size (synthetic)
NCLASS = 9             # n_class (typical NER tag count)

N = 512                # batch of windows
BLOCK_N = 256          # 2 grid steps -> both v7x TensorCores busy, tiny overhead

WV = WIN * VOCAB       # 500: folded contraction dim (real lanes)
WVP = 512              # padded contraction dim (multiple of 128)
CPAD = 128             # padded class dim -> lane-dense output stores
BIAS_LANE = WV         # padded lane 500 carries the bias row of W_fold


def ner_kernel(ids_ref, wf_ref, o_ref):
    """Fused NER forward for one batch block.

    ids_ref: (BN, WIN)    int32     token ids, pre-shifted by j*VOCAB
    wf_ref:  (WVP, CPAD)  bfloat16  folded (emb @ W) weight, bias in row 500
    o_ref:   (BN, CPAD)   float32   padded logits
    """
    ids = ids_ref[...]                                        # (BN, WIN)
    bn = ids.shape[0]
    wvp = wf_ref.shape[0]

    # Boolean selector: lane (j*VOCAB + ids[:, j]) is hot for each window
    # position j (disjoint 100-lane ranges), plus the constant bias lane 500.
    # All math is int/bool; a single cast to bf16 at the end (exact 0/1).
    lane = jax.lax.broadcasted_iota(jnp.int32, (bn, wvp), 1)  # (BN, WVP)
    hit = lane == BIAS_LANE                                   # bias row always on
    for j in range(WIN):
        hit = jnp.logical_or(hit, lane == ids[:, j:j + 1])
    sel = hit.astype(jnp.bfloat16)                            # single cast

    # Single MXU matmul: (BN, WVP) @ (WVP, CPAD) -> f32, bias included.
    o_ref[...] = jnp.dot(sel, wf_ref[...], preferred_element_type=jnp.float32)


def fold_params(emb_table, weight, bias):
    """One-time parameter prep (hoisted out of the per-call forward path).

    Returns the (WVP, CPAD) bf16 folded weight with the bias stored in the
    padded row BIAS_LANE, so the kernel needs no separate bias input.
    """
    w3 = weight.reshape(WIN, EMB, NCLASS)                      # (WIN, E, C)
    w_fold = jnp.einsum("ve,wec->wvc", emb_table, w3)          # (WIN, V, C)
    w_fold = w_fold.reshape(WV, NCLASS)                        # (500, 9)
    w_fold = jnp.pad(w_fold, ((0, WVP - WV), (0, CPAD - NCLASS)))
    w_fold = w_fold.at[BIAS_LANE, :NCLASS].set(bias)           # bias row
    return w_fold.astype(jnp.bfloat16)                         # (512, 128) bf16


@jax.jit
def ner_forward(ids, w_fold):
    """Forward: shift ids, run the fused kernel, slice back to 9 classes."""
    n = ids.shape[0]
    block_n = BLOCK_N if n % BLOCK_N == 0 else n
    assert n % block_n == 0, "batch must be a multiple of the row block"

    # Pre-shift ids so the kernel compares directly against folded lanes.
    ids_shifted = ids + jnp.arange(WIN, dtype=ids.dtype) * VOCAB

    out_pad = pl.pallas_call(
        ner_kernel,
        out_shape=jax.ShapeDtypeStruct((n, CPAD), jnp.float32),
        grid_spec=pltpu.PrefetchScalarGridSpec(
            num_scalar_prefetch=0,
            grid=(n // block_n,),
            in_specs=[
                pl.BlockSpec((block_n, WIN), lambda i: (i, 0)),   # per-block ids
                pl.BlockSpec((WVP, CPAD), lambda i: (0, 0)),      # resident weight
            ],
            out_specs=pl.BlockSpec((block_n, CPAD), lambda i: (i, 0)),
        ),
        compiler_params=pltpu.CompilerParams(
            dimension_semantics=("parallel",)),   # v7x: shard 2 blocks over 2 TCs
    )(ids_shifted, w_fold)

    # Slice inside the same jit so it fuses with the kernel's consumer.
    return out_pad[:, :NCLASS]                                   # (N, 9) logits


def ner_reference(ids, emb_table, weight, bias):
    """Pure-JAX reference matching the PyTorch docstring semantics."""
    e = jnp.take(emb_table, ids, axis=0)          # (N, WIN, E)
    flat = e.reshape(ids.shape[0], WIN * EMB)     # (N, WIN*E) -- torch .flatten order
    return flat @ weight + bias                   # (N, C)


if __name__ == "__main__":
    key = jax.random.PRNGKey(0)
    k_ids, k_emb, k_w, k_b = jax.random.split(key, 4)

    # deterministic synthetic parameters (shapes implied by the module's __init__)
    emb_table = jax.random.normal(k_emb, (VOCAB, EMB), jnp.float32) * 0.1
    weight = jax.random.normal(k_w, (WIN * EMB, NCLASS), jnp.float32) / jnp.sqrt(WIN * EMB)
    bias = jax.random.normal(k_b, (NCLASS,), jnp.float32) * 0.01

    # deterministic input: (N, 5) token ids
    ids = jax.random.randint(k_ids, (N, WIN), 0, VOCAB, dtype=jnp.int32)

    # One-time parameter fold (kept OUT of the per-call forward path).
    w_fold = jax.block_until_ready(fold_params(emb_table, weight, bias))

    out = ner_forward(ids, w_fold)
    out = jax.block_until_ready(out)

    ref = ner_reference(ids, emb_table, weight, bias)
    assert out.shape == (N, NCLASS)
    # Folded weight (and bias row) are carried in bf16; selector is exact, so
    # only weight rounding remains (<~1e-3 absolute at these scales).
    assert jnp.allclose(out, ref, atol=1e-2, rtol=1e-2), "mismatch vs reference"

    print("KERNEL_OK")
</pallas_src>

<mosaic_0001>
module attributes {stable_mosaic.version = 11 : i64} {
  func.func @ner_kernel(%arg0: i32, %arg1: memref<256x5xi32, #tpu.memory_space<vmem>>, %arg2: memref<512x128xbf16, #tpu.memory_space<vmem>>, %arg3: memref<256x128xf32, #tpu.memory_space<vmem>>) attributes {dimension_semantics = [#tpu.dimension_semantics<parallel>], iteration_bounds = array<i64: 2>, scalar_prefetch = 0 : i64, scratch_operands = 0 : i64, tpu.core_type = #tpu.core_type<tc>, window_params = [{transform_indices = @transform_0, window_bounds = array<i64: 256, 5>}, {pipeline_mode = #tpu.pipeline_mode<synchronous>, transform_indices = @transform_1, window_bounds = array<i64: 512, 128>}, {transform_indices = @transform_2, window_bounds = array<i64: 256, 128>}]} {
    %c0 = arith.constant 0 : index
    %c0_0 = arith.constant 0 : index
    %0 = vector.load %arg1[%c0, %c0_0] : memref<256x5xi32, #tpu.memory_space<vmem>>, vector<256x5xi32>
    %1 = tpu.iota {dimensions = array<i32: 1>} : vector<256x512xi32>
    %c500_i32 = arith.constant 500 : i32
    %2 = vector.broadcast %c500_i32 : i32 to vector<256x512xi32>
    %3 = arith.cmpi eq, %1, %2 : vector<256x512xi32>
    %4 = vector.extract_strided_slice %0 {offsets = [0, 0], sizes = [256, 1], strides = [1, 1]} : vector<256x5xi32> to vector<256x1xi32>
    %5 = vector.broadcast %4 : vector<256x1xi32> to vector<256x512xi32>
    %6 = arith.cmpi eq, %1, %5 : vector<256x512xi32>
    %7 = arith.ori %3, %6 : vector<256x512xi1>
    %8 = vector.extract_strided_slice %0 {offsets = [0, 1], sizes = [256, 1], strides = [1, 1]} : vector<256x5xi32> to vector<256x1xi32>
    %9 = vector.broadcast %8 : vector<256x1xi32> to vector<256x512xi32>
    %10 = arith.cmpi eq, %1, %9 : vector<256x512xi32>
    %11 = arith.ori %7, %10 : vector<256x512xi1>
    %12 = vector.extract_strided_slice %0 {offsets = [0, 2], sizes = [256, 1], strides = [1, 1]} : vector<256x5xi32> to vector<256x1xi32>
    %13 = vector.broadcast %12 : vector<256x1xi32> to vector<256x512xi32>
    %14 = arith.cmpi eq, %1, %13 : vector<256x512xi32>
    %15 = arith.ori %11, %14 : vector<256x512xi1>
    %16 = vector.extract_strided_slice %0 {offsets = [0, 3], sizes = [256, 1], strides = [1, 1]} : vector<256x5xi32> to vector<256x1xi32>
    %17 = vector.broadcast %16 : vector<256x1xi32> to vector<256x512xi32>
    %18 = arith.cmpi eq, %1, %17 : vector<256x512xi32>
    %19 = arith.ori %15, %18 : vector<256x512xi1>
    %20 = vector.extract_strided_slice %0 {offsets = [0, 4], sizes = [256, 1], strides = [1, 1]} : vector<256x5xi32> to vector<256x1xi32>
    %21 = vector.broadcast %20 : vector<256x1xi32> to vector<256x512xi32>
    %22 = arith.cmpi eq, %1, %21 : vector<256x512xi32>
    %23 = arith.ori %19, %22 : vector<256x512xi1>
    %24 = arith.extui %23 : vector<256x512xi1> to vector<256x512xi32>
    %25 = arith.sitofp %24 : vector<256x512xi32> to vector<256x512xf32>
    %26 = arith.truncf %25 : vector<256x512xf32> to vector<256x512xbf16>
    %c0_1 = arith.constant 0 : index
    %c0_2 = arith.constant 0 : index
    %27 = vector.load %arg2[%c0_1, %c0_2] : memref<512x128xbf16, #tpu.memory_space<vmem>>, vector<512x128xbf16>
    %cst = arith.constant dense<0.000000e+00> : vector<256x128xf32>
    %28 = tpu.matmul %26, %27, %cst {dimension_numbers = #tpu.dot_dimension_numbers<[1], [0], [0], [1], [0, 0, 1, 1], [], []>} : vector<256x512xbf16>, vector<512x128xbf16>, vector<256x128xf32> -> vector<256x128xf32>
    %c0_3 = arith.constant 0 : index
    %c0_4 = arith.constant 0 : index
    %29 = vector.load %arg3[%c0_3, %c0_4] : memref<256x128xf32, #tpu.memory_space<vmem>>, vector<256x128xf32>
    tpu.vector_store %arg3[%c0_3, %c0_4], %28 {strides = array<i32>} : memref<256x128xf32, #tpu.memory_space<vmem>>, vector<256x128xf32>,
    return
  }
  func.func @transform_0(%arg0: i32) -> (i32, i32) {
    %c0_i32 = arith.constant 0 : i32
    %c0_i32_0 = arith.constant 0 : i32
    return %arg0, %c0_i32 : i32, i32
  }
  func.func @transform_1(%arg0: i32) -> (i32, i32) {
    %c0_i32 = arith.constant 0 : i32
    %c0_i32_0 = arith.constant 0 : i32
    %c0_i32_1 = arith.constant 0 : i32
    return %c0_i32, %c0_i32_0 : i32, i32
  }
  func.func @transform_2(%arg0: i32) -> (i32, i32) {
    %c0_i32 = arith.constant 0 : i32
    %c0_i32_0 = arith.constant 0 : i32
    return %arg0, %c0_i32 : i32, i32
  }
}

</mosaic_0001>

<bundles_post_ra>
// kernel: ner_forward.1
= control target key start
LH: loop header
LB: loop body
LE: loop exit
PB: predicated region body
PF: predicated region fallthrough
CT: control target
= control target key end

     0   :  { %s3476_s9 = smov 0   ;;  %s8062_s0 = inlined_call_operand.vmem [shape: s32[512,5], index: 0, kind: input, shape index: {}]   ;;  %s8063_s1 = inlined_call_operand.vmem [shape: bf16[512,128], index: 1, kind: input, shape index: {}]   ;;  %s8064_s2 = inlined_call_operand.vmem [shape: f32[512,128], index: 2, kind: output, shape index: {}]  }
   0x1 LB: > { %s2935_s10 = sadd.s32 4294967295, %s3453_s9   ;;  %p2939_p0 = scmp.ge.s32.totalorder %s3453_s9, 1  ;;  %s3453_s9 = sphi %s3476_s9, %s12_s9  }
   0x2   : > { %p113_p1 = scmp.lt.s32.totalorder %s3453_s9, 3 }
   0x4   : > { %p114_p2 = pnand %p2939_p0, %p113_p1 }
   0x6   : > { %117 = sbr.rel (%p114_p2) target bundleno = 1076 (0x434), region = 28 }
   0xd   : > { %s2940_s11 = sshll.u32 %s2935_s10, 5  ;;  %v3455_v0 = vmov 0   ;;  %v8065_v33 = vmov 1   ;;  %v8067_v34 = vmov 3   ;;  %v8072_v35 = vmov 2   ;;  %v3407_v39 = vld [vmem:[%s8063_s1 + $0x40] sm:$0xff]  }
   0xe   : > { %3345 = vset.pattern.permute.xlu1 %v3455_v0  ;;  %3344 = vset.pattern.permute.xlu0 %v3455_v0  ;;  %p136_p3 = scmp.lt.s32.totalorder %s2940_s11, 63  ;;  %v8069_v37 = vmov 4   ;;  %v3408_v40 = vld [vmem:[%s8063_s1 + $0xc0] sm:$0xff]   ;;  %v3411_v45 = vld [vmem:[%s8063_s1 + $0x48] sm:$0xff]   ;;  %v3415_v51 = vld [vmem:[%s8063_s1 + $0x50] sm:$0xff]  }
   0xf   : > { %3106 = vmatprep.subr.bf16.mxu0 %v3407_v39  ;;  %3218 = vmatprep.subr.bf16.mxu1 %v3408_v40  ;;  %v3409_v43 = vld [vmem:[%s8063_s1] sm:$0xff]   ;;  %v3412_v46 = vld [vmem:[%s8063_s1 + $0xc8] sm:$0xff]   ;;  %v3416_v52 = vld [vmem:[%s8063_s1 + $0xd0] sm:$0xff]  }
  0x10   : > { %s9018_s11 = smov (!%p136_p3, %s2940_s11), 63  ;;  %v3410_v44 = vld [vmem:[%s8063_s1 + $0x80] sm:$0xff]   ;;  %3107 = vmatpush3.bf16.msra.mxu0 %v3409_v43  ;;  %v3413_v49 = vld [vmem:[%s8063_s1 + $0x8] sm:$0xff]   ;;  %v3417_v55 = vld [vmem:[%s8063_s1 + $0x10] sm:$0xff]  }
  0x11   : > { %s2941_s12 = sshll.u32 %s9018_s11, 3  ;;  %3219 = vmatpush3.bf16.msra.mxu1 %v3410_v44  ;;  %3108 = vmatprep.subr.bf16.mxu0 %v3411_v45  ;;  %v3414_v50 = vld [vmem:[%s8063_s1 + $0x88] sm:$0xff]   ;;  %v3418_v56 = vld [vmem:[%s8063_s1 + $0x90] sm:$0xff]   ;;  %v3419_v57 = vld [vmem:[%s8063_s1 + $0x58] sm:$0xff]  }
  0x12   : > { %s3492_s15 = scalar_lea.vmem %s8062_s0, %s2941_s12  ;;  %3220 = vmatprep.subr.bf16.mxu1 %v3412_v46  ;;  %v3420_v58 = vld [vmem:[%s8063_s1 + $0xd8] sm:$0xff]   ;;  %v3423_v63 = vld [vmem:[%s8063_s1 + $0x60] sm:$0xff]   ;;  %v3427_v43 = vld [vmem:[%s8063_s1 + $0x68] sm:$0xff]   ;;  %s6346_s5 = scalar_lea.vmem %s8064_s2, %s2941_s12 }
  0x13   : > { %v3495_v1 = vld [vmem:[%s3492_s15 + $0x10] sm:$0xff]  ;;  %v3498_v2 = vld [vmem:[%s3492_s15] sm:$0xff]  ;;  %v3503_v3 = vld [vmem:[%s3492_s15 + $0x18] sm:$0xff] }
  0x14   : > { %196 = vperm.xlu1 %3345, %v3495_v1   ;;  %190 = vperm.xlu0 %3344, %v3498_v2   ;;  %v3506_v4 = vld [vmem:[%s3492_s15 + $0x8] sm:$0xff]  ;;  %v3514_v6 = vld [vmem:[%s3492_s15 + $0x20] sm:$0xff]  ;;  %v3519_v7 = vld [vmem:[%s3492_s15 + $0x38] sm:$0xff] }
  0x15   : > { %v3511_v5 = vld [vmem:[%s3492_s15 + $0x28] sm:$0xff]  ;;  %v3522_v8 = vld [vmem:[%s3492_s15 + $0x30] sm:$0xff]  ;;  %v3528_v10 = vld [vmem:[%s3492_s15 + $0x40] sm:$0xff]  ;;  %3109 = vmatpush3.bf16.msra.mxu0 %v3413_v49  ;;  %3221 = vmatpush3.bf16.msra.mxu1 %v3414_v50 }
  0x16   : > { %v3525_v9 = vld [vmem:[%s3492_s15 + $0x48] sm:$0xff]  ;;  %v3533_v11 = vld [vmem:[%s3492_s15 + $0x58] sm:$0xff]  ;;  %v3536_v12 = vld [vmem:[%s3492_s15 + $0x50] sm:$0xff]  ;;  %3110 = vmatprep.subr.bf16.mxu0 %v3415_v51  ;;  %3222 = vmatprep.subr.bf16.mxu1 %v3416_v52 }
  0x17   : > { %v3541_v13 = vld [vmem:[%s3492_s15 + $0x68] sm:$0xff]  ;;  %v3544_v14 = vld [vmem:[%s3492_s15 + $0x60] sm:$0xff]  ;;  %v3549_v15 = vld [vmem:[%s3492_s15 + $0x78] sm:$0xff] }
  0x18   : > { %199 = vperm.xlu1 %3345, %v3503_v3   ;;  %193 = vperm.xlu0 %3344, %v3506_v4   ;;  %v3552_v16 = vld [vmem:[%s3492_s15 + $0x70] sm:$0xff]  ;;  %v3559_v17 = vld [vmem:[%s3492_s15 + $0x88] sm:$0xff]  ;;  %v3562_v18 = vld [vmem:[%s3492_s15 + $0x80] sm:$0xff] }
  0x19   : > { %v3567_v19 = vld [vmem:[%s3492_s15 + $0x98] sm:$0xff]  ;;  %v3570_v20 = vld [vmem:[%s3492_s15 + $0x90] sm:$0xff]  ;;  %v3575_v21 = vld [vmem:[%s3492_s15 + $0xa8] sm:$0xff]  ;;  %3111 = vmatpush3.bf16.msra.mxu0 %v3417_v55  ;;  %3223 = vmatpush3.bf16.msra.mxu1 %v3418_v56 }
  0x1a   : > { %v3578_v22 = vld [vmem:[%s3492_s15 + $0xa0] sm:$0xff]  ;;  %v3583_v23 = vld [vmem:[%s3492_s15 + $0xb8] sm:$0xff]  ;;  %v3586_v24 = vld [vmem:[%s3492_s15 + $0xb0] sm:$0xff]  ;;  %3112 = vmatprep.subr.bf16.mxu0 %v3419_v57  ;;  %3224 = vmatprep.subr.bf16.mxu1 %v3420_v58 }
  0x1b   : > { %v3591_v25 = vld [vmem:[%s3492_s15 + $0xc8] sm:$0xff]  ;;  %v3594_v26 = vld [vmem:[%s3492_s15 + $0xc0] sm:$0xff]  ;;  %v3599_v27 = vld [vmem:[%s3492_s15 + $0xd8] sm:$0xff] }
  0x1c   : > { %205 = vperm.xlu1 %3345, %v3511_v5   ;;  %202 = vperm.xlu0 %3344, %v3514_v6   ;;  %v3602_v28 = vld [vmem:[%s3492_s15 + $0xd0] sm:$0xff]  ;;  %v3607_v29 = vld [vmem:[%s3492_s15 + $0xe8] sm:$0xff]  ;;  %v3610_v30 = vld [vmem:[%s3492_s15 + $0xe0] sm:$0xff] }
  0x1d   : > { %v3615_v31 = vld [vmem:[%s3492_s15 + $0xf8] sm:$0xff]  ;;  %v3618_v32 = vld [vmem:[%s3492_s15 + $0xf0] sm:$0xff]  ;;  %v3424_v0 = vld [vmem:[%s8063_s1 + $0xe0] sm:$0xff]  }
  0x1e   : > { %v3421_v61 = vld [vmem:[%s8063_s1 + $0x18] sm:$0xff]   ;;  %v3425_v39 = vld [vmem:[%s8063_s1 + $0x20] sm:$0xff]   ;;  %v3429_v46 = vld [vmem:[%s8063_s1 + $0x28] sm:$0xff]  }
  0x1f   : > { %v3422_v62 = vld [vmem:[%s8063_s1 + $0x98] sm:$0xff]   ;;  %3113 = vmatpush3.bf16.msra.mxu0 %v3421_v61  ;;  %v3426_v40 = vld [vmem:[%s8063_s1 + $0xa0] sm:$0xff]   ;;  %v3430_v49 = vld [vmem:[%s8063_s1 + $0xa8] sm:$0xff]  }
  0x20   : > { %211 = vperm.xlu1 %3345, %v3519_v7   ;;  %208 = vperm.xlu0 %3344, %v3522_v8   ;;  %v3431_v50 = vld [vmem:[%s8063_s1 + $0x70] sm:$0xff]   ;;  %v3435_v58 = vld [vmem:[%s8063_s1 + $0x78] sm:$0xff]  }
  0x21   : > { %3225 = vmatpush3.bf16.msra.mxu1 %v3422_v62  ;;  %3114 = vmatprep.subr.bf16.mxu0 %v3423_v63  ;;  %v3432_v51 = vld [vmem:[%s8063_s1 + $0xf0] sm:$0xff]   ;;  %v3437_v63 = vld [vmem:[%s8063_s1 + $0x38] sm:$0xff]  }
  0x22   : > { %3226 = vmatprep.subr.bf16.mxu1 %v3424_v0  ;;  %v3433_v56 = vld [vmem:[%s8063_s1 + $0x30] sm:$0xff]   ;;  %v3438_v0 = vld [vmem:[%s8063_s1 + $0xb8] sm:$0xff]  }
  0x23   : > { %3115 = vmatpush3.bf16.msra.mxu0 %v3425_v39  ;;  %v3434_v57 = vld [vmem:[%s8063_s1 + $0xb0] sm:$0xff]  }
  0x24   : > { %217 = vperm.xlu1 %3345, %v3525_v9   ;;  %214 = vperm.xlu0 %3344, %v3528_v10  }
  0x25   : > { %3227 = vmatpush3.bf16.msra.mxu1 %v3426_v40  ;;  %3116 = vmatprep.subr.bf16.mxu0 %v3427_v43 }
  0x27   : > { %3117 = vmatpush3.bf16.msra.mxu0 %v3429_v46 }
  0x28   : > { %223 = vperm.xlu1 %3345, %v3533_v11   ;;  %220 = vperm.xlu0 %3344, %v3536_v12  }
  0x29   : > { %3118 = vmatprep.subr.bf16.mxu0 %v3431_v50 }
  0x2b   : > { %3119 = vmatpush3.bf16.msra.mxu0 %v3433_v56 }
  0x2c   : > { %229 = vperm.xlu1 %3345, %v3541_v13   ;;  %226 = vperm.xlu0 %3344, %v3544_v14  }
  0x2d   : > { %3120 = vmatprep.subr.bf16.mxu0 %v3435_v58 }
  0x2f   : > { %3121 = vmatpush3.bf16.msra.mxu0 %v3437_v63 }
  0x30   : > { %235 = vperm.xlu1 %3345, %v3549_v15   ;;  %232 = vperm.xlu0 %3344, %v3552_v16  }
  0x34   : > { %241 = vperm.xlu1 %3345, %v3559_v17   ;;  %238 = vperm.xlu0 %3344, %v3562_v18  }
  0x38   : > { %247 = vperm.xlu1 %3345, %v3567_v19   ;;  %244 = vperm.xlu0 %3344, %v3570_v20  }
  0x3c   : > { %253 = vperm.xlu1 %3345, %v3575_v21   ;;  %250 = vperm.xlu0 %3344, %v3578_v22  }
  0x40   : > { %259 = vperm.xlu1 %3345, %v3583_v23   ;;  %256 = vperm.xlu0 %3344, %v3586_v24  }
  0x44   : > { %265 = vperm.xlu1 %3345, %v3591_v25   ;;  %262 = vperm.xlu0 %3344, %v3594_v26  }
  0x48   : > { %271 = vperm.xlu1 %3345, %v3599_v27   ;;  %268 = vperm.xlu0 %3344, %v3602_v28  }
  0x4c   : > { %277 = vperm.xlu1 %3345, %v3607_v29   ;;  %274 = vperm.xlu0 %3344, %v3610_v30  }
  0x50   : > { %283 = vperm.xlu1 %3345, %v3615_v31   ;;  %280 = vperm.xlu0 %3344, %v3618_v32  }
  0x54   : > { %3346 = vset.pattern.permute.xlu1 %v8065_v33  ;;  %3349 = vset.pattern.permute.xlu0 %v8067_v34 }
  0x55   : > { %545 = vperm.xlu1 %3346, %v3506_v4   ;;  %1249 = vperm.xlu0 %3349, %v3506_v4  }
  0x59   : > { %548 = vperm.xlu1 %3346, %v3495_v1   ;;  %3350 = vset.pattern.permute.xlu0 %v8072_v35 }
  0x5a   : > { %894 = vperm.xlu0 %3350, %v3498_v2  }
  0x5d   : > { %554 = vperm.xlu1 %3346, %v3514_v6  }
  0x5e   : > { %900 = vperm.xlu0 %3350, %v3495_v1  }
  0x61   : > { %560 = vperm.xlu1 %3346, %v3522_v8  }
  0x62   : > { %906 = vperm.xlu0 %3350, %v3514_v6  }
  0x65   : > { %566 = vperm.xlu1 %3346, %v3528_v10  }
  0x66   : > { %912 = vperm.xlu0 %3350, %v3522_v8  }
  0x69   : > { %572 = vperm.xlu1 %3346, %v3536_v12  }
  0x6a   : > { %918 = vperm.xlu0 %3350, %v3528_v10  }
  0x6d   : > { %578 = vperm.xlu1 %3346, %v3544_v14  }
  0x6e   : > { %924 = vperm.xlu0 %3350, %v3536_v12  }
  0x71   : > { %584 = vperm.xlu1 %3346, %v3552_v16  }
  0x72   : > { %930 = vperm.xlu0 %3350, %v3544_v14  }
  0x75   : > { %590 = vperm.xlu1 %3346, %v3562_v18  }
  0x76   : > { %936 = vperm.xlu0 %3350, %v3552_v16  }
  0x79   : > { %596 = vperm.xlu1 %3346, %v3570_v20  }
  0x7a   : > { %3370 = vset.pattern.permute.xlu0 %v8065_v33 }
  0x7b   : > { %542 = vperm.xlu0 %3370, %v3498_v2  }
  0x7d   : > { %602 = vperm.xlu1 %3346, %v3578_v22  }
  0x7f   : > { %551 = vperm.xlu0 %3370, %v3503_v3  }
  0x81   : > { %608 = vperm.xlu1 %3346, %v3586_v24  }
  0x83   : > { %557 = vperm.xlu0 %3370, %v3511_v5  }
  0x85   : > { %614 = vperm.xlu1 %3346, %v3594_v26  }
  0x87   : > { %563 = vperm.xlu0 %3370, %v3519_v7  }
  0x89   : > { %3347 = vset.pattern.permute.xlu1 %v8072_v35 }
  0x8a   : > { %897 = vperm.xlu1 %3347, %v3506_v4  }
  0x8b   : > { %569 = vperm.xlu0 %3370, %v3525_v9  }
  0x8e   : > { %3348 = vset.pattern.permute.xlu1 %v8067_v34 }
  0x8f   : > { %1246 = vperm.xlu1 %3348, %v3498_v2   ;;  %575 = vperm.xlu0 %3370, %v3533_v11  }
  0x93   : > { %v3658_v36 = vpop.permute.xlu1 %196  ;;  %3351 = vset.pattern.permute.xlu1 %v8069_v37  ;;  %581 = vperm.xlu0 %3370, %v3541_v13   ;;  %v3662_v38 = vpop.permute.xlu0 %190 }
  0x94   : > { %1598 = vperm.xlu1 %3351, %v3498_v2  }
  0x97   : > { %v3671_v41 = vpop.permute.xlu1 %199  ;;  %587 = vperm.xlu0 %3370, %v3549_v15   ;;  %v3674_v42 = vpop.permute.xlu0 %193 }
  0x98   : > { %1601 = vperm.xlu1 %3351, %v3506_v4  }
  0x9b   : > { %v3689_v47 = vpop.permute.xlu1 %205  ;;  %593 = vperm.xlu0 %3370, %v3559_v17   ;;  %v3692_v48 = vpop.permute.xlu0 %202 }
  0x9c   : > { %3352 = vset.pattern.permute.xlu1 %v8072_v35 }
  0x9d   : > { %903 = vperm.xlu1 %3352, %v3503_v3  }
  0x9f   : > { %v3708_v53 = vpop.permute.xlu1 %211  ;;  %599 = vperm.xlu0 %3370, %v3567_v19   ;;  %v3711_v54 = vpop.permute.xlu0 %208 }
  0xa1   : > { %3353 = vset.pattern.permute.xlu1 %v8067_v34 }
  0xa2   : > { %1252 = vperm.xlu1 %3353, %v3495_v1  }
  0xa3   : > { %v3727_v59 = vpop.permute.xlu1 %217  ;;  %605 = vperm.xlu0 %3370, %v3575_v21   ;;  %v3730_v60 = vpop.permute.xlu0 %214 }
  0xa6   : > { %3354 = vset.pattern.permute.xlu1 %v8069_v37 }
  0xa7   : > { %v3745_v2 = vpop.permute.xlu1 %223  ;;  %1604 = vperm.xlu1 %3354, %v3495_v1   ;;  %611 = vperm.xlu0 %3370, %v3583_v23   ;;  %v3749_v4 = vpop.permute.xlu0 %220  ;;  %v3428_v1 = vld [vmem:[%s8063_s1 + $0xe8] sm:$0xff]  }
  0xa8   : > { %3228 = vmatprep.subr.bf16.mxu1 %v3428_v1 }
  0xa9   : > { %3229 = vmatpush3.bf16.msra.mxu1 %v3430_v49 }
  0xaa   : > { %3230 = vmatprep.subr.bf16.mxu1 %v3432_v51 }
  0xab   : > { %v3763_v44 = vpop.permute.xlu1 %229  ;;  %1607 = vperm.xlu1 %3354, %v3503_v3   ;;  %617 = vperm.xlu0 %3370, %v3591_v25   ;;  %v3767_v45 = vpop.permute.xlu0 %226 }
  0xad   : > { %3231 = vmatpush3.bf16.msra.mxu1 %v3434_v57 }
  0xaf   : > { %v3781_v52 = vpop.permute.xlu1 %235  ;;  %3355 = vset.pattern.permute.xlu1 %v8072_v35  ;;  %3386 = vset.pattern.permute.xlu0 %v8067_v34  ;;  %v3785_v55 = vpop.permute.xlu0 %232 }
  0xb0   : > { %8101 = vst [vmem:[#allocation2_spill] sm:$0xff] %v3781_v52  ;;  %909 = vperm.xlu1 %3355, %v3511_v5   ;;  %1255 = vperm.xlu0 %3386, %v3503_v3   ;;  %v3436_v3 = vld [vmem:[%s8063_s1 + $0xf8] sm:$0xff]  }
  0xb1   : > { %3232 = vmatprep.subr.bf16.mxu1 %v3436_v3 }
  0xb2   : > { %3233 = vmatpush3.bf16.msra.mxu1 %v3438_v0 }
  0xb3   : > { %v3801_v61 = vpop.permute.xlu1 %241  ;;  %v3803_v62 = vpop.permute.xlu0 %238 }
  0xb4   : > { %8102 = vst [vmem:[#allocation3_spill] sm:$0xff] %v3801_v61  ;;  %8103 = vst [vmem:[#allocation4_spill] sm:$0xff] %v3803_v62  ;;  %3356 = vset.pattern.permute.xlu1 %v8067_v34  ;;  %1261 = vperm.xlu0 %3386, %v3511_v5   ;;  %v8139_v61 = vmov 0 }
  0xb5   : > { %1258 = vperm.xlu1 %3356, %v3514_v6  }
  0xb7   : > { %v3814_v39 = vpop.permute.xlu1 %247  ;;  %v3816_v40 = vpop.permute.xlu0 %244 }
  0xb8   : > { %8104 = vst [vmem:[#allocation5_spill] sm:$0xff] %v3814_v39  ;;  %8105 = vst [vmem:[#allocation6_spill] sm:$0xff] %v3816_v40  ;;  %1267 = vperm.xlu0 %3386, %v3519_v7   ;;  %v8098_v39 = vmov 0.0  }
  0xb9   : > { %3357 = vset.pattern.permute.xlu1 %v8069_v37 }
  0xba   : > { %1610 = vperm.xlu1 %3357, %v3514_v6  }
  0xbb   : > { %v3821_v43 = vpop.permute.xlu1 %253  ;;  %v3824_v1 = vpop.permute.xlu0 %250 }
  0xbc   : > { %8106 = vst [vmem:[#allocation7_spill] sm:$0xff] %v3821_v43  ;;  %1273 = vperm.xlu0 %3386, %v3525_v9   ;;  %8107 = vst [vmem:[#allocation8_spill] sm:$0xff] %v3824_v1 }
  0xbe   : > { %1613 = vperm.xlu1 %3357, %v3511_v5  }
  0xbf   : > { %v3827_v46 = vpop.permute.xlu1 %259  ;;  %v3830_v49 = vpop.permute.xlu0 %256 }
  0xc0   : > { %8108 = vst [vmem:[#allocation9_spill] sm:$0xff] %v3827_v46  ;;  %1279 = vperm.xlu0 %3386, %v3533_v11   ;;  %8109 = vst [vmem:[#allocation10_spill] sm:$0xff] %v3830_v49  ;;  %v180_v46 = vlaneseq }
  0xc2   : > { %3358 = vset.pattern.permute.xlu1 %v8072_v35 }
  0xc3   : > { %v3833_v50 = vpop.permute.xlu1 %265  ;;  %915 = vperm.xlu1 %3358, %v3519_v7   ;;  %v3840_v51 = vpop.permute.xlu0 %262 }
  0xc4   : > { %8110 = vst [vmem:[#allocation11_spill] sm:$0xff] %v3833_v50  ;;  %1285 = vperm.xlu0 %3386, %v3541_v13   ;;  %8112 = vst [vmem:[#allocation13_spill] sm:$0xff] %v3840_v51 }
  0xc7   : > { %v3837_v6 = vpop.permute.xlu1 %271  ;;  %3359 = vset.pattern.permute.xlu1 %v8067_v34  ;;  %v3849_v56 = vpop.permute.xlu0 %268 }
  0xc8   : > { %8111 = vst [vmem:[#allocation12_spill] sm:$0xff] %v3837_v6  ;;  %1264 = vperm.xlu1 %3359, %v3522_v8   ;;  %1291 = vperm.xlu0 %3386, %v3549_v15   ;;  %8114 = vst [vmem:[#allocation15_spill] sm:$0xff] %v3849_v56 }
  0xcb   : > { %v3844_v5 = vpop.permute.xlu1 %277  ;;  %v3855_v58 = vpop.permute.xlu0 %274 }
  0xcc   : > { %8113 = vst [vmem:[#allocation14_spill] sm:$0xff] %v3844_v5  ;;  %3360 = vset.pattern.permute.xlu1 %v8069_v37  ;;  %1297 = vperm.xlu0 %3386, %v3559_v17   ;;  %8116 = vst [vmem:[#allocation17_spill] sm:$0xff] %v3855_v58  ;;  %v8120_v58 = vmov 2  }
  0xcd   : > { %1616 = vperm.xlu1 %3360, %v3522_v8  }
  0xcf   : > { %v3851_v57 = vpop.permute.xlu1 %283  ;;  %v3863_v8 = vpop.permute.xlu0 %280 }
  0xd0   : > { %8115 = vst [vmem:[#allocation16_spill] sm:$0xff] %v3851_v57  ;;  %1303 = vperm.xlu0 %3386, %v3567_v19   ;;  %8117 = vst [vmem:[#allocation18_spill] sm:$0xff] %v3863_v8  ;;  %v8119_v8 = vmov 4  }
  0xd1   : > { %1619 = vperm.xlu1 %3360, %v3519_v7  }
  0xd4   : > { %1309 = vperm.xlu0 %3386, %v3575_v21   ;;  %v3859_v3 = vpop.permute.xlu1 %545  ;;  %v3871_v7 = vpop.permute.xlu0 %1249 }
  0xd5   : > { %3361 = vset.pattern.permute.xlu1 %v8072_v35 }
  0xd6   : > { %921 = vperm.xlu1 %3361, %v3525_v9  }
  0xd8   : > { %1315 = vperm.xlu0 %3386, %v3583_v23   ;;  %v3867_v63 = vpop.permute.xlu1 %548 }
  0xd9   : > { %v3880_v33 = vpop.permute.xlu0 %894 }
  0xda   : > { %3362 = vset.pattern.permute.xlu1 %v8067_v34 }
  0xdb   : > { %1270 = vperm.xlu1 %3362, %v3528_v10  }
  0xdc   : > { %1318 = vperm.xlu0 %3386, %v3594_v26   ;;  %v3875_v0 = vpop.permute.xlu1 %554 }
  0xdf   : > { %3363 = vset.pattern.permute.xlu1 %v8069_v37 }
  0xe0   : > { %1622 = vperm.xlu1 %3363, %v3528_v10   ;;  %1327 = vperm.xlu0 %3386, %v3599_v27   ;;  %v3882_v34 = vpop.permute.xlu1 %560  ;;  %v3887_v10 = vpop.permute.xlu0 %900  ;;  %v8118_v27 = vmov 3  }
  0xe4   : > { %1625 = vperm.xlu1 %3363, %v3525_v9   ;;  %3393 = vset.pattern.permute.xlu0 %v8072_v35  ;;  %v3890_v37 = vpop.permute.xlu1 %566  ;;  %v3894_v9 = vpop.permute.xlu0 %906 }
  0xe5   : > { %942 = vperm.xlu0 %3393, %v3562_v18  }
  0xe8   : > { %3364 = vset.pattern.permute.xlu1 %v8072_v35  ;;  %v3898_v35 = vpop.permute.xlu1 %572  ;;  %v3902_v57 = vpop.permute.xlu0 %912 }
  0xe9   : > { %927 = vperm.xlu1 %3364, %v3533_v11   ;;  %948 = vperm.xlu0 %3393, %v3570_v20  }
  0xec   : > { %v3905_v5 = vpop.permute.xlu1 %578  ;;  %v3910_v6 = vpop.permute.xlu0 %918 }
  0xed   : > { %3365 = vset.pattern.permute.xlu1 %v8118_v27  ;;  %954 = vperm.xlu0 %3393, %v3578_v22  }
  0xee   : > { %1276 = vperm.xlu1 %3365, %v3536_v12  }
  0xf1   : > { %960 = vperm.xlu0 %3393, %v3586_v24  }
  0xf2   : > { %3366 = vset.pattern.permute.xlu1 %v8119_v8 }
  0xf3   : > { %1628 = vperm.xlu1 %3366, %v3536_v12   ;;  %v3914_v12 = vpop.permute.xlu1 %584 }
  0xf4   : > { %8121 = vst [vmem:[#allocation19_spill] sm:$0xff] %v3914_v12  ;;  %v8147_v12 = vmov 0 }
  0xf5   : > { %972 = vperm.xlu0 %3393, %v3602_v28  }
  0xf7   : > { %1631 = vperm.xlu1 %3366, %v3533_v11   ;;  %v3919_v11 = vpop.permute.xlu0 %924  ;;  %v3921_v28 = vpop.permute.xlu1 %590 }
  0xf8   : > { %8122 = vst [vmem:[#allocation20_spill] sm:$0xff] %v3921_v28  ;;  %v8137_v28 = vmov 0 }
  0xf9   : > { %981 = vperm.xlu0 %3393, %v3607_v29   ;;  %v8123_v29 = vmov 1  }
  0xfb   : > { %3367 = vset.pattern.permute.xlu1 %v8120_v58  ;;  %v3930_v56 = vpop.permute.xlu1 %596 }
  0xfc   : > { %933 = vperm.xlu1 %3367, %v3541_v13   ;;  %8124 = vst [vmem:[#allocation21_spill] sm:$0xff] %v3930_v56  ;;  %v8131_v56 = vmov 0 }
  0xfd   : > { %3397 = vset.pattern.permute.xlu0 %v8119_v8 }
  0xfe   : > { %1673 = vperm.xlu0 %3397, %v3591_v25   ;;  %v3927_v25 = vpop.permute.xlu0 %930 }
 0x100   : > { %3368 = vset.pattern.permute.xlu1 %v8118_v27 }
 0x101   : > { %1282 = vperm.xlu1 %3368, %v3544_v14  }
 0x102   : > { %1682 = vperm.xlu0 %3397, %v3610_v30   ;;  %v3934_v51 = vpop.permute.xlu0 %936 }
 0x103   : > { %8125 = vst [vmem:[#allocation22_spill] sm:$0xff] %v3934_v51 }
 0x105   : > { %3369 = vset.pattern.permute.xlu1 %v8119_v8 }
 0x106   : > { %1634 = vperm.xlu1 %3369, %v3544_v14   ;;  %3399 = vset.pattern.permute.xlu0 %v8123_v29  ;;  %v3938_v14 = vpop.permute.xlu1 %602 }
 0x107   : > { %626 = vperm.xlu0 %3399, %v3610_v30   ;;  %8126 = vst [vmem:[#allocation23_spill] sm:$0xff] %v3938_v14 }
 0x10a   : > { %1637 = vperm.xlu1 %3369, %v3541_v13   ;;  %v3943_v13 = vpop.permute.xlu0 %542  ;;  %v3947_v30 = vpop.permute.xlu1 %608 }
 0x10b   : > { %635 = vperm.xlu0 %3399, %v3615_v31   ;;  %8127 = vst [vmem:[#allocation24_spill] sm:$0xff] %v3947_v30  ;;  %v3963_v30 = vand.u32 127, %v180_v46 }
 0x10d   : > { %v3976_v14 = vadd.s32 128, %v3963_v30  ;;  %v3985_v46 = vadd.s32 256, %v3963_v30  ;;  %vm285_vm5 = vcmp.eq.s32.totalorder %v3963_v30, %v3662_v38  ;;  %vm637_vm6 = vcmp.eq.s32.totalorder %v3963_v30, %v3943_v13 }
 0x10e   : > { %3371 = vset.pattern.permute.xlu1 %v8120_v58  ;;  %v3951_v50 = vpop.permute.xlu0 %551  ;;  %v3953_v49 = vpop.permute.xlu1 %614  ;;  %vm4025_vm15 = vmor %vm285_vm5, %vm637_vm6 }
 0x10f   : > { %939 = vperm.xlu1 %3371, %v3549_v15   ;;  %3403 = vset.pattern.permute.xlu0 %v8118_v27  ;;  %8128 = vst [vmem:[#allocation25_spill] sm:$0xff] %v3953_v49  ;;  %vm290_vm3 = vcmp.eq.s32.totalorder %v3976_v14, %v3674_v42  ;;  %vm642_vm4 = vcmp.eq.s32.totalorder %v3976_v14, %v3859_v3 }
 0x110   : > { %1336 = vperm.xlu0 %3403, %v3618_v32   ;;  %vm287_vm8 = vcmp.eq.s32.totalorder %v3985_v46, %v3662_v38  ;;  %vm639_vm9 = vcmp.eq.s32.totalorder %v3985_v46, %v3943_v13  ;;  %vm638_vm11 = vcmp.eq.s32.totalorder %v3976_v14, %v3943_v13  ;;  %vm286_vm12 = vcmp.eq.s32.totalorder %v3976_v14, %v3662_v38  ;;  %vm4019_vm13 = vmor %vm290_vm3, %vm642_vm4 }
 0x111   : > { %vm766_vm4 = vmor %vm286_vm12, %vm638_vm11  ;;  %vm289_vm11 = vcmp.eq.s32.totalorder %v3963_v30, %v3674_v42  ;;  %vm641_vm12 = vcmp.eq.s32.totalorder %v3963_v30, %v3859_v3 }
 0x112   : > { %v3956_v32 = vpop.permute.xlu0 %557 }
 0x113   : > { %3372 = vset.pattern.permute.xlu1 %v8118_v27 }
 0x114   : > { %1288 = vperm.xlu1 %3372, %v3552_v16   ;;  %3406 = vset.pattern.permute.xlu0 %v8119_v8 }
 0x115   : > { %1691 = vperm.xlu0 %3406, %v3615_v31   ;;  %v3960_v31 = vpop.permute.xlu1 %897 }
 0x116   : > { %vm994_vm3 = vcmp.eq.s32.totalorder %v3976_v14, %v3960_v31 }
 0x118   : > { %3373 = vset.pattern.permute.xlu1 %v8119_v8 }
 0x119   : > { %1640 = vperm.xlu1 %3373, %v3552_v16   ;;  %v3965_v16 = vpop.permute.xlu0 %563  ;;  %v3968_v49 = vpop.permute.xlu1 %1246 }
 0x11a   : > { %vm1342_vm5 = vcmp.eq.s32.totalorder %v3976_v14, %v3968_v49 }
 0x11d   : > { %1643 = vperm.xlu1 %3373, %v3549_v15   ;;  %v3971_v15 = vadd.s32 384, %v3963_v30  ;;  %v3978_v43 = vpop.permute.xlu0 %569  ;;  %v3988_v1 = vpop.permute.xlu1 %1598 }
 0x11f   : > { %vm292_vm0 = vcmp.eq.s32.totalorder %v3971_v15, %v3674_v42  ;;  %vm288_vm1 = vcmp.eq.s32.totalorder %v3971_v15, %v3662_v38  ;;  %vm8093_vm2 = vcmp.eq.s32.totalorder %v3971_v15, 500  ;;  %vm644_vm14 = vcmp.eq.s32.totalorder %v3971_v15, %v3859_v3 }
 0x120   : > { %vm4000_vm7 = vmor %vm8093_vm2, %vm292_vm0  ;;  %vm990_vm0 = vcmp.eq.s32.totalorder %v3976_v14, %v3880_v33 }
 0x121   : > { %3374 = vset.pattern.permute.xlu1 %v8120_v58  ;;  %vm4011_vm10 = vmor %vm8093_vm2, %vm288_vm1  ;;  %v4029_v40 = vpop.permute.xlu0 %575  ;;  %v4040_v38 = vpop.permute.xlu1 %1601  ;;  %vm1346_vm2 = vcmp.eq.s32.totalorder %v3976_v14, %v3871_v7 }
 0x122   : > { %945 = vperm.xlu1 %3374, %v3559_v17   ;;  %v8132_v56 = vsel %vm4011_vm10, 4294967295, %v8131_v56  ;;  %vm4033_vm1 = vmor %vm287_vm8, %vm639_vm9  ;;  %vm989_vm8 = vcmp.eq.s32.totalorder %v3963_v30, %v3880_v33 }
 0x123   : > { %v8138_v28 = vsel %vm4033_vm1, 4294967295, %v8137_v28  ;;  %vm4046_vm6 = vmor %vm4000_vm7, %vm644_vm14  ;;  %vm1694_vm14 = vcmp.eq.s32.totalorder %v3976_v14, %v3988_v1  ;;  %vm1698_vm1 = vcmp.eq.s32.totalorder %v3976_v14, %v4040_v38 }
 0x124   : > { %v8140_v61 = vsel %vm4046_vm6, 4294967295, %v8139_v61  ;;  %vm1118_vm9 = vmor %vm766_vm4, %vm990_vm0  ;;  %vm640_vm0 = vcmp.eq.s32.totalorder %v3971_v15, %v3943_v13 }
 0x125   : > { %vm1122_vm7 = vmor %vm4019_vm13, %vm994_vm3  ;;  %v4073_v62 = vpop.permute.xlu0 %581  ;;  %vm992_vm3 = vcmp.eq.s32.totalorder %v3971_v15, %v3880_v33 }
 0x126   : > { %3375 = vset.pattern.permute.xlu1 %v8118_v27  ;;  %vm1470_vm6 = vmor %vm1118_vm9, %vm1342_vm5 }
 0x127   : > { %1294 = vperm.xlu1 %3375, %v3562_v18   ;;  %vm4069_vm4 = vmor %vm4025_vm15, %vm989_vm8  ;;  %vm991_vm8 = vcmp.eq.s32.totalorder %v3985_v46, %v3880_v33 }
 0x128   : > { %vm1474_vm10 = vmor %vm1122_vm7, %vm1346_vm2  ;;  %vm996_vm2 = vcmp.eq.s32.totalorder %v3971_v15, %v3960_v31  ;;  %vm1348_vm7 = vcmp.eq.s32.totalorder %v3971_v15, %v3871_v7 }
 0x129   : > { %vm1822_vm13 = vmor %vm1470_vm6, %vm1694_vm14  ;;  %vm643_vm6 = vcmp.eq.s32.totalorder %v3985_v46, %v3859_v3  ;;  %vm8146_vm14 = vnez %v8138_v28 }
 0x12a   : > { %vm4078_vm5 = vmor %vm289_vm11, %vm641_vm12  ;;  %v2945_v51 = vsel %vm1822_vm13, 1.0, %v8098_v39  ;;  %vm8145_vm11 = vnez %v8132_v56  ;;  %vm8149_vm13 = vnez %v8140_v61  ;;  %v4113_v56 = vpop.permute.xlu0 %587  ;;  %v4130_v61 = vpop.permute.xlu1 %903 }
 0x12b   : > { %3376 = vset.pattern.permute.xlu1 %v8119_v8  ;;  %vm1826_vm9 = vmor %vm1474_vm10, %vm1698_vm1  ;;  %vm1344_vm10 = vcmp.eq.s32.totalorder %v3971_v15, %v3968_v49 }
 0x12c   : > { %1646 = vperm.xlu1 %3376, %v3562_v18   ;;  %v2949_v52 = vsel %vm1826_vm9, 1.0, %v8098_v39  ;;  %vm768_vm12 = vmor %vm8145_vm11, %vm640_vm0  ;;  %vm1696_vm0 = vcmp.eq.s32.totalorder %v3971_v15, %v3988_v1  ;;  %vm1700_vm11 = vcmp.eq.s32.totalorder %v3971_v15, %v4040_v38 }
 0x12d   : > { %v2206_v33 = vpack.c.bf16 %v2949_v52, %v2945_v51  ;;  %vm1120_vm1 = vmor %vm768_vm12, %vm992_vm3 }
 0x12e   : > { %vm4104_vm15 = vmor %vm8146_vm14, %vm991_vm8  ;;  %vm8150_vm8 = vcmp.eq.s32.totalorder %v3985_v46, %v3674_v42  ;;  %v4149_v3 = vpop.permute.xlu0 %593 }
 0x12f   : > { %v8148_v12 = vsel %vm4104_vm15, 4294967295, %v8147_v12  ;;  %vm1124_vm9 = vmor %vm8149_vm13, %vm996_vm2  ;;  %2557 = vmatprep.mubr.bf16.mxu0 %v2206_v33  ;;  %vm993_vm2 = vcmp.eq.s32.totalorder %v3963_v30, %v3960_v31  ;;  %vm1345_vm13 = vcmp.eq.s32.totalorder %v3963_v30, %v3871_v7 }
 0x130   : > { %1649 = vperm.xlu1 %3376, %v3559_v17   ;;  %vm1472_vm3 = vmor %vm1120_vm1, %vm1344_vm10  ;;  %vm1341_vm1 = vcmp.eq.s32.totalorder %v3963_v30, %v3968_v49 }
 0x131   : > { %vm4123_vm12 = vmor %vm8150_vm8, %vm643_vm6  ;;  %vm1347_vm8 = vcmp.eq.s32.totalorder %v3985_v46, %v3871_v7 }
 0x132   : > { %vm1476_vm14 = vmor %vm1124_vm9, %vm1348_vm7  ;;  %vm1693_vm7 = vcmp.eq.s32.totalorder %v3963_v30, %v3988_v1  ;;  %v4169_v7 = vpop.permute.xlu0 %599 }
 0x133   : > { %vm1824_vm10 = vmor %vm1472_vm3, %vm1696_vm0  ;;  %vm1697_vm0 = vcmp.eq.s32.totalorder %v3963_v30, %v4040_v38  ;;  %vm995_vm3 = vcmp.eq.s32.totalorder %v3985_v46, %v3960_v31 }
 0x134   : > { %3377 = vset.pattern.permute.xlu1 %v8120_v58  ;;  %vm1828_vm15 = vmor %vm1476_vm14, %vm1700_vm11  ;;  %v2947_v42 = vsel %vm1824_vm10, 1.0, %v8098_v39  ;;  %vm1343_vm11 = vcmp.eq.s32.totalorder %v3985_v46, %v3968_v49  ;;  %vm1695_vm14 = vcmp.eq.s32.totalorder %v3985_v46, %v3988_v1  ;;  %vm8153_vm10 = vnez %v8148_v12 }
 0x135   : > { %951 = vperm.xlu1 %3377, %v3567_v19   ;;  %v2951_v51 = vsel %vm1828_vm15, 1.0, %v8098_v39  ;;  %vm1121_vm6 = vmor %vm4078_vm5, %vm993_vm2 }
 0x136   : > { %vm1469_vm9 = vmor %vm4069_vm4, %vm1341_vm1  ;;  %v4177_v17 = vpop.permute.xlu0 %605 }
 0x137   : > { %vm1473_vm15 = vmor %vm1121_vm6, %vm1345_vm13  ;;  %vm1699_vm13 = vcmp.eq.s32.totalorder %v3985_v46, %v4040_v38 }
 0x138   : > { %vm1821_vm5 = vmor %vm1469_vm9, %vm1693_vm7 }
 0x139   : > { %3378 = vset.pattern.permute.xlu1 %v8118_v27  ;;  %vm1825_vm2 = vmor %vm1473_vm15, %vm1697_vm0  ;;  %v2944_v28 = vsel %vm1821_vm5, 1.0, %v8098_v39  ;;  %vm300_vm0 = vcmp.eq.s32.totalorder %v3971_v15, %v3671_v41  ;;  %vm646_vm15 = vcmp.eq.s32.totalorder %v3976_v14, %v3867_v63  ;;  %vm8154_vm5 = vcmp.eq.s32.totalorder %v3971_v15, 500 }
 0x13a   : > { %1300 = vperm.xlu1 %3378, %v3570_v20   ;;  %v2948_v13 = vsel %vm1825_vm2, 1.0, %v8098_v39  ;;  %vm1123_vm4 = vmor %vm4123_vm12, %vm995_vm3  ;;  %vm296_vm12 = vcmp.eq.s32.totalorder %v3971_v15, %v3658_v36  ;;  %v4186_v33 = vpop.permute.xlu0 %611  ;;  %vm308_vm3 = vcmp.eq.s32.totalorder %v3971_v15, %v3689_v47 }
 0x13b   : > { %v2205_v49 = vpack.c.bf16 %v2948_v13, %v2944_v28  ;;  %vm1471_vm1 = vmor %vm8153_vm10, %vm1343_vm11  ;;  %vm304_vm10 = vcmp.eq.s32.totalorder %v3971_v15, %v3692_v48  ;;  %v8167_v28 = vmov 0  ;;  %v8236_v13 = vmov 0 }
 0x13c   : > { %vm1475_vm6 = vmor %vm1123_vm4, %vm1347_vm8  ;;  %vm648_vm8 = vcmp.eq.s32.totalorder %v3971_v15, %v3867_v63 }
 0x13d   : > { %2558 = vmatmul.mubr.bf16.vlgmr.msra.gmra.mrb[0].mxu0 %v2205_v49  ;;  %vm1823_vm7 = vmor %vm1471_vm1, %vm1695_vm14  ;;  %vm294_vm14 = vcmp.eq.s32.totalorder %v3976_v14, %v3658_v36  ;;  %vm649_vm1 = vcmp.eq.s32.totalorder %v3963_v30, %v3951_v50 }
 0x13e   : > { %3379 = vset.pattern.permute.xlu1 %v8119_v8  ;;  %vm1827_vm9 = vmor %vm1475_vm6, %vm1699_vm13  ;;  %v2946_v31 = vsel %vm1823_vm7, 1.0, %v8098_v39 }
 0x13f   : > { %1652 = vperm.xlu1 %3379, %v3570_v20   ;;  %v2208_v20 = vpack.c.bf16 %v2951_v51, %v2947_v42  ;;  %v2950_v1 = vsel %vm1827_vm9, 1.0, %v8098_v39  ;;  %vm424_vm11 = vmor %vm8154_vm5, %vm296_vm12  ;;  %vm650_vm9 = vcmp.eq.s32.totalorder %v3976_v14, %v3951_v50  ;;  %v4226_v51 = vpop.permute.xlu0 %617  ;;  %vm645_vm12 = vcmp.eq.s32.totalorder %v3963_v30, %v3867_v63 }
 0x140   : > { %v2207_v12 = vpack.c.bf16 %v2950_v1, %v2946_v31  ;;  %vm8155_vm2 = vmmov %vm8154_vm5  ;;  %8163 = vst [vmem:[#allocation26_spill] sm:$0xff] %v4226_v51  ;;  %v8173_v1 = vmov 0  ;;  %v8186_v39 = vmov 0  ;;  %v8193_v51 = vmov 0 }
 0x141   : > { %2718 = vmatprep.mubr.bf16.mxu1 %v2208_v20  ;;  %vm4203_vm4 = vmor %vm8155_vm2, %vm300_vm0  ;;  %v8164_v20 = vmov 0  ;;  %v8203_v31 = vmov 0 }
 0x142   : > { %2719 = vmatmul.mubr.bf16.vlgmr.msra.gmra.mrb[0].mxu1 %v2207_v12  ;;  %vm8158_vm13 = vmmov %vm8155_vm2  ;;  %v8178_v12 = vmov 0 }
 0x143   : > { %1655 = vperm.xlu1 %3379, %v3567_v19   ;;  %v4155_v19 = vpop.permute.xlu1 %1252  ;;  %vm4216_vm6 = vmor %vm8158_vm13, %vm308_vm3  ;;  %vm297_vm3 = vcmp.eq.s32.totalorder %v3963_v30, %v3671_v41  ;;  %vm299_vm13 = vcmp.eq.s32.totalorder %v3985_v46, %v3671_v41 }
 0x144   : > { %vm4220_vm7 = vmor %vm294_vm14, %vm646_vm15  ;;  %vm298_vm14 = vcmp.eq.s32.totalorder %v3976_v14, %v3671_v41  ;;  %v8211_v41 = vmov 0 }
 0x145   : > { %vm4230_vm0 = vmor %vm424_vm11, %vm648_vm8  ;;  %vm652_vm11 = vcmp.eq.s32.totalorder %v3971_v15, %v3951_v50 }
 0x146   : > { %v8165_v20 = vsel %vm4230_vm0, 4294967295, %v8164_v20  ;;  %vm8166_vm5 = vmmov %vm8155_vm2 }
 0x147   : > { %3380 = vset.pattern.permute.xlu1 %v8120_v58  ;;  %v4174_v18 = vpop.permute.xlu1 %1604  ;;  %vm4240_vm2 = vmor %vm8166_vm5, %vm304_vm10  ;;  %vm293_vm10 = vcmp.eq.s32.totalorder %v3963_v30, %v3658_v36 }
 0x148   : > { %957 = vperm.xlu1 %3380, %v3575_v21   ;;  %v8168_v28 = vsel %vm4240_vm2, 4294967295, %v8167_v28  ;;  %vm4248_vm8 = vmor %vm297_vm3, %vm649_vm1  ;;  %vm658_vm1 = vcmp.eq.s32.totalorder %v3976_v14, %v3956_v32  ;;  %vm660_vm3 = vcmp.eq.s32.totalorder %v3971_v15, %v3956_v32 }
 0x149   : > { %vm4259_vm5 = vmor %vm298_vm14, %vm650_vm9  ;;  %vm8175_vm14 = vcmp.eq.s32.totalorder %v3985_v46, %v3951_v50 }
 0x14a   : > { %vm4271_vm15 = vmor %vm293_vm10, %vm645_vm12  ;;  %vm306_vm12 = vcmp.eq.s32.totalorder %v3976_v14, %v3689_v47 }
 0x14b   : > { %v4181_v38 = vpop.permute.xlu1 %1607  ;;  %v8174_v1 = vsel %vm4271_vm15, 4294967295, %v8173_v1  ;;  %vm4280_vm2 = vmor %vm299_vm13, %vm8175_vm14  ;;  %vm295_vm13 = vcmp.eq.s32.totalorder %v3985_v46, %v3658_v36  ;;  %vm657_vm14 = vcmp.eq.s32.totalorder %v3963_v30, %v3956_v32  ;;  %vm8182_vm15 = vcmp.eq.s32.totalorder %v3985_v46, %v3867_v63 }
 0x14c   : > { %3381 = vset.pattern.permute.xlu1 %v8118_v27  ;;  %vm4288_vm0 = vmor %vm4203_vm4, %vm652_vm11  ;;  %v8240_v63 = vmov 0 }
 0x14d   : > { %1306 = vperm.xlu1 %3381, %v3578_v22   ;;  %v8179_v12 = vsel %vm4288_vm0, 4294967295, %v8178_v12  ;;  %vm4300_vm9 = vmor %vm306_vm12, %vm658_vm1  ;;  %vm1000_vm1 = vcmp.eq.s32.totalorder %v3971_v15, %v3887_v10  ;;  %vm8185_vm12 = vcmp.eq.s32.totalorder %v3976_v14, %v3887_v10 }
 0x14e   : > { %vm4313_vm0 = vmor %vm295_vm13, %vm8182_vm15  ;;  %vm305_vm13 = vcmp.eq.s32.totalorder %v3963_v30, %v3689_v47 }
 0x14f   : > { %v4192_v52 = vpop.permute.xlu1 %909  ;;  %vm4324_vm4 = vmor %vm4220_vm7, %vm8185_vm12  ;;  %vm8190_vm12 = vcmp.eq.s32.totalorder %v3963_v30, %v4130_v61 }
 0x150   : > { %v8187_v39 = vsel %vm4324_vm4, 4294967295, %v8186_v39  ;;  %vm4330_vm11 = vmor %vm4216_vm6, %vm660_vm3  ;;  %vm8205_vm3 = vcmp.eq.s32.totalorder %v3985_v46, %v4130_v61 }
 0x151   : > { %3382 = vset.pattern.permute.xlu1 %v8119_v8  ;;  %vm4346_vm6 = vmor %vm4248_vm8, %vm8190_vm12  ;;  %vm8195_vm8 = vcmp.eq.s32.totalorder %v3976_v14, %v4130_v61 }
 0x152   : > { %1658 = vperm.xlu1 %3382, %v3578_v22   ;;  %vm4358_vm7 = vmor %vm305_vm13, %vm657_vm14  ;;  %vm8198_vm13 = vnez %v8165_v20 }
 0x153   : > { %v4252_v49 = vpop.permute.xlu1 %1258  ;;  %v8194_v51 = vsel %vm4358_vm7, 4294967295, %v8193_v51  ;;  %vm4367_vm12 = vmor %vm4259_vm5, %vm8195_vm8  ;;  %vm8201_vm5 = vcmp.eq.s32.totalorder %v3976_v14, %v3875_v0  ;;  %vm8202_vm8 = vcmp.eq.s32.totalorder %v3976_v14, %v3692_v48 }
 0x154   : > { %vm4381_vm10 = vmor %vm8198_vm13, %vm1000_vm1 }
 0x155   : > { %vm4391_vm7 = vmor %vm8202_vm8, %vm8201_vm5  ;;  %vm8208_vm8 = vcmp.eq.s32.totalorder %v3971_v15, %v4130_v61  ;;  %v8224_v61 = vmov 0 }
 0x156   : > { %1661 = vperm.xlu1 %3382, %v3575_v21   ;;  %v1256_v21 = vpop.permute.xlu0 %1255  ;;  %v8204_v31 = vsel %vm4391_vm7, 4294967295, %v8203_v31  ;;  %vm4400_vm14 = vmor %vm4280_vm2, %vm8205_vm3  ;;  %vm8209_vm7 = vnez %v8179_v12  ;;  %vm8210_vm3 = vcmp.eq.s32.totalorder %v3985_v46, %v3956_v32 }
 0x157   : > { %v4350_v42 = vpop.permute.xlu1 %1610  ;;  %vm1354_vm15 = vcmp.eq.s32.totalorder %v3976_v14, %v1256_v21  ;;  %vm1132_vm4 = vmor %vm8209_vm7, %vm8208_vm8  ;;  %vm8215_vm8 = vcmp.eq.s32.totalorder %v3963_v30, %v3887_v10  ;;  %vm8229_vm7 = vcmp.eq.s32.totalorder %v3976_v14, %v4192_v52 }
 0x158   : > { %vm4428_vm5 = vmor %vm4367_vm12, %vm1354_vm15  ;;  %vm8219_vm15 = vcmp.eq.s32.totalorder %v3971_v15, %v3875_v0  ;;  %vm8220_vm12 = vnez %v8168_v28 }
 0x159   : > { %vm4451_vm13 = vmor %vm8220_vm12, %vm8219_vm15  ;;  %vm1350_vm15 = vcmp.eq.s32.totalorder %v3976_v14, %v4155_v19 }
 0x15a   : > { %3383 = vset.pattern.permute.xlu1 %v8120_v58  ;;  %v4498_v50 = vpop.permute.xlu0 %1261 }
 0x15b   : > { %963 = vperm.xlu1 %3383, %v3583_v23   ;;  %v4485_v12 = vpop.permute.xlu1 %1613 }
 0x15f   : > { %3384 = vset.pattern.permute.xlu1 %v8118_v27  ;;  %v4611_v20 = vpop.permute.xlu1 %915 }
 0x160   : > { %1312 = vperm.xlu1 %3384, %v3586_v24  }
 0x164   : > { %3385 = vset.pattern.permute.xlu1 %v8119_v8 }
 0x165   : > { %1664 = vperm.xlu1 %3385, %v3586_v24   ;;  %v8199_v24 = vmov 0 }
 0x166   : > { %v8200_v24 = vsel %vm4381_vm10, 4294967295, %v8199_v24  ;;  %vm307_vm10 = vcmp.eq.s32.totalorder %v3985_v46, %v3689_v47 }
 0x167   : > { %vm4420_vm1 = vmor %vm307_vm10, %vm8210_vm3  ;;  %vm8216_vm3 = vnez %v8174_v1  ;;  %vm8223_vm10 = vcmp.eq.s32.totalorder %v3963_v30, %v1256_v21 }
 0x168   : > { %v8212_v41 = vsel %vm4420_vm1, 4294967295, %v8211_v41  ;;  %vm4442_vm2 = vmor %vm8216_vm3, %vm8215_vm8  ;;  %vm8226_vm8 = vcmp.eq.s32.totalorder %v3971_v15, %v1256_v21 }
 0x169   : > { %1667 = vperm.xlu1 %3385, %v3583_v23   ;;  %vm4460_vm1 = vmor %vm4346_vm6, %vm8223_vm10  ;;  %vm8235_vm10 = vcmp.eq.s32.totalorder %v3985_v46, %v3887_v10  ;;  %v8243_v10 = vmov 0  ;;  %v8280_v23 = vmov 0 }
 0x16a   : > { %v8225_v61 = vsel %vm4460_vm1, 4294967295, %v8224_v61  ;;  %vm4466_vm3 = vmor %vm1132_vm4, %vm8226_vm8  ;;  %vm8232_vm8 = vcmp.eq.s32.totalorder %v3971_v15, %v4192_v52 }
 0x16b   : > { %vm4479_vm6 = vmor %vm4300_vm9, %vm8229_vm7  ;;  %vm8242_vm7 = vcmp.eq.s32.totalorder %v3985_v46, %v1256_v21  ;;  %vm8247_vm9 = vcmp.eq.s32.totalorder %v3971_v15, 500  ;;  %v8248_v21 = vmov 0 }
 0x16c   : > { %vm4494_vm12 = vmor %vm4330_vm11, %vm8232_vm8  ;;  %vm8238_vm11 = vcmp.eq.s32.totalorder %v3963_v30, %v3875_v0  ;;  %vm8239_vm8 = vcmp.eq.s32.totalorder %v3963_v30, %v3692_v48 }
 0x16d   : > { %vm4509_vm4 = vmor %vm4313_vm0, %vm8235_vm10  ;;  %vm8245_vm10 = vnez %v8187_v39  ;;  %3387 = vset.pattern.permute.xlu1 %v8120_v58 }
 0x16e   : > { %v8237_v13 = vsel %vm4509_vm4, 4294967295, %v8236_v13  ;;  %vm4519_vm1 = vmor %vm8239_vm8, %vm8238_vm11  ;;  %vm8246_vm8 = vcmp.eq.s32.totalorder %v3971_v15, %v3711_v54  ;;  %966 = vperm.xlu1 %3387, %v3594_v26   ;;  %vm8255_vm11 = vcmp.eq.s32.totalorder %v3985_v46, %v3875_v0  ;;  %v8257_v26 = vmov 0 }
 0x16f   : > { %v8241_v63 = vsel %vm4519_vm1, 4294967295, %v8240_v63  ;;  %vm4529_vm0 = vmor %vm4400_vm14, %vm8242_vm7  ;;  %vm1706_vm14 = vcmp.eq.s32.totalorder %v3976_v14, %v4181_v38  ;;  %v8263_v0 = vmov 0.0  }
 0x170   : > { %v8244_v10 = vsel %vm4529_vm0, 4294967295, %v8243_v10  ;;  %vm1478_vm4 = vmor %vm8245_vm10, %vm1350_vm15  ;;  %vm8250_vm15 = vcmp.eq.s32.totalorder %v3976_v14, %v4174_v18 }
 0x171   : > { %vm4543_vm1 = vmor %vm8247_vm9, %vm8246_vm8  ;;  %vm8251_vm8 = vcmp.eq.s32.totalorder %v3963_v30, %v4192_v52  ;;  %vm8256_vm9 = vcmp.eq.s32.totalorder %v3985_v46, %v3692_v48 }
 0x172   : > { %v8249_v21 = vsel %vm4543_vm1, 4294967295, %v8248_v21  ;;  %vm1830_vm7 = vmor %vm1478_vm4, %vm8250_vm15  ;;  %vm8252_vm1 = vnez %v8194_v51  ;;  %vm8260_vm4 = vnez %v8204_v31 }
 0x173   : > { %vm4564_vm0 = vmor %vm8252_vm1, %vm8251_vm8  ;;  %vm8259_vm8 = vcmp.eq.s32.totalorder %v3976_v14, %v3894_v9  ;;  %v2953_v36 = vsel %vm1830_vm7, 1.0, %v8263_v0  ;;  %vm8266_vm7 = vcmp.eq.s32.totalorder %v3971_v15, %v4174_v18 }
 0x174   : > { %vm1834_vm15 = vmor %vm4428_vm5, %vm1706_vm14  ;;  %vm8265_vm14 = vnez %v8200_v24  ;;  %v3440_v24 = vld [vmem:[%s3492_s15 + $0xc0] sm:$0xff] }
 0x175   : > { %vm4578_vm10 = vmor %vm8256_vm9, %vm8255_vm11  ;;  %v2957_v48 = vsel %vm1834_vm15, 1.0, %v8263_v0  ;;  %vm8264_vm11 = vcmp.eq.s32.totalorder %v3971_v15, %v4155_v19 }
 0x176   : > { %v8258_v26 = vsel %vm4578_vm10, 4294967295, %v8257_v26  ;;  %vm4589_vm5 = vmor %vm8260_vm4, %vm8259_vm8  ;;  %v2210_v31 = vpack.c.bf16 %v2957_v48, %v2953_v36  ;;  %vm1708_vm4 = vcmp.eq.s32.totalorder %v3971_v15, %v4181_v38  ;;  %v8289_v48 = vmov 0 }
 0x177   : > { %vm1480_vm9 = vmor %vm8265_vm14, %vm8264_vm11  ;;  %vm8267_vm11 = vcmp.eq.s32.totalorder %v3985_v46, %v4192_v52  ;;  %vm8268_vm14 = vnez %v8212_v41  ;;  %v3439_v52 = vld [vmem:[%s3492_s15 + $0xc8] sm:$0xff] }
 0x178   : > { %vm1832_vm15 = vmor %vm1480_vm9, %vm8266_vm7  ;;  %vm8271_vm9 = vcmp.eq.s32.totalorder %v3976_v14, %v4498_v50  ;;  %969 = vperm.xlu1 %3387, %v3439_v52   ;;  %2565 = vmatprep.mubr.bf16.mxu0 %v2210_v31 }
 0x179   : > { %vm4618_vm1 = vmor %vm8268_vm14, %vm8267_vm11  ;;  %vm8274_vm14 = vcmp.eq.s32.totalorder %v3971_v15, %v3894_v9  ;;  %v2955_v28 = vsel %vm1832_vm15, 1.0, %v8263_v0  ;;  %vm1705_vm15 = vcmp.eq.s32.totalorder %v3963_v30, %v4181_v38  ;;  %vm8283_vm11 = vcmp.eq.s32.totalorder %v3971_v15, %v4498_v50 }
 0x17a   : > { %vm4629_vm7 = vmor %vm4479_vm6, %vm8271_vm9  ;;  %vm8279_vm9 = vcmp.eq.s32.totalorder %v3976_v14, %v3711_v54 }
 0x17b   : > { %vm1836_vm8 = vmor %vm4466_vm3, %vm1708_vm4  ;;  %vm8277_vm3 = vcmp.eq.s32.totalorder %v3963_v30, %v4155_v19  ;;  %vm8303_vm4 = vnez %v8258_v26 }
 0x17c   : > { %vm4643_vm10 = vmor %vm4451_vm13, %vm8274_vm14  ;;  %v2959_v1 = vsel %vm1836_vm8, 1.0, %v8263_v0  ;;  %vm8278_vm13 = vcmp.eq.s32.totalorder %v3976_v14, %v3882_v34  ;;  %3388 = vset.pattern.permute.xlu1 %v8118_v27 }
 0x17d   : > { %vm1477_vm6 = vmor %vm4442_vm2, %vm8277_vm3  ;;  %v2212_v36 = vpack.c.bf16 %v2959_v1, %v2955_v28  ;;  %vm8282_vm2 = vcmp.eq.s32.totalorder %v3963_v30, %v4174_v18  ;;  %1321 = vperm.xlu1 %3388, %v3439_v52   ;;  %v3443_v28 = vld [vmem:[%s3492_s15 + $0xe8] sm:$0xff] }
 0x17e   : > { %vm4662_vm14 = vmor %vm8279_vm9, %vm8278_vm13  ;;  %vm8287_vm13 = vcmp.eq.s32.totalorder %v3963_v30, %v3894_v9  ;;  %vm8288_vm9 = vnez %v8241_v63 }
 0x17f   : > { %v8281_v23 = vsel %vm4662_vm14, 4294967295, %v8280_v23  ;;  %vm1829_vm8 = vmor %vm1477_vm6, %vm8282_vm2  ;;  %vm8286_vm6 = vnez %v8225_v61  ;;  %2726 = vmatprep.mubr.bf16.mxu1 %v2212_v36 }
 0x180   : > { %vm4684_vm14 = vmor %vm4494_vm12, %vm8283_vm11  ;;  %v2952_v22 = vsel %vm1829_vm8, 1.0, %v8263_v0  ;;  %vm8291_vm12 = vcmp.eq.s32.totalorder %v3985_v46, %v4155_v19  ;;  %vm8292_vm11 = vnez %v8237_v13  ;;  %vm8293_vm8 = vcmp.eq.s32.totalorder %v3985_v46, %v4174_v18  ;;  %v4718_v19 = vpop.permute.xlu1 %1264 }
 0x181   : > { %vm1833_vm2 = vmor %vm8286_vm6, %vm1705_vm15  ;;  %v8296_v13 = vmov 0  ;;  %v8299_v18 = vmov 0  ;;  %3389 = vset.pattern.permute.xlu1 %v8119_v8 }
 0x182   : > { %vm4697_vm3 = vmor %vm8288_vm9, %vm8287_vm13  ;;  %v2956_v31 = vsel %vm1833_vm2, 1.0, %v8263_v0  ;;  %vm1707_vm13 = vcmp.eq.s32.totalorder %v3985_v46, %v4181_v38  ;;  %vm8301_vm2 = vnez %v8244_v10  ;;  %1670 = vperm.xlu1 %3389, %v3440_v24  }
 0x183   : > { %v8290_v48 = vsel %vm4697_vm3, 4294967295, %v8289_v48  ;;  %vm1479_vm15 = vmor %vm8292_vm11, %vm8291_vm12  ;;  %v2209_v61 = vpack.c.bf16 %v2956_v31, %v2952_v22  ;;  %vm8294_vm12 = vcmp.eq.s32.totalorder %v3971_v15, %v3708_v53  ;;  %vm8295_vm11 = vcmp.eq.s32.totalorder %v3971_v15, 500 }
 0x184   : > { %vm1831_vm9 = vmor %vm1479_vm15, %vm8293_vm8  ;;  %vm8298_vm15 = vcmp.eq.s32.totalorder %v3963_v30, %v4498_v50  ;;  %v4834_v41 = vpop.permute.xlu1 %1616 }
 0x185   : > { %vm4725_vm6 = vmor %vm8295_vm11, %vm8294_vm12  ;;  %vm1714_vm12 = vcmp.eq.s32.totalorder %v3976_v14, %v4485_v12  ;;  %vm8302_vm11 = vcmp.eq.s32.totalorder %v3985_v46, %v3894_v9  ;;  %2566 = vmatmul.mubr.bf16.gmra.mrb[4].mxu0 %v2209_v61  ;;  %v2954_v9 = vsel %vm1831_vm9, 1.0, %v8263_v0 }
 0x186   : > { %v8297_v13 = vsel %vm4725_vm6, 4294967295, %v8296_v13  ;;  %vm4736_vm8 = vmor %vm4564_vm0, %vm8298_vm15  ;;  %vm8306_vm0 = vcmp.eq.s32.totalorder %v3971_v15, %v3882_v34  ;;  %vm8307_vm15 = vnez %v8249_v21  ;;  %3390 = vset.pattern.permute.xlu1 %v8123_v29 }
 0x187   : > { %v8300_v18 = vsel %vm4736_vm8, 4294967295, %v8299_v18  ;;  %vm1835_vm3 = vmor %vm8301_vm2, %vm1707_vm13  ;;  %vm8315_vm13 = vcmp.eq.s32.totalorder %v3976_v14, %v3965_v16 }
 0x188   : > { %vm4749_vm6 = vmor %vm8303_vm4, %vm8302_vm11  ;;  %v2958_v10 = vsel %vm1835_vm3, 1.0, %v8263_v0  ;;  %vm8310_vm4 = vcmp.eq.s32.totalorder %v3976_v14, %v4252_v49  ;;  %vm1712_vm3 = vcmp.eq.s32.totalorder %v3971_v15, %v4350_v42  ;;  %v4928_v38 = vpop.permute.xlu1 %1619 }
 0x189   : > { %vm4758_vm8 = vmor %vm8307_vm15, %vm8306_vm0  ;;  %v2211_v21 = vpack.c.bf16 %v2958_v10, %v2954_v9  ;;  %vm8311_vm15 = vcmp.eq.s32.totalorder %v3976_v14, %v4350_v42  ;;  %vm8312_vm0 = vcmp.eq.s32.totalorder %v3985_v46, %v4498_v50  ;;  %v8346_v9 = vmov 0 }
 0x18a   : > { %vm1486_vm2 = vmor %vm4589_vm5, %vm8310_vm4  ;;  %vm314_vm4 = vcmp.eq.s32.totalorder %v3976_v14, %v3708_v53 }
 0x18b   : > { %vm1838_vm9 = vmor %vm1486_vm2, %vm8311_vm15  ;;  %vm1716_vm15 = vcmp.eq.s32.totalorder %v3971_v15, %v4485_v12  ;;  %2727 = vmatmul.mubr.bf16.gmra.mrb[4].mxu1 %v2211_v21 }
 0x18c   : > { %vm4791_vm11 = vmor %vm4618_vm1, %vm8312_vm0  ;;  %v2961_v26 = vsel %vm1838_vm9, 1.0, %v8263_v0  ;;  %vm8318_vm1 = vcmp.eq.s32.totalorder %v3971_v15, %v4252_v49  ;;  %vm8320_vm0 = vnez %v8281_v23 }
 0x18d   : > { %vm1842_vm2 = vmor %vm4629_vm7, %vm1714_vm12  ;;  %vm1357_vm12 = vcmp.eq.s32.totalorder %v3963_v30, %v4252_v49 }
 0x18e   : > { %vm4806_vm5 = vmor %vm314_vm4, %vm8315_vm13  ;;  %v2965_v51 = vsel %vm1842_vm2, 1.0, %v8263_v0  ;;  %vm8319_vm13 = vcmp.eq.s32.totalorder %v3976_v14, %v3902_v57  ;;  %vm8323_vm2 = vcmp.eq.s32.totalorder %v3963_v30, %v3882_v34 }
 0x18f   : > { %vm1488_vm7 = vmor %vm4643_vm10, %vm8318_vm1  ;;  %v2214_v52 = vpack.c.bf16 %v2965_v51, %v2961_v26  ;;  %vm8324_vm1 = vcmp.eq.s32.totalorder %v3963_v30, %v3711_v54 }
 0x190   : > { %vm4825_vm4 = vmor %vm8320_vm0, %vm8319_vm13 }
 0x191   : > { %vm1840_vm9 = vmor %vm1488_vm7, %vm1712_vm3  ;;  %vm1713_vm7 = vcmp.eq.s32.totalorder %v3963_v30, %v4485_v12  ;;  %2573 = vmatprep.mubr.bf16.mxu0 %v2214_v52 }
 0x192   : > { %vm4842_vm13 = vmor %vm8324_vm1, %vm8323_vm2  ;;  %v2963_v1 = vsel %vm1840_vm9, 1.0, %v8263_v0  ;;  %vm8327_vm2 = vnez %v8290_v48  ;;  %vm8328_vm9 = vcmp.eq.s32.totalorder %v3963_v30, %v4350_v42  ;;  %v4890_v48 = vld [vmem:[%s3492_s15 + $0xd0] sm:$0xff] }
 0x193   : > { %vm1844_vm3 = vmor %vm4684_vm14, %vm1716_vm15  ;;  %vm8333_vm15 = vnez %v8300_v18  ;;  %620 = vperm.xlu1 %3390, %v4890_v48   ;;  %v4923_v18 = vpop.permute.xlu0 %1267 }
 0x194   : > { %v2967_v23 = vsel %vm1844_vm3, 1.0, %v8263_v0  ;;  %vm1485_vm1 = vmor %vm8327_vm2, %vm1357_vm12  ;;  %vm8329_vm12 = vcmp.eq.s32.totalorder %v3971_v15, %v3965_v16  ;;  %vm8330_vm2 = vnez %v8297_v13 }
 0x195   : > { %v2216_v36 = vpack.c.bf16 %v2967_v23, %v2963_v1  ;;  %vm1837_vm3 = vmor %vm1485_vm1, %vm8328_vm9  ;;  %vm1715_vm1 = vcmp.eq.s32.totalorder %v3985_v46, %v4485_v12  ;;  %vm8334_vm9 = vcmp.eq.s32.totalorder %v3971_v15, %v3902_v57  ;;  %v8344_v12 = vmov 0  ;;  %v3444_v23 = vld [vmem:[%s3492_s15 + $0xe0] sm:$0xff] }
 0x196   : > { %vm4881_vm14 = vmor %vm8330_vm2, %vm8329_vm12  ;;  %vm1018_vm12 = vcmp.eq.s32.totalorder %v3976_v14, %v4611_v20  ;;  %v2960_v31 = vsel %vm1837_vm3, 1.0, %v8263_v0  ;;  %vm8339_vm2 = vcmp.eq.s32.totalorder %v3985_v46, %v3711_v54 }
 0x197   : > { %vm1841_vm10 = vmor %vm8333_vm15, %vm1713_vm7  ;;  %2734 = vmatprep.mubr.bf16.mxu1 %v2216_v36  ;;  %vm8337_vm7 = vcmp.eq.s32.totalorder %v3985_v46, %v4252_v49 }
 0x198   : > { %vm4898_vm0 = vmor %vm4758_vm8, %vm8334_vm9  ;;  %v2964_v61 = vsel %vm1841_vm10, 1.0, %v8263_v0  ;;  %vm8338_vm8 = vcmp.eq.s32.totalorder %v3985_v46, %v3882_v34 }
 0x199   : > { %vm1487_vm15 = vmor %vm4749_vm6, %vm8337_vm7  ;;  %v2213_v49 = vpack.c.bf16 %v2964_v61, %v2960_v31  ;;  %vm8342_vm6 = vcmp.eq.s32.totalorder %v3985_v46, %v4350_v42  ;;  %vm1366_vm7 = vcmp.eq.s32.totalorder %v3976_v14, %v4718_v19  ;;  %v4953_v42 = vld [vmem:[%s3492_s15 + $0xd8] sm:$0xff]  ;;  %v8363_v31 = vmov 0  ;;  %v5124_v61 = vpop.permute.xlu0 %1273 }
 0x19a   : > { %vm4917_vm9 = vmor %vm8339_vm2, %vm8338_vm8  ;;  %vm1013_vm8 = vcmp.eq.s32.totalorder %v3963_v30, %v3902_v57  ;;  %vm1718_vm2 = vcmp.eq.s32.totalorder %v3976_v14, %v4834_v41  ;;  %623 = vperm.xlu1 %3390, %v4953_v42  }
 0x19b   : > { %vm1839_vm3 = vmor %vm1487_vm15, %vm8342_vm6  ;;  %vm313_vm15 = vcmp.eq.s32.totalorder %v3963_v30, %v3708_v53  ;;  %2574 = vmatmul.mubr.bf16.gmra.mrb[8].mxu0 %v2213_v49  ;;  %v8371_v49 = vmov 0 }
 0x19c   : > { %vm1843_vm10 = vmor %vm4791_vm11, %vm1715_vm1  ;;  %v2962_v34 = vsel %vm1839_vm3, 1.0, %v8263_v0  ;;  %vm8343_vm11 = vcmp.eq.s32.totalorder %v3963_v30, %v3965_v16  ;;  %vm1020_vm3 = vcmp.eq.s32.totalorder %v3971_v15, %v4611_v20 }
 0x19d   : > { %v2966_v54 = vsel %vm1843_vm10, 1.0, %v8263_v0  ;;  %vm1146_vm6 = vmor %vm4806_vm5, %vm1018_vm12  ;;  %vm1722_vm5 = vcmp.eq.s32.totalorder %v3976_v14, %v4928_v38 }
 0x19e   : > { %vm4959_vm1 = vmor %vm313_vm15, %vm8343_vm11  ;;  %v2215_v63 = vpack.c.bf16 %v2966_v54, %v2962_v34  ;;  %vm8348_vm15 = vcmp.eq.s32.totalorder %v3976_v14, %v4923_v18  ;;  %3391 = vset.pattern.permute.xlu1 %v8120_v58 }
 0x19f   : > { %v8345_v12 = vsel %vm4959_vm1, 4294967295, %v8344_v12  ;;  %vm1494_vm10 = vmor %vm4825_vm4, %vm1366_vm7  ;;  %vm667_vm4 = vcmp.eq.s32.totalorder %v3985_v46, %v3965_v16  ;;  %vm1368_vm1 = vcmp.eq.s32.totalorder %v3971_v15, %v4718_v19  ;;  %975 = vperm.xlu1 %3391, %v4953_v42  }
 0x1a0   : > { %vm4972_vm12 = vmor %vm4842_vm13, %vm1013_vm8  ;;  %2735 = vmatmul.mubr.bf16.gmra.mrb[8].mxu1 %v2215_v63  ;;  %vm1015_vm13 = vcmp.eq.s32.totalorder %v3985_v46, %v3902_v57  ;;  %vm1372_vm8 = vcmp.eq.s32.totalorder %v3971_v15, %v4923_v18 }
 0x1a1   : > { %v8347_v9 = vsel %vm4972_vm12, 4294967295, %v8346_v9  ;;  %vm1498_vm11 = vmor %vm1146_vm6, %vm8348_vm15  ;;  %vm315_vm6 = vcmp.eq.s32.totalorder %v3985_v46, %v3708_v53 }
 0x1a2   : > { %vm1846_vm7 = vmor %vm1494_vm10, %vm1718_vm2  ;;  %vm1720_vm10 = vcmp.eq.s32.totalorder %v3971_v15, %v4834_v41 }
 0x1a3   : > { %vm1850_vm12 = vmor %vm1498_vm11, %vm1722_vm5  ;;  %v2969_v10 = vsel %vm1846_vm7, 1.0, %v8263_v0  ;;  %vm1724_vm11 = vcmp.eq.s32.totalorder %v3971_v15, %v4928_v38  ;;  %3392 = vset.pattern.permute.xlu1 %v8118_v27 }
 0x1a4   : > { %v2973_v16 = vsel %vm1850_vm12, 1.0, %v8263_v0  ;;  %vm1148_vm2 = vmor %vm4881_vm14, %vm1020_vm3  ;;  %vm1017_vm14 = vcmp.eq.s32.totalorder %v3963_v30, %v4611_v20  ;;  %1324 = vperm.xlu1 %3392, %v4890_v48  }
 0x1a5   : > { %vm4999_vm15 = vmor %vm315_vm6, %vm667_vm4  ;;  %v2218_v21 = vpack.c.bf16 %v2973_v16, %v2969_v10  ;;  %vm8354_vm6 = vnez %v8347_v9 }
 0x1a6   : > { %vm1496_vm5 = vmor %vm4898_vm0, %vm1368_vm1  ;;  %vm1365_vm0 = vcmp.eq.s32.totalorder %v3963_v30, %v4718_v19  ;;  %vm1369_vm1 = vcmp.eq.s32.totalorder %v3963_v30, %v4923_v18 }
 0x1a7   : > { %vm5009_vm12 = vmor %vm4917_vm9, %vm1015_vm13  ;;  %2581 = vmatprep.mubr.bf16.mxu0 %v2218_v21  ;;  %vm8353_vm9 = vnez %v8345_v12  ;;  %v3446_v21 = vld [vmem:[%s3492_s15 + $0xf8] sm:$0xff] }
 0x1a8   : > { %vm1500_vm3 = vmor %vm1148_vm2, %vm1372_vm8  ;;  %vm1717_vm8 = vcmp.eq.s32.totalorder %v3963_v30, %v4834_v41  ;;  %3394 = vset.pattern.permute.xlu1 %v8119_v8 }
 0x1a9   : > { %vm1848_vm4 = vmor %vm1496_vm5, %vm1720_vm10  ;;  %vm1721_vm10 = vcmp.eq.s32.totalorder %v3963_v30, %v4928_v38  ;;  %vm1019_vm5 = vcmp.eq.s32.totalorder %v3985_v46, %v4611_v20  ;;  %1676 = vperm.xlu1 %3394, %v4890_v48  }
 0x1aa   : > { %vm1852_vm7 = vmor %vm1500_vm3, %vm1724_vm11  ;;  %v2971_v39 = vsel %vm1848_vm4, 1.0, %v8263_v0  ;;  %vm1371_vm4 = vcmp.eq.s32.totalorder %v3985_v46, %v4923_v18 }
 0x1ab   : > { %v2975_v50 = vsel %vm1852_vm7, 1.0, %v8263_v0  ;;  %vm1145_vm13 = vmor %vm8353_vm9, %vm1017_vm14  ;;  %vm1367_vm14 = vcmp.eq.s32.totalorder %v3985_v46, %v4718_v19  ;;  %v5053_v19 = vpop.permute.xlu1 %921 }
 0x1ac   : > { %v2220_v26 = vpack.c.bf16 %v2975_v50, %v2971_v39  ;;  %vm1493_vm2 = vmor %vm8354_vm6, %vm1365_vm0 }
 0x1ad   : > { %vm1497_vm11 = vmor %vm1145_vm13, %vm1369_vm1  ;;  %vm1719_vm1 = vcmp.eq.s32.totalorder %v3985_v46, %v4834_v41  ;;  %vm1723_vm13 = vcmp.eq.s32.totalorder %v3985_v46, %v4928_v38  ;;  %1679 = vperm.xlu1 %3394, %v4953_v42   ;;  %v3445_v42 = vld [vmem:[%s3492_s15 + $0xf0] sm:$0xff] }
 0x1ae   : > { %2742 = vmatprep.mubr.bf16.mxu1 %v2220_v26  ;;  %vm1845_vm3 = vmor %vm1493_vm2, %vm1717_vm8 }
 0x1af   : > { %vm1849_vm7 = vmor %vm1497_vm11, %vm1721_vm10  ;;  %v2968_v51 = vsel %vm1845_vm3, 1.0, %v8263_v0  ;;  %v5059_v1 = vpop.permute.xlu1 %1270  ;;  %vm317_vm10 = vcmp.eq.s32.totalorder %v3963_v30, %v3730_v60  ;;  %vm318_vm11 = vcmp.eq.s32.totalorder %v3976_v14, %v3730_v60  ;;  %vm670_vm3 = vcmp.eq.s32.totalorder %v3976_v14, %v3890_v37 }
 0x1b0   : > { %v2972_v24 = vsel %vm1849_vm7, 1.0, %v8263_v0  ;;  %vm1147_vm0 = vmor %vm4999_vm15, %vm1019_vm5  ;;  %vm324_vm15 = vcmp.eq.s32.totalorder %v3971_v15, %v3727_v59  ;;  %vm669_vm5 = vcmp.eq.s32.totalorder %v3963_v30, %v3890_v37  ;;  %vm672_vm7 = vcmp.eq.s32.totalorder %v3971_v15, %v3890_v37 }
 0x1b1   : > { %v2217_v20 = vpack.c.bf16 %v2972_v24, %v2968_v51  ;;  %vm1495_vm9 = vmor %vm5009_vm12, %vm1367_vm14  ;;  %3395 = vset.pattern.permute.xlu1 %v8123_v29  ;;  %vm320_vm12 = vcmp.eq.s32.totalorder %v3971_v15, %v3730_v60  ;;  %vm8355_vm14 = vcmp.eq.s32.totalorder %v3971_v15, 500  ;;  %v8388_v24 = vmov 0 }
 0x1b2   : > { %vm1499_vm8 = vmor %vm1147_vm0, %vm1371_vm4  ;;  %629 = vperm.xlu1 %3395, %v3443_v28  }
 0x1b3   : > { %2582 = vmatmul.mubr.bf16.gmra.mrb[12].mxu0 %v2217_v20  ;;  %vm1847_vm6 = vmor %vm1495_vm9, %vm1719_vm1  ;;  %v5081_v32 = vpop.permute.xlu1 %1622  ;;  %v8390_v20 = vmov 0 }
 0x1b4   : > { %vm1851_vm2 = vmor %vm1499_vm8, %vm1723_vm13  ;;  %v2970_v47 = vsel %vm1847_vm6, 1.0, %v8263_v0  ;;  %vm1022_vm13 = vcmp.eq.s32.totalorder %v3976_v14, %v3910_v6  ;;  %vm1024_vm6 = vcmp.eq.s32.totalorder %v3971_v15, %v3910_v6 }
 0x1b5   : > { %v2974_v52 = vsel %vm1851_vm2, 1.0, %v8263_v0  ;;  %vm5077_vm4 = vmor %vm8355_vm14, %vm324_vm15  ;;  %vm319_vm2 = vcmp.eq.s32.totalorder %v3985_v46, %v3730_v60  ;;  %vm671_vm15 = vcmp.eq.s32.totalorder %v3985_v46, %v3890_v37  ;;  %v8365_v60 = vmov 0 }
 0x1b6   : > { %v2219_v41 = vpack.c.bf16 %v2974_v52, %v2970_v47  ;;  %3396 = vset.pattern.permute.xlu1 %v8120_v58  ;;  %vm8358_vm0 = vmmov %vm8355_vm14  ;;  %vm322_vm14 = vcmp.eq.s32.totalorder %v3976_v14, %v3727_v59  ;;  %v8398_v52 = vmov 0  ;;  %v8472_v47 = vld [vmem:[#allocation22_spill] sm:$0xff] }
 0x1b7   : > { %978 = vperm.xlu1 %3396, %v3444_v23   ;;  %vm448_vm1 = vmor %vm8358_vm0, %vm320_vm12  ;;  %v5116_v37 = vpop.permute.xlu1 %1625 }
 0x1b8   : > { %2743 = vmatmul.mubr.bf16.gmra.mrb[12].mxu1 %v2219_v41  ;;  %vm5088_vm9 = vmor %vm317_vm10, %vm669_vm5  ;;  %vm674_vm10 = vcmp.eq.s32.totalorder %v3976_v14, %v3978_v43  ;;  %v8401_v41 = vmov 0 }
 0x1b9   : > { %vm798_vm8 = vmor %vm318_vm11, %vm670_vm3  ;;  %vm676_vm11 = vcmp.eq.s32.totalorder %v3971_v15, %v3978_v43 }
 0x1ba   : > { %vm800_vm12 = vmor %vm448_vm1, %vm672_vm7  ;;  %vm1026_vm7 = vcmp.eq.s32.totalorder %v3976_v14, %v5053_v19  ;;  %vm673_vm1 = vcmp.eq.s32.totalorder %v3963_v30, %v3978_v43 }
 0x1bb   : > { %3398 = vset.pattern.permute.xlu1 %v8118_v27  ;;  %vm5102_vm5 = vmor %vm798_vm8, %vm1022_vm13  ;;  %vm1374_vm8 = vcmp.eq.s32.totalorder %v3976_v14, %v5059_v1  ;;  %v5161_v38 = vpop.permute.xlu1 %927 }
 0x1bc   : > { %1330 = vperm.xlu1 %3398, %v3444_v23   ;;  %vm5108_vm3 = vmor %vm800_vm12, %vm1024_vm6  ;;  %vm1021_vm6 = vcmp.eq.s32.totalorder %v3963_v30, %v3910_v6 }
 0x1bd   : > { %v8364_v31 = vsel %vm5108_vm3, 4294967295, %v8363_v31  ;;  %vm5118_vm0 = vmor %vm319_vm2, %vm671_vm15  ;;  %vm1378_vm2 = vcmp.eq.s32.totalorder %v3976_v14, %v5124_v61  ;;  %vm321_vm15 = vcmp.eq.s32.totalorder %v3963_v30, %v3727_v59 }
 0x1be   : > { %v8366_v60 = vsel %vm5118_vm0, 4294967295, %v8365_v60  ;;  %vm802_vm13 = vmor %vm322_vm14, %vm674_vm10  ;;  %vm1726_vm14 = vcmp.eq.s32.totalorder %v3976_v14, %v5081_v32 }
 0x1bf   : > { %vm5132_vm12 = vmor %vm5077_vm4, %vm676_vm11  ;;  %vm1730_vm4 = vcmp.eq.s32.totalorder %v3976_v14, %v5116_v37 }
 0x1c0   : > { %1333 = vperm.xlu1 %3398, %v3443_v28   ;;  %vm1154_vm10 = vmor %vm802_vm13, %vm1026_vm7  ;;  %vm1028_vm7 = vcmp.eq.s32.totalorder %v3971_v15, %v5053_v19  ;;  %vm675_vm13 = vcmp.eq.s32.totalorder %v3985_v46, %v3978_v43 }
 0x1c1   : > { %vm5142_vm0 = vmor %vm321_vm15, %vm673_vm1 }
 0x1c2   : > { %vm1502_vm11 = vmor %vm5102_vm5, %vm1374_vm8  ;;  %vm1376_vm5 = vcmp.eq.s32.totalorder %v3971_v15, %v5059_v1  ;;  %vm1380_vm8 = vcmp.eq.s32.totalorder %v3971_v15, %v5124_v61 }
 0x1c3   : > { %vm5153_vm3 = vmor %vm5088_vm9, %vm1021_vm6  ;;  %vm1023_vm9 = vcmp.eq.s32.totalorder %v3985_v46, %v3910_v6 }
 0x1c4   : > { %3400 = vset.pattern.permute.xlu1 %v8119_v8  ;;  %v8372_v49 = vsel %vm5153_vm3, 4294967295, %v8371_v49  ;;  %vm1506_vm1 = vmor %vm1154_vm10, %vm1378_vm2  ;;  %vm323_vm2 = vcmp.eq.s32.totalorder %v3985_v46, %v3727_v59  ;;  %v8416_v59 = vmov 0 }
 0x1c5   : > { %1685 = vperm.xlu1 %3400, %v3443_v28   ;;  %vm1854_vm15 = vmor %vm1502_vm11, %vm1726_vm14  ;;  %vm1728_vm14 = vcmp.eq.s32.totalorder %v3971_v15, %v5081_v32  ;;  %v8405_v28 = vmov 0 }
 0x1c6   : > { %vm1858_vm6 = vmor %vm1506_vm1, %vm1730_vm4  ;;  %v2977_v34 = vsel %vm1854_vm15, 1.0, %v8263_v0  ;;  %vm1732_vm4 = vcmp.eq.s32.totalorder %v3971_v15, %v5116_v37  ;;  %vm8375_vm1 = vnez %v8364_v31  ;;  %vm8376_vm15 = vnez %v8366_v60 }
 0x1c7   : > { %v2981_v43 = vsel %vm1858_vm6, 1.0, %v8263_v0  ;;  %vm1156_vm10 = vmor %vm5132_vm12, %vm1028_vm7  ;;  %vm1025_vm12 = vcmp.eq.s32.totalorder %v3963_v30, %v5053_v19 }
 0x1c8   : > { %vm5177_vm11 = vmor %vm323_vm2, %vm675_vm13  ;;  %v2222_v54 = vpack.c.bf16 %v2981_v43, %v2977_v34  ;;  %vm1373_vm2 = vcmp.eq.s32.totalorder %v3963_v30, %v5059_v1 }
 0x1c9   : > { %vm1504_vm3 = vmor %vm8375_vm1, %vm1376_vm5  ;;  %3401 = vset.pattern.permute.xlu1 %v8123_v29  ;;  %vm1377_vm5 = vcmp.eq.s32.totalorder %v3963_v30, %v5124_v61  ;;  %v5199_v29 = vpop.permute.xlu1 %1276 }
 0x1ca   : > { %vm5188_vm6 = vmor %vm8376_vm15, %vm1023_vm9  ;;  %632 = vperm.xlu1 %3401, %v3445_v42   ;;  %2589 = vmatprep.mubr.bf16.mxu0 %v2222_v54 }
 0x1cb   : > { %vm1508_vm7 = vmor %vm1156_vm10, %vm1380_vm8  ;;  %vm1725_vm8 = vcmp.eq.s32.totalorder %v3963_v30, %v5081_v32  ;;  %vm8379_vm10 = vnez %v8372_v49 }
 0x1cc   : > { %vm1856_vm13 = vmor %vm1504_vm3, %vm1728_vm14  ;;  %vm1729_vm3 = vcmp.eq.s32.totalorder %v3963_v30, %v5116_v37 }
 0x1cd   : > { %vm1860_vm1 = vmor %vm1508_vm7, %vm1732_vm4  ;;  %v2979_v12 = vsel %vm1856_vm13, 1.0, %v8263_v0  ;;  %vm1027_vm4 = vcmp.eq.s32.totalorder %v3985_v46, %v5053_v19  ;;  %vm1379_vm7 = vcmp.eq.s32.totalorder %v3985_v46, %v5124_v61 }
 0x1ce   : > { %v2983_v63 = vsel %vm1860_vm1, 1.0, %v8263_v0  ;;  %vm1153_vm9 = vmor %vm5142_vm0, %vm1025_vm12  ;;  %3402 = vset.pattern.permute.xlu1 %v8120_v58  ;;  %vm1375_vm12 = vcmp.eq.s32.totalorder %v3985_v46, %v5059_v1  ;;  %v5224_v58 = vpop.permute.xlu1 %1628  ;;  %vm1731_vm1 = vcmp.eq.s32.totalorder %v3985_v46, %v5116_v37 }
 0x1cf   : > { %v2224_v9 = vpack.c.bf16 %v2983_v63, %v2979_v12  ;;  %vm1501_vm14 = vmor %vm8379_vm10, %vm1373_vm2  ;;  %984 = vperm.xlu1 %3402, %v3445_v42   ;;  %v8424_v63 = vmov 0 }
 0x1d0   : > { %vm1505_vm15 = vmor %vm1153_vm9, %vm1377_vm5  ;;  %vm1727_vm5 = vcmp.eq.s32.totalorder %v3985_v46, %v5081_v32 }
 0x1d1   : > { %2750 = vmatprep.mubr.bf16.mxu1 %v2224_v9  ;;  %vm1853_vm0 = vmor %vm1501_vm14, %vm1725_vm8  ;;  %vm325_vm14 = vcmp.eq.s32.totalorder %v3963_v30, %v3749_v4  ;;  %v8427_v9 = vmov 0 }
 0x1d2   : > { %vm1857_vm13 = vmor %vm1505_vm15, %vm1729_vm3  ;;  %v2976_v10 = vsel %vm1853_vm0, 1.0, %v8263_v0  ;;  %v5234_v26 = vpop.permute.xlu1 %1631  ;;  %vm326_vm15 = vcmp.eq.s32.totalorder %v3976_v14, %v3749_v4  ;;  %vm678_vm0 = vcmp.eq.s32.totalorder %v3976_v14, %v3898_v35 }
 0x1d3   : > { %v2980_v16 = vsel %vm1857_vm13, 1.0, %v8263_v0  ;;  %vm1155_vm2 = vmor %vm5177_vm11, %vm1027_vm4  ;;  %987 = vperm.xlu1 %3402, %v3446_v21   ;;  %vm328_vm11 = vcmp.eq.s32.totalorder %v3971_v15, %v3749_v4  ;;  %vm677_vm4 = vcmp.eq.s32.totalorder %v3963_v30, %v3898_v35  ;;  %vm8380_vm13 = vcmp.eq.s32.totalorder %v3971_v15, 500 }
 0x1d4   : > { %v2221_v57 = vpack.c.bf16 %v2980_v16, %v2976_v10  ;;  %vm1503_vm9 = vmor %vm5188_vm6, %vm1375_vm12  ;;  %vm332_vm6 = vcmp.eq.s32.totalorder %v3971_v15, %v3745_v2  ;;  %vm327_vm12 = vcmp.eq.s32.totalorder %v3985_v46, %v3749_v4  ;;  %v8456_v4 = vmov 0  ;;  %v8516_v10 = vld [vmem:[#allocation20_spill] sm:$0xff] }
 0x1d5   : > { %vm1507_vm8 = vmor %vm1155_vm2, %vm1379_vm7  ;;  %vm679_vm7 = vcmp.eq.s32.totalorder %v3985_v46, %v3898_v35 }
 0x1d6   : > { %2590 = vmatmul.mubr.bf16.gmra.mrb[16].mxu0 %v2221_v57  ;;  %vm1855_vm3 = vmor %vm1503_vm9, %vm1727_vm5  ;;  %v5239_v51 = vpop.permute.xlu1 %933  ;;  %vm680_vm5 = vcmp.eq.s32.totalorder %v3971_v15, %v3898_v35  ;;  %v8438_v57 = vld [vmem:[#allocation19_spill] sm:$0xff] }
 0x1d7   : > { %vm1859_vm10 = vmor %vm1507_vm8, %vm1731_vm1  ;;  %v2978_v53 = vsel %vm1855_vm3, 1.0, %v8263_v0  ;;  %3404 = vset.pattern.permute.xlu1 %v8118_v27  ;;  %v8386_v27 = vmov 0 }
 0x1d8   : > { %v2982_v39 = vsel %vm1859_vm10, 1.0, %v8263_v0  ;;  %1339 = vperm.xlu1 %3404, %v3446_v21   ;;  %vm456_vm2 = vmor %vm8380_vm13, %vm328_vm11  ;;  %vm1029_vm10 = vcmp.eq.s32.totalorder %v3963_v30, %v3919_v11  ;;  %vm1030_vm11 = vcmp.eq.s32.totalorder %v3976_v14, %v3919_v11  ;;  %v8523_v21 = vmov 0 }
 0x1d9   : > { %v2223_v50 = vpack.c.bf16 %v2982_v39, %v2978_v53  ;;  %vm805_vm1 = vmor %vm325_vm14, %vm677_vm4  ;;  %vm1032_vm14 = vcmp.eq.s32.totalorder %v3971_v15, %v3919_v11  ;;  %vm681_vm4 = vcmp.eq.s32.totalorder %v3963_v30, %v4029_v40  ;;  %v8441_v53 = vmov 0 }
 0x1da   : > { %vm8381_vm9 = vmmov %vm8380_vm13  ;;  %v5275_v35 = vpop.permute.xlu1 %1282  ;;  %v8443_v39 = vmov 0 }
 0x1db   : > { %2751 = vmatmul.mubr.bf16.gmra.mrb[16].mxu1 %v2223_v50  ;;  %vm5261_vm8 = vmor %vm8381_vm9, %vm332_vm6  ;;  %v8620_v50 = vmov 0 }
 0x1dc   : > { %3405 = vset.pattern.permute.xlu1 %v8119_v8  ;;  %vm806_vm3 = vmor %vm326_vm15, %vm678_vm0  ;;  %vm1031_vm15 = vcmp.eq.s32.totalorder %v3985_v46, %v3919_v11  ;;  %v8392_v11 = vmov 0  ;;  %v8452_v8 = vmov 0 }
 0x1dd   : > { %1688 = vperm.xlu1 %3405, %v3445_v42   ;;  %vm5269_vm13 = vmor %vm327_vm12, %vm679_vm7  ;;  %vm682_vm7 = vcmp.eq.s32.totalorder %v3976_v14, %v4029_v40 }
 0x1de   : > { %vm808_vm6 = vmor %vm456_vm2, %vm680_vm5  ;;  %vm329_vm2 = vcmp.eq.s32.totalorder %v3963_v30, %v3745_v2  ;;  %vm683_vm5 = vcmp.eq.s32.totalorder %v3985_v46, %v4029_v40  ;;  %v5315_v19 = vpop.permute.xlu1 %1634 }
 0x1df   : > { %vm5281_vm0 = vmor %vm805_vm1, %vm1029_vm10  ;;  %vm330_vm1 = vcmp.eq.s32.totalorder %v3976_v14, %v3745_v2 }
 0x1e0   : > { %v8387_v27 = vsel %vm5281_vm0, 4294967295, %v8386_v27  ;;  %vm5285_vm12 = vmor %vm806_vm3, %vm1030_vm11  ;;  %vm684_vm3 = vcmp.eq.s32.totalorder %v3971_v15, %v4029_v40  ;;  %vm1034_vm0 = vcmp.eq.s32.totalorder %v3976_v14, %v5161_v38  ;;  %v1280_v40 = vpop.permute.xlu0 %1279 }
 0x1e1   : > { %v8389_v24 = vsel %vm5285_vm12, 4294967295, %v8388_v24  ;;  %vm5291_vm9 = vmor %vm808_vm6, %vm1032_vm14  ;;  %vm331_vm14 = vcmp.eq.s32.totalorder %v3985_v46, %v3745_v2  ;;  %v8394_v2 = vmov 0 }
 0x1e2   : > { %v8391_v20 = vsel %vm5291_vm9, 4294967295, %v8390_v20  ;;  %vm809_vm10 = vmor %vm329_vm2, %vm681_vm4  ;;  %vm1033_vm9 = vcmp.eq.s32.totalorder %v3963_v30, %v5161_v38  ;;  %v5362_v1 = vpop.permute.xlu1 %1637 }
 0x1e3   : > { %vm5305_vm11 = vmor %vm5269_vm13, %vm1031_vm15  ;;  %vm1036_vm13 = vcmp.eq.s32.totalorder %v3971_v15, %v5161_v38  ;;  %vm1035_vm15 = vcmp.eq.s32.totalorder %v3985_v46, %v5161_v38 }
 0x1e4   : > { %v8393_v11 = vsel %vm5305_vm11, 4294967295, %v8392_v11  ;;  %vm810_vm6 = vmor %vm330_vm1, %vm682_vm7  ;;  %vm1381_vm7 = vcmp.eq.s32.totalorder %v3963_v30, %v5199_v29  ;;  %v5380_v48 = vpop.permute.xlu0 %1285 }
 0x1e5   : > { %vm811_vm12 = vmor %vm331_vm14, %vm683_vm5  ;;  %vm1382_vm5 = vcmp.eq.s32.totalorder %v3976_v14, %v5199_v29 }
 0x1e6   : > { %vm812_vm4 = vmor %vm5261_vm8, %vm684_vm3  ;;  %vm1384_vm8 = vcmp.eq.s32.totalorder %v3971_v15, %v5199_v29  ;;  %vm1386_vm3 = vcmp.eq.s32.totalorder %v3976_v14, %v1280_v40  ;;  %v5388_v31 = vpop.permute.xlu1 %939 }
 0x1e7   : > { %vm5323_vm2 = vmor %vm809_vm10, %vm1033_vm9  ;;  %vm1383_vm10 = vcmp.eq.s32.totalorder %v3985_v46, %v5199_v29  ;;  %v8506_v29 = vmov 0 }
 0x1e8   : > { %v8395_v2 = vsel %vm5323_vm2, 4294967295, %v8394_v2  ;;  %vm1162_vm1 = vmor %vm810_vm6, %vm1034_vm0  ;;  %vm8400_vm2 = vnez %v8387_v27  ;;  %vm8403_vm0 = vnez %v8389_v24  ;;  %v5409_v49 = vpop.permute.xlu0 %1291 }
 0x1e9   : > { %vm5334_vm14 = vmor %vm812_vm4, %vm1036_vm13  ;;  %vm1734_vm4 = vcmp.eq.s32.totalorder %v3976_v14, %v5224_v58 }
 0x1ea   : > { %vm5338_vm9 = vmor %vm811_vm12, %vm1035_vm15  ;;  %vm8404_vm12 = vnez %v8391_v20  ;;  %vm1738_vm15 = vcmp.eq.s32.totalorder %v3976_v14, %v5234_v26  ;;  %v5419_v34 = vpop.permute.xlu1 %1288  ;;  %v8467_v20 = vld [vmem:[#allocation2_spill] sm:$0xff] }
 0x1eb   : > { %v8399_v52 = vsel %vm5338_vm9, 4294967295, %v8398_v52  ;;  %vm5346_vm11 = vmor %vm8400_vm2, %vm1381_vm7  ;;  %vm1388_vm2 = vcmp.eq.s32.totalorder %v3971_v15, %v1280_v40  ;;  %vm8407_vm9 = vnez %v8393_v11 }
 0x1ec   : > { %v8402_v41 = vsel %vm5346_vm11, 4294967295, %v8401_v41  ;;  %vm1510_vm6 = vmor %vm8403_vm0, %vm1382_vm5 }
 0x1ed   : > { %vm5356_vm13 = vmor %vm8404_vm12, %vm1384_vm8  ;;  %vm1736_vm8 = vcmp.eq.s32.totalorder %v3971_v15, %v5224_v58  ;;  %vm1740_vm12 = vcmp.eq.s32.totalorder %v3971_v15, %v5234_v26 }
 0x1ee   : > { %v8406_v28 = vsel %vm5356_vm13, 4294967295, %v8405_v28  ;;  %vm1514_vm7 = vmor %vm1162_vm1, %vm1386_vm3  ;;  %vm1385_vm13 = vcmp.eq.s32.totalorder %v3963_v30, %v1280_v40  ;;  %vm1733_vm3 = vcmp.eq.s32.totalorder %v3963_v30, %v5224_v58  ;;  %v5463_v42 = vpop.permute.xlu1 %1640 }
 0x1ef   : > { %vm5367_vm5 = vmor %vm8407_vm9, %vm1383_vm10  ;;  %vm8410_vm9 = vnez %v8406_v28  ;;  %v8559_v28 = vmov 0 }
 0x1f0   : > { %vm1862_vm0 = vmor %vm1510_vm6, %vm1734_vm4  ;;  %vm1737_vm6 = vcmp.eq.s32.totalorder %v3963_v30, %v5234_v26 }
 0x1f1   : > { %vm1866_vm11 = vmor %vm1514_vm7, %vm1738_vm15  ;;  %v2985_v36 = vsel %vm1862_vm0, 1.0, %v8263_v0  ;;  %vm8412_vm7 = vnez %v8402_v41  ;;  %vm1739_vm0 = vcmp.eq.s32.totalorder %v3985_v46, %v5234_v26 }
 0x1f2   : > { %v2989_v32 = vsel %vm1866_vm11, 1.0, %v8263_v0  ;;  %vm1516_vm1 = vmor %vm5334_vm14, %vm1388_vm2  ;;  %vm1387_vm11 = vcmp.eq.s32.totalorder %v3985_v46, %v1280_v40  ;;  %vm8411_vm14 = vnez %v8395_v2  ;;  %vm1735_vm2 = vcmp.eq.s32.totalorder %v3985_v46, %v5224_v58 }
 0x1f3   : > { %v2226_v22 = vpack.c.bf16 %v2989_v32, %v2985_v36  ;;  %vm1864_vm10 = vmor %vm8410_vm9, %vm1736_vm8  ;;  %v8609_v58 = vmov 0 }
 0x1f4   : > { %vm1868_vm4 = vmor %vm1516_vm1, %vm1740_vm12  ;;  %v2987_v37 = vsel %vm1864_vm10, 1.0, %v8263_v0  ;;  %vm8413_vm1 = vnez %v8399_v52  ;;  %vm340_vm10 = vcmp.eq.s32.totalorder %v3971_v15, %v3763_v44 }
 0x1f5   : > { %2597 = vmatprep.mubr.bf16.mxu0 %v2226_v22  ;;  %v2991_v60 = vsel %vm1868_vm4, 1.0, %v8263_v0  ;;  %vm1513_vm15 = vmor %vm8411_vm14, %vm1385_vm13  ;;  %vm336_vm13 = vcmp.eq.s32.totalorder %v3971_v15, %v3767_v45  ;;  %vm685_vm4 = vcmp.eq.s32.totalorder %v3963_v30, %v3905_v5 }
 0x1f6   : > { %v2228_v61 = vpack.c.bf16 %v2991_v60, %v2987_v37  ;;  %vm1861_vm8 = vmor %vm8412_vm7, %vm1733_vm3  ;;  %vm8414_vm7 = vcmp.eq.s32.totalorder %v3971_v15, 500 }
 0x1f7   : > { %vm1865_vm12 = vmor %vm1513_vm15, %vm1737_vm6  ;;  %v2984_v13 = vsel %vm1861_vm8, 1.0, %v8263_v0  ;;  %vm333_vm6 = vcmp.eq.s32.totalorder %v3963_v30, %v3767_v45  ;;  %vm686_vm15 = vcmp.eq.s32.totalorder %v3976_v14, %v3905_v5 }
 0x1f8   : > { %2758 = vmatprep.mubr.bf16.mxu1 %v2228_v61  ;;  %v2988_v18 = vsel %vm1865_vm12, 1.0, %v8263_v0  ;;  %vm1515_vm9 = vmor %vm8413_vm1, %vm1387_vm11  ;;  %vm334_vm11 = vcmp.eq.s32.totalorder %v3976_v14, %v3767_v45 }
 0x1f9   : > { %v2225_v38 = vpack.c.bf16 %v2988_v18, %v2984_v13  ;;  %vm1863_vm3 = vmor %vm5367_vm5, %vm1735_vm2  ;;  %vm335_vm5 = vcmp.eq.s32.totalorder %v3985_v46, %v3767_v45  ;;  %vm687_vm2 = vcmp.eq.s32.totalorder %v3985_v46, %v3905_v5  ;;  %v8489_v18 = vld [vmem:[#allocation4_spill] sm:$0xff] }
 0x1fa   : > { %vm1867_vm14 = vmor %vm1515_vm9, %vm1739_vm0  ;;  %v2986_v43 = vsel %vm1863_vm3, 1.0, %v8263_v0  ;;  %vm688_vm0 = vcmp.eq.s32.totalorder %v3971_v15, %v3905_v5  ;;  %v5459_v5 = vpop.permute.xlu0 %1297 }
 0x1fb   : > { %2598 = vmatmul.mubr.bf16.gmra.mrb[20].mxu0 %v2225_v38  ;;  %v2990_v6 = vsel %vm1867_vm14, 1.0, %v8263_v0  ;;  %vm464_vm8 = vmor %vm8414_vm7, %vm336_vm13  ;;  %vm1037_vm14 = vcmp.eq.s32.totalorder %v3963_v30, %v3927_v25  ;;  %vm1038_vm13 = vcmp.eq.s32.totalorder %v3976_v14, %v3927_v25  ;;  %v8580_v38 = vld [vmem:[#allocation6_spill] sm:$0xff] }
 0x1fc   : > { %v2227_v54 = vpack.c.bf16 %v2990_v6, %v2986_v43  ;;  %vm813_vm12 = vmor %vm333_vm6, %vm685_vm4  ;;  %vm344_vm6 = vcmp.eq.s32.totalorder %v3971_v15, %v3785_v55 }
 0x1fd   : > { %vm8415_vm1 = vmmov %vm8414_vm7  ;;  %vm1039_vm7 = vcmp.eq.s32.totalorder %v3985_v46, %v3927_v25 }
 0x1fe   : > { %vm5443_vm9 = vmor %vm8415_vm1, %vm340_vm10  ;;  %2759 = vmatmul.mubr.bf16.gmra.mrb[20].mxu1 %v2227_v54  ;;  %vm1040_vm10 = vcmp.eq.s32.totalorder %v3971_v15, %v3927_v25  ;;  %v8429_v25 = vmov 0  ;;  %v5509_v16 = vpop.permute.xlu0 %1303 }
 0x1ff   : > { %v8417_v59 = vsel %vm5443_vm9, 4294967295, %v8416_v59  ;;  %vm814_vm3 = vmor %vm334_vm11, %vm686_vm15  ;;  %vm689_vm15 = vcmp.eq.s32.totalorder %v3963_v30, %v4073_v62 }
 0x200   : > { %vm5453_vm4 = vmor %vm335_vm5, %vm687_vm2  ;;  %vm690_vm2 = vcmp.eq.s32.totalorder %v3976_v14, %v4073_v62 }
 0x201   : > { %vm816_vm11 = vmor %vm464_vm8, %vm688_vm0  ;;  %vm8426_vm0 = vcmp.eq.s32.totalorder %v3971_v15, 500 }
 0x202   : > { %vm5467_vm1 = vmor %vm813_vm12, %vm1037_vm14  ;;  %vm337_vm12 = vcmp.eq.s32.totalorder %v3963_v30, %v3763_v44  ;;  %vm338_vm14 = vcmp.eq.s32.totalorder %v3976_v14, %v3763_v44  ;;  %v5573_v26 = vpop.permute.xlu0 %1309 }
 0x203   : > { %vm5471_vm5 = vmor %vm814_vm3, %vm1038_vm13  ;;  %vm691_vm3 = vcmp.eq.s32.totalorder %v3985_v46, %v4073_v62  ;;  %vm692_vm13 = vcmp.eq.s32.totalorder %v3971_v15, %v4073_v62  ;;  %v8434_v62 = vmov 0 }
 0x204   : > { %vm5477_vm8 = vmor %vm816_vm11, %vm1040_vm10 }
 0x205   : > { %v8425_v63 = vsel %vm5477_vm8, 4294967295, %v8424_v63  ;;  %vm5483_vm9 = vmor %vm8426_vm0, %vm344_vm6  ;;  %vm339_vm6 = vcmp.eq.s32.totalorder %v3985_v46, %v3763_v44  ;;  %v5517_v44 = vpop.permute.xlu1 %1643 }
 0x206   : > { %v8428_v9 = vsel %vm5483_vm9, 4294967295, %v8427_v9  ;;  %vm817_vm10 = vmor %vm337_vm12, %vm689_vm15  ;;  %vm1041_vm9 = vcmp.eq.s32.totalorder %v3963_v30, %v5239_v51  ;;  %vm1042_vm15 = vcmp.eq.s32.totalorder %v3976_v14, %v5239_v51  ;;  %vm1044_vm12 = vcmp.eq.s32.totalorder %v3971_v15, %v5239_v51  ;;  %v5671_v41 = vpop.permute.xlu0 %1315 }
 0x207   : > { %vm5497_vm11 = vmor %vm5453_vm4, %vm1039_vm7  ;;  %vm8433_vm4 = vnez %v8417_v59 }
 0x208   : > { %v8430_v25 = vsel %vm5497_vm11, 4294967295, %v8429_v25  ;;  %vm818_vm0 = vmor %vm338_vm14, %vm690_vm2  ;;  %vm1043_vm2 = vcmp.eq.s32.totalorder %v3985_v46, %v5239_v51  ;;  %vm1389_vm14 = vcmp.eq.s32.totalorder %v3963_v30, %v5275_v35  ;;  %vm1392_vm11 = vcmp.eq.s32.totalorder %v3971_v15, %v5275_v35 }
 0x209   : > { %vm5505_vm8 = vmor %vm339_vm6, %vm691_vm3  ;;  %vm1390_vm6 = vcmp.eq.s32.totalorder %v3976_v14, %v5275_v35  ;;  %v8449_v51 = vmov 0  ;;  %v5614_v27 = vpop.permute.xlu1 %945 }
 0x20a   : > { %vm820_vm7 = vmor %vm8433_vm4, %vm692_vm13 }
 0x20b   : > { %vm5521_vm3 = vmor %vm817_vm10, %vm1041_vm9  ;;  %vm693_vm10 = vcmp.eq.s32.totalorder %v3963_v30, %v8438_v57 }
 0x20c   : > { %v8435_v62 = vsel %vm5521_vm3, 4294967295, %v8434_v62  ;;  %vm5531_vm4 = vmor %vm818_vm0, %vm1042_vm15 }
 0x20d   : > { %vm5545_vm13 = vmor %vm820_vm7, %vm1044_vm12  ;;  %v5696_v32 = vpop.permute.xlu1 %1294 }
 0x20e   : > { %vm5553_vm15 = vmor %vm5505_vm8, %vm1043_vm2  ;;  %vm1742_vm8 = vcmp.eq.s32.totalorder %v3976_v14, %v5315_v19  ;;  %vm8448_vm2 = vnez %v8425_v63  ;;  %v8671_v63 = vmov 0 }
 0x20f   : > { %v8442_v53 = vsel %vm5553_vm15, 4294967295, %v8441_v53  ;;  %vm5561_vm3 = vmor %vm5467_vm1, %vm1389_vm14  ;;  %vm1746_vm1 = vcmp.eq.s32.totalorder %v3976_v14, %v5362_v1  ;;  %vm343_vm14 = vcmp.eq.s32.totalorder %v3985_v46, %v3785_v55  ;;  %vm8464_vm15 = vnez %v8430_v25  ;;  %v8675_v25 = vld [vmem:[#allocation7_spill] sm:$0xff] }
 0x210   : > { %v8444_v39 = vsel %vm5561_vm3, 4294967295, %v8443_v39  ;;  %vm8445_vm7 = vmmov %vm5471_vm5  ;;  %vm8458_vm3 = vcmp.eq.s32.totalorder %v3976_v14, %v5380_v48 }
 0x211   : > { %vm5567_vm12 = vmor %vm8445_vm7, %vm1390_vm6  ;;  %vm695_vm6 = vcmp.eq.s32.totalorder %v3985_v46, %v8438_v57  ;;  %vm8451_vm7 = vcmp.eq.s32.totalorder %v3963_v30, %v3785_v55  ;;  %v5790_v59 = vpop.permute.xlu1 %1646 }
 0x212   : > { %vm5577_vm9 = vmor %vm8448_vm2, %vm1392_vm11  ;;  %vm8454_vm11 = vcmp.eq.s32.totalorder %v3976_v14, %v8438_v57  ;;  %vm8455_vm2 = vcmp.eq.s32.totalorder %v3976_v14, %v3785_v55  ;;  %v8461_v55 = vmov 0 }
 0x213   : > { %v8450_v51 = vsel %vm5577_vm9, 4294967295, %v8449_v51  ;;  %vm5593_vm0 = vmor %vm8451_vm7, %vm693_vm10  ;;  %vm8459_vm7 = vcmp.eq.s32.totalorder %v3971_v15, %v8438_v57  ;;  %v8521_v57 = vmov 0 }
 0x214   : > { %v8453_v8 = vsel %vm5593_vm0, 4294967295, %v8452_v8  ;;  %vm5603_vm5 = vmor %vm8455_vm2, %vm8454_vm11  ;;  %vm8460_vm0 = vnez %v8428_v9  ;;  %vm8463_vm2 = vcmp.eq.s32.totalorder %v3985_v46, %v5275_v35  ;;  %v8511_v9 = vmov 0 }
 0x215   : > { %v8457_v4 = vsel %vm5603_vm5, 4294967295, %v8456_v4  ;;  %vm1522_vm10 = vmor %vm5531_vm4, %vm8458_vm3  ;;  %vm1744_vm3 = vcmp.eq.s32.totalorder %v3971_v15, %v5315_v19 }
 0x216   : > { %vm5621_vm11 = vmor %vm8460_vm0, %vm8459_vm7  ;;  %vm348_vm0 = vcmp.eq.s32.totalorder %v3971_v15, %v8467_v20  ;;  %vm1748_vm7 = vcmp.eq.s32.totalorder %v3971_v15, %v5362_v1 }
 0x217   : > { %v8462_v55 = vsel %vm5621_vm11, 4294967295, %v8461_v55  ;;  %vm5630_vm5 = vmor %vm8464_vm15, %vm8463_vm2  ;;  %vm697_vm15 = vcmp.eq.s32.totalorder %v3963_v30, %v4113_v56 }
 0x218   : > { %vm1870_vm4 = vmor %vm5567_vm12, %vm1742_vm8  ;;  %vm8470_vm12 = vcmp.eq.s32.totalorder %v3971_v15, %v5380_v48 }
 0x219   : > { %vm1874_vm11 = vmor %vm1522_vm10, %vm1746_vm1  ;;  %v2993_v11 = vsel %vm1870_vm4, 1.0, %v8263_v0  ;;  %vm1741_vm1 = vcmp.eq.s32.totalorder %v3963_v30, %v5315_v19  ;;  %vm1045_vm10 = vcmp.eq.s32.totalorder %v3963_v30, %v8472_v47  ;;  %vm345_vm4 = vcmp.eq.s32.totalorder %v3963_v30, %v8467_v20 }
 0x21a   : > { %vm5642_vm9 = vmor %vm343_vm14, %vm695_vm6  ;;  %v2997_v2 = vsel %vm1874_vm11, 1.0, %v8263_v0  ;;  %vm8471_vm14 = vnez %v8450_v51  ;;  %vm8473_vm11 = vcmp.eq.s32.totalorder %v3971_v15, 500  ;;  %v8535_v51 = vmov 0 }
 0x21b   : > { %vm1524_vm8 = vmor %vm5545_vm13, %vm8470_vm12  ;;  %v2230_v40 = vpack.c.bf16 %v2997_v2, %v2993_v11  ;;  %vm1745_vm13 = vcmp.eq.s32.totalorder %v3963_v30, %v5362_v1  ;;  %vm1046_vm12 = vcmp.eq.s32.totalorder %v3976_v14, %v8472_v47 }
 0x21c   : > { %vm1872_vm6 = vmor %vm8471_vm14, %vm1744_vm3 }
 0x21d   : > { %vm5667_vm2 = vmor %vm8473_vm11, %vm348_vm0  ;;  %2605 = vmatprep.mubr.bf16.mxu0 %v2230_v40  ;;  %v2995_v23 = vsel %vm1872_vm6, 1.0, %v8263_v0  ;;  %vm8480_vm6 = vnez %v8444_v39  ;;  %vm1747_vm0 = vcmp.eq.s32.totalorder %v3985_v46, %v5362_v1  ;;  %v8529_v39 = vmov 0 }
 0x21e   : > { %vm1876_vm3 = vmor %vm1524_vm8, %vm1748_vm7  ;;  %vm8478_vm7 = vcmp.eq.s32.totalorder %v3963_v30, %v5380_v48  ;;  %vm8479_vm8 = vnez %v8435_v62 }
 0x21f   : > { %vm5683_vm14 = vmor %vm345_vm4, %vm697_vm15  ;;  %v2999_v36 = vsel %vm1876_vm3, 1.0, %v8263_v0  ;;  %vm8481_vm4 = vnez %v8453_v8  ;;  %v8539_v8 = vmov 0 }
 0x220   : > { %vm1521_vm11 = vmor %vm8479_vm8, %vm8478_vm7  ;;  %v2232_v22 = vpack.c.bf16 %v2999_v36, %v2995_v23  ;;  %vm8491_vm8 = vnez %v8462_v55  ;;  %v8564_v36 = vmov 0 }
 0x221   : > { %vm1869_vm3 = vmor %vm8480_vm6, %vm1741_vm1  ;;  %vm8484_vm1 = vnez %v8457_v4  ;;  %v8624_v4 = vmov 0 }
 0x222   : > { %vm1873_vm7 = vmor %vm1521_vm11, %vm1745_vm13  ;;  %2766 = vmatprep.mubr.bf16.mxu1 %v2232_v22  ;;  %v2992_v61 = vsel %vm1869_vm3, 1.0, %v8263_v0  ;;  %vm8488_vm11 = vnez %v8442_v53 }
 0x223   : > { %vm5719_vm15 = vmor %vm8481_vm4, %vm1045_vm10  ;;  %v2996_v13 = vsel %vm1873_vm7, 1.0, %v8263_v0  ;;  %vm8487_vm10 = vcmp.eq.s32.totalorder %v3985_v46, %v5380_v48  ;;  %vm8494_vm7 = vcmp.eq.s32.totalorder %v3985_v46, %v5315_v19  ;;  %v5763_v48 = vpop.permute.xlu0 %1318  ;;  %v8654_v19 = vmov 0 }
 0x224   : > { %vm5728_vm6 = vmor %vm8484_vm1, %vm1046_vm12  ;;  %vm8490_vm1 = vcmp.eq.s32.totalorder %v3971_v15, %v8472_v47  ;;  %v2229_v43 = vpack.c.bf16 %v2996_v13, %v2992_v61 }
 0x225   : > { %vm1523_vm4 = vmor %vm8488_vm11, %vm8487_vm10  ;;  %vm346_vm11 = vcmp.eq.s32.totalorder %v3976_v14, %v8467_v20 }
 0x226   : > { %vm5748_vm13 = vmor %vm8491_vm8, %vm8490_vm1  ;;  %vm8495_vm1 = vcmp.eq.s32.totalorder %v3985_v46, %v8472_v47  ;;  %2606 = vmatmul.mubr.bf16.gmra.mrb[24].mxu0 %v2229_v43 }
 0x227   : > { %vm1871_vm10 = vmor %vm5630_vm5, %vm8494_vm7  ;;  %vm347_vm5 = vcmp.eq.s32.totalorder %v3985_v46, %v8467_v20  ;;  %vm8498_vm7 = vcmp.eq.s32.totalorder %v3976_v14, %v4113_v56  ;;  %v5853_v62 = vpop.permute.xlu0 %1327 }
 0x228   : > { %vm1875_vm8 = vmor %vm1523_vm4, %vm1747_vm0  ;;  %vm1049_vm0 = vcmp.eq.s32.totalorder %v3963_v30, %v5388_v31  ;;  %v2994_v1 = vsel %vm1871_vm10, 1.0, %v8263_v0  ;;  %vm1050_vm10 = vcmp.eq.s32.totalorder %v3976_v14, %v5388_v31 }
 0x229   : > { %vm5773_vm3 = vmor %vm5642_vm9, %vm8495_vm1  ;;  %v2998_v54 = vsel %vm1875_vm8, 1.0, %v8263_v0  ;;  %vm8501_vm9 = vcmp.eq.s32.totalorder %v3985_v46, %v4113_v56  ;;  %vm8505_vm1 = vcmp.eq.s32.totalorder %v3971_v15, 500  ;;  %vm8508_vm8 = vcmp.eq.s32.totalorder %v3971_v15, %v4113_v56  ;;  %v8513_v56 = vld [vmem:[#allocation3_spill] sm:$0xff] }
 0x22a   : > { %vm5782_vm12 = vmor %vm346_vm11, %vm8498_vm7  ;;  %vm8504_vm11 = vcmp.eq.s32.totalorder %v3971_v15, %v8489_v18  ;;  %v2231_v12 = vpack.c.bf16 %v2998_v54, %v2994_v1  ;;  %v8591_v54 = vld [vmem:[#allocation5_spill] sm:$0xff] }
 0x22b   : > { %vm5795_vm4 = vmor %vm347_vm5, %vm8501_vm9  ;;  %vm703_vm9 = vcmp.eq.s32.totalorder %v3985_v46, %v8516_v10  ;;  %v943_v55 = vpop.permute.xlu0 %942 }
 0x22c   : > { %vm5804_vm7 = vmor %vm8505_vm1, %vm8504_vm11  ;;  %2767 = vmatmul.mubr.bf16.gmra.mrb[24].mxu1 %v2231_v12  ;;  %v8595_v12 = vld [vmem:[#allocation21_spill] sm:$0xff] }
 0x22d   : > { %v8507_v29 = vsel %vm5804_vm7, 4294967295, %v8506_v29  ;;  %vm5815_vm5 = vmor %vm5667_vm2, %vm8508_vm8  ;;  %vm1397_vm7 = vcmp.eq.s32.totalorder %v3963_v30, %v5419_v34  ;;  %vm1398_vm2 = vcmp.eq.s32.totalorder %v3976_v14, %v5419_v34 }
 0x22e   : > { %vm5825_vm1 = vmor %vm5683_vm14, %vm1049_vm0  ;;  %vm1400_vm14 = vcmp.eq.s32.totalorder %v3971_v15, %v5419_v34  ;;  %vm8520_vm0 = vcmp.eq.s32.totalorder %v3985_v46, %v5388_v31 }
 0x22f   : > { %v8512_v9 = vsel %vm5825_vm1, 4294967295, %v8511_v9  ;;  %vm5839_vm11 = vmor %vm5782_vm12, %vm1050_vm10  ;;  %vm8517_vm12 = vcmp.eq.s32.totalorder %v3971_v15, %v5388_v31  ;;  %v5889_v31 = vpop.permute.xlu1 %1649 }
 0x230   : > { %vm5860_vm10 = vmor %vm5815_vm5, %vm8517_vm12  ;;  %vm8528_vm12 = vcmp.eq.s32.totalorder %v3971_v15, 500 }
 0x231   : > { %vm5869_vm8 = vmor %vm5795_vm4, %vm8520_vm0  ;;  %vm1750_vm4 = vcmp.eq.s32.totalorder %v3976_v14, %v5463_v42  ;;  %vm8527_vm0 = vcmp.eq.s32.totalorder %v3971_v15, %v8513_v56 }
 0x232   : > { %v8522_v57 = vsel %vm5869_vm8, 4294967295, %v8521_v57  ;;  %vm5877_vm1 = vmor %vm5719_vm15, %vm1397_vm7  ;;  %vm1754_vm7 = vcmp.eq.s32.totalorder %v3976_v14, %v5517_v44  ;;  %vm8537_vm8 = vcmp.eq.s32.totalorder %v3976_v14, %v8516_v10 }
 0x233   : > { %v8524_v21 = vsel %vm5877_vm1, 4294967295, %v8523_v21  ;;  %vm5883_vm5 = vmor %vm5728_vm6, %vm1398_vm2  ;;  %vm8538_vm2 = vcmp.eq.s32.totalorder %v3976_v14, %v8489_v18  ;;  %v5996_v2 = vpop.permute.xlu1 %951 }
 0x234   : > { %vm5896_vm15 = vmor %vm8528_vm12, %vm8527_vm0  ;;  %vm8533_vm12 = vcmp.eq.s32.totalorder %v3963_v30, %v8516_v10  ;;  %vm8541_vm0 = vcmp.eq.s32.totalorder %v3976_v14, %v5409_v49 }
 0x235   : > { %v8530_v39 = vsel %vm5896_vm15, 4294967295, %v8529_v39  ;;  %vm5902_vm6 = vmor %vm5748_vm13, %vm1400_vm14  ;;  %vm8534_vm13 = vcmp.eq.s32.totalorder %v3963_v30, %v8489_v18 }
 0x236   : > { %vm5920_vm14 = vmor %vm8534_vm13, %vm8533_vm12  ;;  %vm8542_vm13 = vcmp.eq.s32.totalorder %v3985_v46, %v5419_v34 }
 0x237   : > { %v8536_v51 = vsel %vm5920_vm14, 4294967295, %v8535_v51  ;;  %vm5930_vm15 = vmor %vm8538_vm2, %vm8537_vm8 }
 0x238   : > { %v8540_v8 = vsel %vm5930_vm15, 4294967295, %v8539_v8  ;;  %vm1530_vm1 = vmor %vm5839_vm11, %vm8541_vm0  ;;  %vm353_vm11 = vcmp.eq.s32.totalorder %v3963_v30, %v8513_v56  ;;  %vm1756_vm0 = vcmp.eq.s32.totalorder %v3971_v15, %v5517_v44  ;;  %vm705_vm15 = vcmp.eq.s32.totalorder %v3963_v30, %v4149_v3 }
 0x239   : > { %vm5946_vm14 = vmor %vm5773_vm3, %vm8542_vm13  ;;  %vm1401_vm3 = vcmp.eq.s32.totalorder %v3963_v30, %v5409_v49  ;;  %vm8545_vm13 = vcmp.eq.s32.totalorder %v3985_v46, %v8489_v18  ;;  %v6098_v18 = vpop.permute.xlu1 %1300 }
 0x23a   : > { %vm1878_vm2 = vmor %vm5883_vm5, %vm1750_vm4 }
 0x23b   : > { %vm1882_vm12 = vmor %vm1530_vm1, %vm1754_vm7  ;;  %v3001_v24 = vsel %vm1878_vm2, 1.0, %v8263_v0  ;;  %vm8548_vm1 = vcmp.eq.s32.totalorder %v3971_v15, %v5409_v49  ;;  %vm8549_vm7 = vcmp.eq.s32.totalorder %v3971_v15, %v8516_v10 }
 0x23c   : > { %vm5965_vm8 = vmor %vm8545_vm13, %vm703_vm9  ;;  %v3005_v20 = vsel %vm1882_vm12, 1.0, %v8263_v0  ;;  %vm8550_vm13 = vnez %v8507_v29  ;;  %vm1753_vm12 = vcmp.eq.s32.totalorder %v3963_v30, %v5517_v44 }
 0x23d   : > { %vm1532_vm5 = vmor %vm5860_vm10, %vm8548_vm1  ;;  %v2234_v11 = vpack.c.bf16 %v3005_v20, %v3001_v24  ;;  %vm8553_vm10 = vcmp.eq.s32.totalorder %v3971_v15, %v5463_v42  ;;  %v6155_v29 = vpop.permute.xlu1 %1652 }
 0x23e   : > { %vm5985_vm2 = vmor %vm8550_vm13, %vm8549_vm7  ;;  %vm708_vm7 = vcmp.eq.s32.totalorder %v3971_v15, %v4149_v3  ;;  %vm8562_vm13 = vnez %v8524_v21 }
 0x23f   : > { %vm1880_vm1 = vmor %vm5902_vm6, %vm8553_vm10  ;;  %2613 = vmatprep.mubr.bf16.mxu0 %v2234_v11 }
 0x240   : > { %vm1884_vm9 = vmor %vm1532_vm5, %vm1756_vm0  ;;  %v3003_v47 = vsel %vm1880_vm1, 1.0, %v8263_v0  ;;  %vm8556_vm0 = vnez %v8512_v9  ;;  %vm8573_vm1 = vcmp.eq.s32.totalorder %v3976_v14, %v943_v55  ;;  %v3122_v9 = vpop.f32.mrb[0].mxu0 }
 0x241   : > { %vm6015_vm6 = vmor %vm353_vm11, %vm705_vm15  ;;  %v3007_v52 = vsel %vm1884_vm9, 1.0, %v8263_v0  ;;  %vm8557_vm15 = vcmp.eq.s32.totalorder %v3976_v14, %v4149_v3  ;;  %vm8558_vm11 = vcmp.eq.s32.totalorder %v3976_v14, %v8513_v56  ;;  %vm8561_vm9 = vcmp.eq.s32.totalorder %v3963_v30, %v5463_v42  ;;  %v3123_v10 = vpop.f32.mrb[1].mxu0 }
 0x242   : > { %vm1529_vm5 = vmor %vm8556_vm0, %vm1401_vm3  ;;  %v2236_v23 = vpack.c.bf16 %v3007_v52, %v3003_v47  ;;  %vm355_vm0 = vcmp.eq.s32.totalorder %v3985_v46, %v8513_v56  ;;  %v8600_v56 = vmov 0  ;;  %v3124_v21 = vadd.f32 %v3123_v10, %v3122_v9  ;;  %v3125_v53 = vpop.f32.mrb[2].mxu0 }
 0x243   : > { %vm6034_vm10 = vmor %vm8558_vm11, %vm8557_vm15  ;;  %vm8563_vm15 = vnez %v8530_v39 }
 0x244   : > { %v8560_v28 = vsel %vm6034_vm10, 4294967295, %v8559_v28  ;;  %vm1877_vm3 = vmor %vm8562_vm13, %vm8561_vm9  ;;  %vm8566_vm13 = vcmp.eq.s32.totalorder %v3985_v46, %v4149_v3  ;;  %vm1055_vm10 = vcmp.eq.s32.totalorder %v3985_v46, %v943_v55  ;;  %v8575_v3 = vmov 0  ;;  %2774 = vmatprep.mubr.bf16.mxu1 %v2236_v23 }
 0x245   : > { %vm6052_vm11 = vmor %vm8563_vm15, %vm708_vm7  ;;  %vm8569_vm7 = vcmp.eq.s32.totalorder %v3963_v30, %v943_v55  ;;  %vm8570_vm15 = vnez %v8536_v51  ;;  %v3000_v60 = vsel %vm1877_vm3, 1.0, %v8263_v0  ;;  %vm8581_vm3 = vcmp.eq.s32.totalorder %v3985_v46, %v5517_v44  ;;  %v3126_v51 = vpop.f32.mrb[3].mxu0 }
 0x246   : > { %v8565_v36 = vsel %vm6052_vm11, 4294967295, %v8564_v36  ;;  %vm1881_vm4 = vmor %vm1529_vm5, %vm1753_vm12  ;;  %vm8574_vm12 = vnez %v8540_v8  ;;  %v6260_v8 = vpop.permute.xlu0 %948  ;;  %v3127_v34 = vadd.f32 %v3126_v51, %v3125_v53  ;;  %v8691_v53 = vmov 0 }
 0x247   : > { %vm6064_vm9 = vmor %vm355_vm0, %vm8566_vm13  ;;  %v3004_v61 = vsel %vm1881_vm4, 1.0, %v8263_v0  ;;  %vm8577_vm0 = vcmp.eq.s32.totalorder %v3985_v46, %v5409_v49  ;;  %vm8578_vm13 = vnez %v8522_v57  ;;  %vm360_vm4 = vcmp.eq.s32.totalorder %v3971_v15, %v8580_v38 }
 0x248   : > { %vm6073_vm11 = vmor %vm8570_vm15, %vm8569_vm7  ;;  %vm1056_vm15 = vcmp.eq.s32.totalorder %v3971_v15, %v943_v55  ;;  %v2233_v13 = vpack.c.bf16 %v3004_v61, %v3000_v60  ;;  %v3234_v55 = vpop.f32.mrb[0].mxu1 }
 0x249   : > { %vm6081_vm5 = vmor %vm8574_vm12, %vm8573_vm1  ;;  %vm8579_vm1 = vcmp.eq.s32.totalorder %v3985_v46, %v5463_v42  ;;  %v3235_v11 = vpop.f32.mrb[1].mxu1 }
 0x24a   : > { %v8576_v3 = vsel %vm6081_vm5, 4294967295, %v8575_v3  ;;  %vm1531_vm7 = vmor %vm8578_vm13, %vm8577_vm0  ;;  %vm1057_vm13 = vcmp.eq.s32.totalorder %v3963_v30, %v5614_v27  ;;  %2614 = vmatmul.mubr.bf16.gmra.mrb[28].mxu0 %v2233_v13  ;;  %v3236_v52 = vadd.f32 %v3235_v11, %v3234_v55  ;;  %v8717_v11 = vmov 0 }
 0x24b   : > { %vm1879_vm12 = vmor %vm5946_vm14, %vm8579_vm1  ;;  %vm1060_vm1 = vcmp.eq.s32.totalorder %v3971_v15, %v5614_v27 }
 0x24c   : > { %vm1883_vm5 = vmor %vm1531_vm7, %vm8581_vm3  ;;  %v3002_v42 = vsel %vm1879_vm12, 1.0, %v8263_v0  ;;  %vm1406_vm12 = vcmp.eq.s32.totalorder %v3976_v14, %v5696_v32  ;;  %vm8611_vm3 = vcmp.eq.s32.totalorder %v3971_v15, %v5696_v32 }
 0x24d   : > { %vm6107_vm0 = vmor %vm5965_vm8, %vm1055_vm10  ;;  %v3006_v43 = vsel %vm1883_vm5, 1.0, %v8263_v0  ;;  %vm1058_vm8 = vcmp.eq.s32.totalorder %v3976_v14, %v5614_v27  ;;  %vm8586_vm10 = vcmp.eq.s32.totalorder %v3971_v15, 500 }
 0x24e   : > { %vm6117_vm14 = vmor %vm5985_vm2, %vm1056_vm15  ;;  %v2235_v44 = vpack.c.bf16 %v3006_v43, %v3002_v42  ;;  %vm1405_vm15 = vcmp.eq.s32.totalorder %v3963_v30, %v5696_v32  ;;  %v8651_v43 = vmov 0 }
 0x24f   : > { %vm6125_vm7 = vmor %vm8586_vm10, %vm360_vm4  ;;  %vm8592_vm10 = vnez %v8560_v28  ;;  %v3237_v28 = vpop.f32.mrb[2].mxu1 }
 0x250   : > { %vm6135_vm2 = vmor %vm6015_vm6, %vm1057_vm13  ;;  %2775 = vmatmul.mubr.bf16.gmra.mrb[28].mxu1 %v2235_v44  ;;  %vm8599_vm13 = vcmp.eq.s32.totalorder %v3985_v46, %v5614_v27  ;;  %v3238_v23 = vpop.f32.mrb[3].mxu1  ;;  %v8678_v27 = vld [vmem:[#allocation23_spill] sm:$0xff] }
 0x251   : > { %vm6149_vm5 = vmor %vm8592_vm10, %vm1058_vm8  ;;  %vm8596_vm10 = vnez %v8565_v36  ;;  %vm8607_vm8 = vcmp.eq.s32.totalorder %v3971_v15, %v8591_v54  ;;  %v3239_v60 = vadd.f32 %v3238_v23, %v3237_v28  ;;  %v8722_v28 = vmov 0 }
 0x252   : > { %vm6170_vm6 = vmor %vm8596_vm10, %vm1060_vm1  ;;  %vm8622_vm10 = vcmp.eq.s32.totalorder %v3976_v14, %v5459_v5  ;;  %v8727_v36 = vmov 0 }
 0x253   : > { %vm6179_vm4 = vmor %vm6064_vm9, %vm8599_vm13  ;;  %vm8604_vm9 = vnez %v8576_v3  ;;  %v2721_v3 = vadd.f32 %v3236_v52, %v3124_v21  ;;  %v2724_v42 = vadd.f32 %v3239_v60, %v3127_v34 }
 0x254   : > { %v8601_v56 = vsel %vm6179_vm4, 4294967295, %v8600_v56  ;;  %vm6190_vm1 = vmor %vm6073_vm11, %vm1405_vm15  ;;  %vm8608_vm11 = vcmp.eq.s32.totalorder %v3971_v15, 500 }
 0x255   : > { %vm6199_vm13 = vmor %vm8604_vm9, %vm1406_vm12  ;;  %vm8618_vm9 = vcmp.eq.s32.totalorder %v3976_v14, %v8595_v12  ;;  %2847 = vst [vmem:[%s6346_s5] sm:$0xff] %v2721_v3 }
 0x256   : > { %vm6210_vm15 = vmor %vm8608_vm11, %vm8607_vm8  ;;  %vm8619_vm8 = vcmp.eq.s32.totalorder %v3976_v14, %v8580_v38  ;;  %2848 = vst [vmem:[%s6346_s5 + $0x8] sm:$0xff] %v2724_v42 }
 0x257   : > { %v8610_v58 = vsel %vm6210_vm15, 4294967295, %v8609_v58  ;;  %vm6219_vm12 = vmor %vm6117_vm14, %vm8611_vm3  ;;  %vm8614_vm14 = vcmp.eq.s32.totalorder %v3963_v30, %v8595_v12  ;;  %vm8615_vm3 = vcmp.eq.s32.totalorder %v3963_v30, %v8580_v38 }
 0x258   : > { %vm6237_vm4 = vmor %vm8615_vm3, %vm8614_vm14  ;;  %vm8628_vm14 = vcmp.eq.s32.totalorder %v3985_v46, %v8595_v12 }
 0x259   : > { %vm6247_vm11 = vmor %vm8619_vm8, %vm8618_vm9  ;;  %vm8623_vm9 = vcmp.eq.s32.totalorder %v3985_v46, %v5696_v32  ;;  %v6289_v32 = vpop.permute.xlu1 %1655 }
 0x25a   : > { %v8621_v50 = vsel %vm6247_vm11, 4294967295, %v8620_v50  ;;  %vm1538_vm15 = vmor %vm6149_vm5, %vm8622_vm10  ;;  %vm8626_vm10 = vcmp.eq.s32.totalorder %v3976_v14, %v5790_v59  ;;  %vm8627_vm5 = vcmp.eq.s32.totalorder %v3976_v14, %v5889_v31 }
 0x25b   : > { %vm6267_vm8 = vmor %vm6107_vm0, %vm8623_vm9  ;;  %vm1764_vm9 = vcmp.eq.s32.totalorder %v3971_v15, %v5889_v31  ;;  %vm8629_vm0 = vcmp.eq.s32.totalorder %v3985_v46, %v8580_v38 }
 0x25c   : > { %v8625_v4 = vsel %vm6267_vm8, 4294967295, %v8624_v4  ;;  %vm1886_vm3 = vmor %vm6199_vm13, %vm8626_vm10  ;;  %vm1409_vm10 = vcmp.eq.s32.totalorder %v3963_v30, %v5459_v5  ;;  %vm1761_vm13 = vcmp.eq.s32.totalorder %v3963_v30, %v5889_v31 }
 0x25d   : > { %vm1890_vm8 = vmor %vm1538_vm15, %vm8627_vm5  ;;  %v3009_v20 = vsel %vm1886_vm3, 1.0, %v8263_v0  ;;  %vm8632_vm15 = vcmp.eq.s32.totalorder %v3971_v15, %v5459_v5  ;;  %v6398_v49 = vpop.permute.xlu1 %957 }
 0x25e   : > { %vm6301_vm11 = vmor %vm8629_vm0, %vm8628_vm14  ;;  %v3013_v35 = vsel %vm1890_vm8, 1.0, %v8263_v0  ;;  %vm8633_vm14 = vcmp.eq.s32.totalorder %v3971_v15, %v8595_v12  ;;  %v3128_v12 = vpop.f32.mrb[4].mxu0  ;;  %v3240_v57 = vpop.f32.mrb[4].mxu1 }
 0x25f   : > { %vm1540_vm5 = vmor %vm6170_vm6, %vm8632_vm15  ;;  %v2238_v47 = vpack.c.bf16 %v3013_v35, %v3009_v20  ;;  %vm8636_vm6 = vcmp.eq.s32.totalorder %v3971_v15, %v5790_v59  ;;  %v3241_v39 = vpop.f32.mrb[5].mxu1 }
 0x260   : > { %vm6319_vm0 = vmor %vm6125_vm7, %vm8633_vm14  ;;  %vm8646_vm14 = vcmp.eq.s32.totalorder %v3971_v15, %v4169_v7 }
 0x261   : > { %vm1888_vm8 = vmor %vm6219_vm12, %vm8636_vm6  ;;  %vm8637_vm12 = vcmp.eq.s32.totalorder %v3963_v30, %v4169_v7  ;;  %vm8638_vm6 = vcmp.eq.s32.totalorder %v3963_v30, %v8591_v54  ;;  %2621 = vmatprep.mubr.bf16.mxu0 %v2238_v47  ;;  %v6474_v9 = vpop.permute.xlu1 %1306 }
 0x262   : > { %vm1892_vm3 = vmor %vm1540_vm5, %vm1764_vm9  ;;  %v3011_v22 = vsel %vm1888_vm8, 1.0, %v8263_v0  ;;  %vm8641_vm5 = vcmp.eq.s32.totalorder %v3976_v14, %v4169_v7  ;;  %vm8645_vm8 = vcmp.eq.s32.totalorder %v3963_v30, %v5790_v59 }
 0x263   : > { %vm6354_vm15 = vmor %vm8638_vm6, %vm8637_vm12  ;;  %v3015_v37 = vsel %vm1892_vm3, 1.0, %v8263_v0  ;;  %vm8642_vm12 = vcmp.eq.s32.totalorder %v3976_v14, %v8591_v54 }
 0x264   : > { %vm1537_vm9 = vmor %vm6135_vm2, %vm1409_vm10  ;;  %v2240_v13 = vpack.c.bf16 %v3015_v37, %v3011_v22  ;;  %vm363_vm10 = vcmp.eq.s32.totalorder %v3985_v46, %v8591_v54  ;;  %v8664_v54 = vld [vmem:[#allocation8_spill] sm:$0xff]  ;;  %v8735_v37 = vmov 0 }
 0x265   : > { %vm6371_vm6 = vmor %vm8642_vm12, %vm8641_vm5  ;;  %vm8647_vm5 = vnez %v8610_v58  ;;  %v8682_v58 = vmov 0  ;;  %v6561_v51 = vpop.permute.xlu1 %1658 }
 0x266   : > { %vm1885_vm2 = vmor %vm6190_vm1, %vm8645_vm8  ;;  %vm8650_vm8 = vcmp.eq.s32.totalorder %v3985_v46, %v4169_v7  ;;  %v8658_v7 = vmov 0  ;;  %2782 = vmatprep.mubr.bf16.mxu1 %v2240_v13  ;;  %v8742_v13 = vmov 0 }
 0x267   : > { %vm6389_vm12 = vmor %vm8647_vm5, %vm8646_vm14  ;;  %vm1063_vm14 = vcmp.eq.s32.totalorder %v3985_v46, %v6260_v8  ;;  %vm8653_vm5 = vcmp.eq.s32.totalorder %v3963_v30, %v6260_v8  ;;  %v3008_v44 = vsel %vm1885_vm2, 1.0, %v8263_v0  ;;  %vm368_vm2 = vcmp.eq.s32.totalorder %v3971_v15, %v8664_v54 }
 0x268   : > { %vm1889_vm1 = vmor %vm1537_vm9, %vm1761_vm13  ;;  %vm8656_vm9 = vcmp.eq.s32.totalorder %v3976_v14, %v6260_v8 }
 0x269   : > { %vm6404_vm7 = vmor %vm363_vm10, %vm8650_vm8  ;;  %vm8657_vm10 = vnez %v8621_v50  ;;  %v3012_v6 = vsel %vm1889_vm1, 1.0, %v8263_v0  ;;  %vm8665_vm1 = vcmp.eq.s32.totalorder %v3985_v46, %v5889_v31  ;;  %v8696_v50 = vmov 0  ;;  %v6663_v52 = vpop.permute.xlu1 %1661 }
 0x26a   : > { %v8652_v43 = vsel %vm6404_vm7, 4294967295, %v8651_v43  ;;  %vm6415_vm13 = vmor %vm6237_vm4, %vm8653_vm5  ;;  %vm8660_vm4 = vcmp.eq.s32.totalorder %v3985_v46, %v5459_v5  ;;  %vm8661_vm5 = vnez %v8601_v56  ;;  %v2237_v1 = vpack.c.bf16 %v3012_v6, %v3008_v44 }
 0x26b   : > { %v8655_v19 = vsel %vm6415_vm13, 4294967295, %v8654_v19  ;;  %vm6424_vm8 = vmor %vm8657_vm10, %vm8656_vm9  ;;  %vm1064_vm13 = vcmp.eq.s32.totalorder %v3971_v15, %v6260_v8  ;;  %vm8662_vm9 = vcmp.eq.s32.totalorder %v3985_v46, %v5790_v59  ;;  %vm8663_vm10 = vnez %v8625_v4  ;;  %v955_v4 = vpop.permute.xlu0 %954  ;;  %v8774_v8 = vld [vmem:[#allocation24_spill] sm:$0xff] }
 0x26c   : > { %v8659_v7 = vsel %vm6424_vm8, 4294967295, %v8658_v7  ;;  %vm1539_vm3 = vmor %vm8661_vm5, %vm8660_vm4  ;;  %v8666_v5 = vmov 0  ;;  %vm1065_vm5 = vcmp.eq.s32.totalorder %v3963_v30, %v5996_v2  ;;  %2622 = vmatmul.mubr.bf16.gmra.mrb[32].mxu0 %v2237_v1  ;;  %v8673_v56 = vmov 0  ;;  %v8760_v1 = vld [vmem:[#allocation9_spill] sm:$0xff] }
 0x26d   : > { %vm1887_vm8 = vmor %vm8663_vm10, %vm8662_vm9  ;;  %vm1414_vm10 = vcmp.eq.s32.totalorder %v3976_v14, %v6098_v18  ;;  %v6735_v61 = vpop.permute.xlu1 %963  ;;  %v8758_v6 = vmov 0 }
 0x26e   : > { %vm1891_vm7 = vmor %vm1539_vm3, %vm8665_vm1  ;;  %v3010_v59 = vsel %vm1887_vm8, 1.0, %v8263_v0  ;;  %vm8670_vm3 = vcmp.eq.s32.totalorder %v3971_v15, 500  ;;  %vm1068_vm8 = vcmp.eq.s32.totalorder %v3971_v15, %v5996_v2 }
 0x26f   : > { %vm6450_vm4 = vmor %vm6301_vm11, %vm1063_vm14  ;;  %v3014_v45 = vsel %vm1891_vm7, 1.0, %v8263_v0  ;;  %vm1066_vm11 = vcmp.eq.s32.totalorder %v3976_v14, %v5996_v2 }
 0x270   : > { %v8667_v5 = vsel %vm6450_vm4, 4294967295, %v8666_v5  ;;  %vm6460_vm9 = vmor %vm6319_vm0, %vm1064_vm13  ;;  %v2239_v31 = vpack.c.bf16 %v3014_v45, %v3010_v59  ;;  %vm1067_vm0 = vcmp.eq.s32.totalorder %v3985_v46, %v5996_v2  ;;  %vm1413_vm13 = vcmp.eq.s32.totalorder %v3963_v30, %v6098_v18 }
 0x271   : > { %vm6468_vm14 = vmor %vm8670_vm3, %vm368_vm2  ;;  %vm372_vm2 = vcmp.eq.s32.totalorder %v3971_v15, %v8675_v25  ;;  %v8676_v2 = vmov 0  ;;  %vm717_vm3 = vcmp.eq.s32.totalorder %v3963_v30, %v8678_v27  ;;  %vm8684_vm4 = vnez %v8655_v19  ;;  %v6795_v44 = vpop.permute.xlu1 %1312 }
 0x272   : > { %v8672_v63 = vsel %vm6468_vm14, 4294967295, %v8671_v63  ;;  %vm6480_vm7 = vmor %vm6354_vm15, %vm1065_vm5  ;;  %2783 = vmatmul.mubr.bf16.gmra.mrb[32].mxu1 %v2239_v31  ;;  %vm1416_vm15 = vcmp.eq.s32.totalorder %v3971_v15, %v6098_v18  ;;  %v8753_v19 = vmov 0  ;;  %v8810_v31 = vmov 0 }
 0x273   : > { %v8674_v56 = vsel %vm6480_vm7, 4294967295, %v8673_v56  ;;  %vm6492_vm1 = vmor %vm6371_vm6, %vm1066_vm11  ;;  %vm1418_vm7 = vcmp.eq.s32.totalorder %v3976_v14, %v5509_v16  ;;  %vm8681_vm6 = vnez %v8652_v43  ;;  %v8747_v43 = vmov 0 }
 0x274   : > { %v8677_v2 = vsel %vm6492_vm1, 4294967295, %v8676_v2  ;;  %vm6506_vm14 = vmor %vm6389_vm12, %vm1068_vm8  ;;  %vm8687_vm12 = vnez %v8659_v7  ;;  %v8756_v7 = vmov 0 }
 0x275   : > { %vm6512_vm11 = vmor %vm8681_vm6, %vm1067_vm0  ;;  %vm1766_vm0 = vcmp.eq.s32.totalorder %v3976_v14, %v6155_v29  ;;  %vm8690_vm6 = vcmp.eq.s32.totalorder %v3971_v15, 500 }
 0x276   : > { %v8683_v58 = vsel %vm6512_vm11, 4294967295, %v8682_v58  ;;  %vm6520_vm1 = vmor %vm8684_vm4, %vm1413_vm13  ;;  %vm1770_vm13 = vcmp.eq.s32.totalorder %v3976_v14, %v6289_v32 }
 0x277   : > { %vm6526_vm8 = vmor %vm8687_vm12, %vm1414_vm10  ;;  %vm1772_vm10 = vcmp.eq.s32.totalorder %v3971_v15, %v6289_v32 }
 0x278   : > { %vm6534_vm11 = vmor %vm8690_vm6, %vm372_vm2  ;;  %vm8695_vm6 = vcmp.eq.s32.totalorder %v3963_v30, %v8664_v54  ;;  %vm8699_vm2 = vcmp.eq.s32.totalorder %v3985_v46, %v6098_v18  ;;  %v3242_v18 = vadd.f32 %v3241_v39, %v3240_v57  ;;  %v8819_v57 = vld [vmem:[#allocation13_spill] sm:$0xff] }
 0x279   : > { %v8692_v53 = vsel %vm6534_vm11, 4294967295, %v8691_v53  ;;  %vm6540_vm4 = vmor %vm6460_vm9, %vm1416_vm15  ;;  %vm8698_vm9 = vnez %v8677_v2  ;;  %vm8700_vm11 = vnez %v8667_v5  ;;  %v8763_v5 = vmov 0 }
 0x27a   : > { %vm6555_vm5 = vmor %vm8695_vm6, %vm717_vm3 }
 0x27b   : > { %v8697_v50 = vsel %vm6555_vm5, 4294967295, %v8696_v50  ;;  %vm1546_vm15 = vmor %vm8698_vm9, %vm1418_vm7  ;;  %vm720_vm9 = vcmp.eq.s32.totalorder %v3971_v15, %v8678_v27  ;;  %vm8704_vm7 = vcmp.eq.s32.totalorder %v3976_v14, %v8664_v54  ;;  %vm8716_vm5 = vcmp.eq.s32.totalorder %v3963_v30, %v4177_v17 }
 0x27c   : > { %vm6572_vm3 = vmor %vm8700_vm11, %vm8699_vm2  ;;  %vm8703_vm2 = vcmp.eq.s32.totalorder %v3976_v14, %v8678_v27 }
 0x27d   : > { %vm1894_vm6 = vmor %vm6526_vm8, %vm1766_vm0  ;;  %vm8707_vm0 = vcmp.eq.s32.totalorder %v3971_v15, %v5509_v16 }
 0x27e   : > { %vm1898_vm12 = vmor %vm1546_vm15, %vm1770_vm13  ;;  %v3017_v34 = vsel %vm1894_vm6, 1.0, %v8263_v0  ;;  %vm369_vm15 = vcmp.eq.s32.totalorder %v3963_v30, %v8675_v25  ;;  %vm8709_vm6 = vcmp.eq.s32.totalorder %v3985_v46, %v8664_v54  ;;  %v8761_v54 = vld [vmem:[#allocation10_spill] sm:$0xff] }
 0x27f   : > { %vm6594_vm8 = vmor %vm8704_vm7, %vm8703_vm2  ;;  %v3021_v55 = vsel %vm1898_vm12, 1.0, %v8263_v0  ;;  %vm8708_vm2 = vcmp.eq.s32.totalorder %v3985_v46, %v8678_v27  ;;  %vm370_vm7 = vcmp.eq.s32.totalorder %v3976_v14, %v8675_v25 }
 0x280   : > { %vm1548_vm13 = vmor %vm6506_vm14, %vm8707_vm0  ;;  %v2242_v20 = vpack.c.bf16 %v3021_v55, %v3017_v34  ;;  %vm8712_vm14 = vcmp.eq.s32.totalorder %v3971_v15, %v6155_v29 }
 0x281   : > { %vm6615_vm11 = vmor %vm8709_vm6, %vm8708_vm2  ;;  %vm8713_vm6 = vnez %v8672_v63 }
 0x282   : > { %vm1896_vm0 = vmor %vm6540_vm4, %vm8712_vm14  ;;  %2629 = vmatprep.mubr.bf16.mxu0 %v2242_v20  ;;  %v961_v20 = vpop.permute.xlu0 %960 }
 0x283   : > { %vm6637_vm12 = vmor %vm8713_vm6, %vm720_vm9  ;;  %v3019_v40 = vsel %vm1896_vm0, 1.0, %v8263_v0  ;;  %vm1771_vm0 = vcmp.eq.s32.totalorder %v3985_v46, %v6289_v32  ;;  %vm8729_vm6 = vcmp.eq.s32.totalorder %v3963_v30, %v6289_v32 }
 0x284   : > { %vm1900_vm14 = vmor %vm1548_vm13, %vm1772_vm10  ;;  %vm8719_vm10 = vcmp.eq.s32.totalorder %v3963_v30, %v5509_v16  ;;  %vm8720_vm13 = vnez %v8674_v56  ;;  %v6843_v56 = vpop.permute.xlu1 %1664 }
 0x285   : > { %vm6649_vm2 = vmor %vm369_vm15, %vm8716_vm5  ;;  %v3023_v47 = vsel %vm1900_vm14, 1.0, %v8263_v0  ;;  %vm8721_vm5 = vcmp.eq.s32.totalorder %v3976_v14, %v4177_v17  ;;  %vm8724_vm14 = vcmp.eq.s32.totalorder %v3963_v30, %v6155_v29 }
 0x286   : > { %v8718_v11 = vsel %vm6649_vm2, 4294967295, %v8717_v11  ;;  %vm1545_vm4 = vmor %vm8720_vm13, %vm8719_vm10  ;;  %v2244_v23 = vpack.c.bf16 %v3023_v47, %v3019_v40  ;;  %vm371_vm10 = vcmp.eq.s32.totalorder %v3985_v46, %v8675_v25  ;;  %vm8725_vm13 = vcmp.eq.s32.totalorder %v3971_v15, %v4177_v17  ;;  %v3129_v25 = vpop.f32.mrb[5].mxu0 }
 0x287   : > { %vm6668_vm15 = vmor %vm370_vm7, %vm8721_vm5  ;;  %vm8726_vm7 = vnez %v8692_v53  ;;  %vm1070_vm2 = vcmp.eq.s32.totalorder %v3976_v14, %v955_v4  ;;  %v3130_v2 = vadd.f32 %v3129_v25, %v3128_v12  ;;  %v3131_v27 = vpop.f32.mrb[6].mxu0 }
 0x288   : > { %v8723_v28 = vsel %vm6668_vm15, 4294967295, %v8722_v28  ;;  %vm1893_vm9 = vmor %vm6520_vm1, %vm8724_vm14  ;;  %vm8730_vm1 = vcmp.eq.s32.totalorder %v3985_v46, %v4177_v17  ;;  %2790 = vmatprep.mubr.bf16.mxu1 %v2244_v23  ;;  %v3132_v21 = vpop.f32.mrb[7].mxu0 }
 0x289   : > { %vm6686_vm5 = vmor %vm8726_vm7, %vm8725_vm13  ;;  %vm8733_vm13 = vcmp.eq.s32.totalorder %v3963_v30, %v955_v4  ;;  %vm8734_vm7 = vnez %v8697_v50  ;;  %v3016_v32 = vsel %vm1893_vm9, 1.0, %v8263_v0  ;;  %v3133_v50 = vadd.f32 %v3132_v21, %v3131_v27  ;;  %v3134_v60 = vpop.f32.mrb[8].mxu0 }
 0x28a   : > { %v8728_v36 = vsel %vm6686_vm5, 4294967295, %v8727_v36  ;;  %vm1897_vm15 = vmor %vm1545_vm4, %vm8729_vm6  ;;  %vm8737_vm4 = vcmp.eq.s32.totalorder %v3985_v46, %v5509_v16  ;;  %vm8738_vm6 = vnez %v8683_v58  ;;  %v2729_v40 = vadd.f32 %v3242_v18, %v3130_v2 }
 0x28b   : > { %vm6698_vm14 = vmor %vm371_vm10, %vm8730_vm1  ;;  %v3020_v3 = vsel %vm1897_vm15, 1.0, %v8263_v0  ;;  %vm1071_vm1 = vcmp.eq.s32.totalorder %v3985_v46, %v955_v4  ;;  %v8812_v2 = vmov 0  ;;  %v8814_v27 = vmov 0 }
 0x28c   : > { %vm6707_vm5 = vmor %vm8734_vm7, %vm8733_vm13  ;;  %v2241_v17 = vpack.c.bf16 %v3020_v3, %v3016_v32  ;;  %vm8739_vm13 = vcmp.eq.s32.totalorder %v3985_v46, %v6155_v29  ;;  %2849 = vst [vmem:[%s6346_s5 + $0x10] sm:$0xff] %v2729_v40  ;;  %v8833_v40 = vld [vmem:[#allocation25_spill] sm:$0xff] }
 0x28d   : > { %v8736_v37 = vsel %vm6707_vm5, 4294967295, %v8735_v37  ;;  %vm1547_vm10 = vmor %vm8738_vm6, %vm8737_vm4  ;;  %vm1072_vm5 = vcmp.eq.s32.totalorder %v3971_v15, %v955_v4  ;;  %vm1073_vm4 = vcmp.eq.s32.totalorder %v3963_v30, %v6398_v49  ;;  %vm1075_vm6 = vcmp.eq.s32.totalorder %v3985_v46, %v6398_v49  ;;  %v3243_v4 = vpop.f32.mrb[6].mxu1 }
 0x28e   : > { %vm1895_vm7 = vmor %vm6572_vm3, %vm8739_vm13  ;;  %2630 = vmatmul.mubr.bf16.gmra.mrb[36].mxu0 %v2241_v17  ;;  %v3244_v24 = vpop.f32.mrb[7].mxu1 }
 0x28f   : > { %vm1899_vm9 = vmor %vm1547_vm10, %vm1771_vm0  ;;  %v3018_v16 = vsel %vm1895_vm7, 1.0, %v8263_v0  ;;  %vm1076_vm0 = vcmp.eq.s32.totalorder %v3971_v15, %v6398_v49  ;;  %vm1424_vm7 = vcmp.eq.s32.totalorder %v3971_v15, %v6474_v9 }
 0x290   : > { %vm6727_vm15 = vmor %vm6594_vm8, %vm1070_vm2  ;;  %v3022_v29 = vsel %vm1899_vm9, 1.0, %v8263_v0  ;;  %vm1074_vm8 = vcmp.eq.s32.totalorder %v3976_v14, %v6398_v49  ;;  %vm1426_vm9 = vcmp.eq.s32.totalorder %v3976_v14, %v5573_v26 }
 0x291   : > { %vm6739_vm3 = vmor %vm6615_vm11, %vm1071_vm1  ;;  %v2243_v38 = vpack.c.bf16 %v3022_v29, %v3018_v16  ;;  %vm8746_vm11 = vnez %v8718_v11  ;;  %vm1421_vm1 = vcmp.eq.s32.totalorder %v3963_v30, %v6474_v9  ;;  %v6899_v11 = vpop.permute.xlu1 %1667 }
 0x292   : > { %v8743_v13 = vsel %vm6739_vm3, 4294967295, %v8742_v13  ;;  %vm6747_vm2 = vmor %vm6637_vm12, %vm1072_vm5  ;;  %vm1422_vm12 = vcmp.eq.s32.totalorder %v3976_v14, %v6474_v9  ;;  %vm8749_vm5 = vnez %v8723_v28 }
 0x293   : > { %vm6757_vm10 = vmor %vm8746_vm11, %vm1073_vm4  ;;  %2791 = vmatmul.mubr.bf16.gmra.mrb[36].mxu1 %v2243_v38  ;;  %vm8750_vm4 = vnez %v8728_v36 }
 0x294   : > { %v8748_v43 = vsel %vm6757_vm10, 4294967295, %v8747_v43  ;;  %vm1202_vm13 = vmor %vm8749_vm5, %vm1074_vm8  ;;  %vm1423_vm8 = vcmp.eq.s32.totalorder %v3985_v46, %v6474_v9  ;;  %vm8755_vm5 = vnez %v8736_v37 }
 0x295   : > { %vm6773_vm11 = vmor %vm8750_vm4, %vm1076_vm0  ;;  %vm1774_vm4 = vcmp.eq.s32.totalorder %v3976_v14, %v6561_v51  ;;  %v7002_v29 = vpop.permute.xlu1 %966 }
 0x296   : > { %vm6779_vm10 = vmor %vm6698_vm14, %vm1075_vm6  ;;  %vm1778_vm6 = vcmp.eq.s32.totalorder %v3976_v14, %v6663_v52 }
 0x297   : > { %v8754_v19 = vsel %vm6779_vm10, 4294967295, %v8753_v19  ;;  %vm6787_vm3 = vmor %vm8755_vm5, %vm1421_vm1  ;;  %vm1428_vm1 = vcmp.eq.s32.totalorder %v3971_v15, %v5573_v26  ;;  %vm8762_vm10 = vnez %v8743_v13  ;;  %v3135_v13 = vpop.f32.mrb[9].mxu0 }
 0x298   : > { %v8757_v7 = vsel %vm6787_vm3, 4294967295, %v8756_v7  ;;  %vm1550_vm0 = vmor %vm6727_vm15, %vm1422_vm12  ;;  %vm380_vm15 = vcmp.eq.s32.totalorder %v3971_v15, %v8760_v1  ;;  %vm376_vm12 = vcmp.eq.s32.totalorder %v3971_v15, %v8761_v54  ;;  %v3136_v42 = vadd.f32 %v3135_v13, %v3134_v60 }
 0x299   : > { %vm6799_vm14 = vmor %vm6747_vm2, %vm1424_vm7  ;;  %vm1776_vm2 = vcmp.eq.s32.totalorder %v3971_v15, %v6561_v51  ;;  %v7054_v63 = vpop.permute.xlu1 %969 }
 0x29a   : > { %v8759_v6 = vsel %vm6799_vm14, 4294967295, %v8758_v6  ;;  %vm1554_vm5 = vmor %vm1202_vm13, %vm1426_vm9  ;;  %vm1780_vm14 = vcmp.eq.s32.totalorder %v3971_v15, %v6663_v52  ;;  %vm1425_vm9 = vcmp.eq.s32.totalorder %v3963_v30, %v5573_v26 }
 0x29b   : > { %vm6813_vm3 = vmor %vm8762_vm10, %vm1423_vm8  ;;  %vm8765_vm8 = vcmp.eq.s32.totalorder %v3971_v15, 500 }
 0x29c   : > { %v8764_v5 = vsel %vm6813_vm3, 4294967295, %v8763_v5  ;;  %vm1902_vm7 = vmor %vm1550_vm0, %vm1774_vm4 }
 0x29d   : > { %vm1906_vm13 = vmor %vm1554_vm5, %vm1778_vm6  ;;  %v3025_v59 = vsel %vm1902_vm7, 1.0, %v8263_v0  ;;  %vm1773_vm6 = vcmp.eq.s32.totalorder %v3963_v30, %v6561_v51  ;;  %vm8771_vm5 = vnez %v8759_v6  ;;  %vm8775_vm7 = vnez %v8754_v19  ;;  %v3246_v19 = vpop.f32.mrb[8].mxu1 }
 0x29e   : > { %v3029_v45 = vsel %vm1906_vm13, 1.0, %v8263_v0  ;;  %vm1556_vm10 = vmor %vm6773_vm11, %vm1428_vm1  ;;  %vm8772_vm13 = vnez %v8748_v43  ;;  %v3137_v43 = vpop.f32.mrb[10].mxu0 }
 0x29f   : > { %vm6829_vm3 = vmor %vm8765_vm8, %vm380_vm15  ;;  %v2246_v9 = vpack.c.bf16 %v3029_v45, %v3025_v59  ;;  %vm1777_vm15 = vcmp.eq.s32.totalorder %v3963_v30, %v6663_v52 }
 0x2a0   : > { %vm8768_vm0 = vmmov %vm8765_vm8 }
 0x2a1   : > { %vm6835_vm4 = vmor %vm8768_vm0, %vm376_vm12  ;;  %2637 = vmatprep.mubr.bf16.mxu0 %v2246_v9  ;;  %vm8773_vm0 = vnez %v8757_v7  ;;  %v3138_v7 = vpop.f32.mrb[11].mxu0 }
 0x2a2   : > { %vm1904_vm11 = vmor %vm8771_vm5, %vm1776_vm2  ;;  %vm1427_vm2 = vcmp.eq.s32.totalorder %v3985_v46, %v5573_v26  ;;  %v3245_v26 = vadd.f32 %v3244_v24, %v3243_v4 }
 0x2a3   : > { %vm1908_vm12 = vmor %vm1556_vm10, %vm1780_vm14  ;;  %v3027_v10 = vsel %vm1904_vm11, 1.0, %v8263_v0  ;;  %vm377_vm14 = vcmp.eq.s32.totalorder %v3963_v30, %v8760_v1  ;;  %vm1775_vm10 = vcmp.eq.s32.totalorder %v3985_v46, %v6561_v51  ;;  %vm729_vm11 = vcmp.eq.s32.totalorder %v3963_v30, %v4186_v33 }
 0x2a4   : > { %v3031_v58 = vsel %vm1908_vm12, 1.0, %v8263_v0  ;;  %vm1553_vm8 = vmor %vm8772_vm13, %vm1425_vm9  ;;  %vm725_vm9 = vcmp.eq.s32.totalorder %v3963_v30, %v8774_v8  ;;  %vm1779_vm12 = vcmp.eq.s32.totalorder %v3985_v46, %v6663_v52  ;;  %v2732_v36 = vadd.f32 %v3245_v26, %v3133_v50 }
 0x2a5   : > { %v2248_v53 = vpack.c.bf16 %v3031_v58, %v3027_v10  ;;  %vm1901_vm5 = vmor %vm8773_vm0, %vm1773_vm6  ;;  %vm730_vm0 = vcmp.eq.s32.totalorder %v3976_v14, %v4186_v33  ;;  %vm731_vm6 = vcmp.eq.s32.totalorder %v3985_v46, %v4186_v33  ;;  %v8816_v10 = vmov 0  ;;  %v8818_v58 = vld [vmem:[#allocation11_spill] sm:$0xff] }
 0x2a6   : > { %vm1905_vm13 = vmor %vm1553_vm8, %vm1777_vm15  ;;  %v3024_v34 = vsel %vm1901_vm5, 1.0, %v8263_v0  ;;  %vm732_vm15 = vcmp.eq.s32.totalorder %v3971_v15, %v4186_v33  ;;  %vm8776_vm8 = vnez %v8764_v5  ;;  %2850 = vst [vmem:[%s6346_s5 + $0x18] sm:$0xff] %v2732_v36  ;;  %v8806_v5 = vmov 0 }
 0x2a7   : > { %2798 = vmatprep.mubr.bf16.mxu1 %v2248_v53  ;;  %v3028_v55 = vsel %vm1905_vm13, 1.0, %v8263_v0  ;;  %vm1555_vm1 = vmor %vm8775_vm7, %vm1427_vm2  ;;  %vm378_vm13 = vcmp.eq.s32.totalorder %v3976_v14, %v8760_v1  ;;  %vm728_vm7 = vcmp.eq.s32.totalorder %v3971_v15, %v8774_v8  ;;  %v8937_v26 = vmov 0 }
 0x2a8   : > { %v2245_v35 = vpack.c.bf16 %v3028_v55, %v3024_v34  ;;  %vm1903_vm5 = vmor %vm8776_vm8, %vm1775_vm10  ;;  %v8830_v34 = vld [vmem:[#allocation26_spill] sm:$0xff] }
 0x2a9   : > { %vm6915_vm10 = vmor %vm377_vm14, %vm729_vm11  ;;  %vm8781_vm14 = vcmp.eq.s32.totalorder %v3963_v30, %v8761_v54  ;;  %v3026_v28 = vsel %vm1903_vm5, 1.0, %v8263_v0 }
 0x2aa   : > { %vm1907_vm8 = vmor %vm1555_vm1, %vm1779_vm12  ;;  %2638 = vmatmul.mubr.bf16.gmra.mrb[40].mxu0 %v2245_v35  ;;  %vm379_vm1 = vcmp.eq.s32.totalorder %v3985_v46, %v8760_v1  ;;  %v3247_v1 = vpop.f32.mrb[9].mxu1  ;;  %v3140_v35 = vpop.f32.mrb[12].mxu0 }
 0x2ab   : > { %vm6927_vm2 = vmor %vm378_vm13, %vm730_vm0  ;;  %v3030_v23 = vsel %vm1907_vm8, 1.0, %v8263_v0  ;;  %vm8787_vm0 = vcmp.eq.s32.totalorder %v3976_v14, %v8761_v54  ;;  %vm1077_vm13 = vcmp.eq.s32.totalorder %v3963_v30, %v961_v20  ;;  %vm8793_vm8 = vcmp.eq.s32.totalorder %v3985_v46, %v8761_v54  ;;  %v3249_v45 = vpop.f32.mrb[10].mxu1  ;;  %v3141_v52 = vpop.f32.mrb[13].mxu0 }
 0x2ac   : > { %vm6937_vm11 = vmor %vm8781_vm14, %vm725_vm9  ;;  %vm8786_vm9 = vcmp.eq.s32.totalorder %v3976_v14, %v8774_v8  ;;  %v2247_v32 = vpack.c.bf16 %v3030_v23, %v3026_v28  ;;  %v3139_v54 = vadd.f32 %v3138_v7, %v3137_v43  ;;  %v3248_v59 = vadd.f32 %v3247_v1, %v3246_v19  ;;  %v3143_v22 = vpop.f32.mrb[14].mxu0 }
 0x2ad   : > { %vm6951_vm12 = vmor %vm6829_vm3, %vm732_vm15  ;;  %vm8792_vm15 = vcmp.eq.s32.totalorder %v3985_v46, %v8774_v8  ;;  %v7114_v8 = vpop.permute.xlu1 %1321  ;;  %v3142_v36 = vadd.f32 %v3141_v52, %v3140_v35  ;;  %v8853_v7 = vmov 0  ;;  %v8935_v35 = vmov 0 }
 0x2ae   : > { %vm6961_vm5 = vmor %vm8787_vm0, %vm8786_vm9  ;;  %vm1078_vm9 = vcmp.eq.s32.totalorder %v3976_v14, %v961_v20  ;;  %2799 = vmatmul.mubr.bf16.gmra.mrb[40].mxu1 %v2247_v32  ;;  %vm1080_vm0 = vcmp.eq.s32.totalorder %v3971_v15, %v961_v20  ;;  %v2737_v9 = vadd.f32 %v3248_v59, %v3136_v42  ;;  %v7209_v32 = vpop.permute.xlu0 %972  ;;  %v8945_v28 = vmov 0 }
 0x2af   : > { %vm6969_vm3 = vmor %vm379_vm1, %vm731_vm6  ;;  %vm1079_vm1 = vcmp.eq.s32.totalorder %v3985_v46, %v961_v20 }
 0x2b0   : > { %vm6979_vm14 = vmor %vm8793_vm8, %vm8792_vm15  ;;  %vm1084_vm8 = vcmp.eq.s32.totalorder %v3971_v15, %v6735_v61  ;;  %2851 = vst [vmem:[%s6346_s5 + $0x20] sm:$0xff] %v2737_v9 }
 0x2b1   : > { %vm6990_vm6 = vmor %vm6835_vm4, %vm728_vm7  ;;  %vm1081_vm7 = vcmp.eq.s32.totalorder %v3963_v30, %v6735_v61  ;;  %v7177_v47 = vpop.permute.xlu1 %1670 }
 0x2b2   : > { %vm6998_vm15 = vmor %vm6937_vm11, %vm1077_vm13  ;;  %vm1082_vm13 = vcmp.eq.s32.totalorder %v3976_v14, %v6735_v61  ;;  %v7269_v1 = vpop.permute.xlu0 %981 }
 0x2b3   : > { %vm7006_vm4 = vmor %vm6961_vm5, %vm1078_vm9 }
 0x2b4   : > { %vm7014_vm11 = vmor %vm6979_vm14, %vm1079_vm1  ;;  %vm1083_vm14 = vcmp.eq.s32.totalorder %v3985_v46, %v6735_v61  ;;  %vm1430_vm1 = vcmp.eq.s32.totalorder %v3976_v14, %v6795_v44  ;;  %v3250_v61 = vpop.f32.mrb[11].mxu1 }
 0x2b5   : > { %vm7022_vm5 = vmor %vm6990_vm6, %vm1080_vm0  ;;  %vm1429_vm6 = vcmp.eq.s32.totalorder %v3963_v30, %v6795_v44  ;;  %v3251_v25 = vadd.f32 %v3250_v61, %v3249_v45  ;;  %v3252_v13 = vpop.f32.mrb[12].mxu1  ;;  %v7261_v43 = vpop.permute.xlu1 %620 }
 0x2b6   : > { %vm7032_vm9 = vmor %vm6915_vm10, %vm1081_vm7  ;;  %vm1432_vm10 = vcmp.eq.s32.totalorder %v3971_v15, %v6795_v44  ;;  %v3253_v42 = vpop.f32.mrb[13].mxu1  ;;  %v1674_v9 = vpop.permute.xlu0 %1673 }
 0x2b7   : > { %v8807_v5 = vsel %vm7032_vm9, 4294967295, %v8806_v5  ;;  %vm7042_vm0 = vmor %vm6927_vm2, %vm1082_vm13  ;;  %vm1431_vm13 = vcmp.eq.s32.totalorder %v3985_v46, %v6795_v44  ;;  %vm1782_vm9 = vcmp.eq.s32.totalorder %v3976_v14, %v6843_v56  ;;  %v2740_v44 = vadd.f32 %v3251_v25, %v3139_v54  ;;  %v3255_v19 = vpop.f32.mrb[14].mxu1 }
 0x2b8   : > { %vm7050_vm7 = vmor %vm6951_vm12, %vm1084_vm8  ;;  %v3254_v49 = vadd.f32 %v3253_v42, %v3252_v13  ;;  %v3256_v6 = vpop.f32.mrb[15].mxu1  ;;  %v8855_v54 = vmov 0  ;;  %v8865_v25 = vmov 0 }
 0x2b9   : > { %v8811_v31 = vsel %vm7050_vm7, 4294967295, %v8810_v31  ;;  %vm7058_vm2 = vmor %vm6969_vm3, %vm1083_vm14  ;;  %vm1434_vm3 = vcmp.eq.s32.totalorder %v3976_v14, %v5671_v41  ;;  %2852 = vst [vmem:[%s6346_s5 + $0x28] sm:$0xff] %v2740_v44  ;;  %v3257_v59 = vadd.f32 %v3256_v6, %v3255_v19  ;;  %v8903_v19 = vmov 0 }
 0x2ba   : > { %v8813_v2 = vsel %vm7058_vm2, 4294967295, %v8812_v2  ;;  %vm7066_vm12 = vmor %vm6998_vm15, %vm1429_vm6  ;;  %vm1786_vm15 = vcmp.eq.s32.totalorder %v3976_v14, %v6899_v11  ;;  %v7501_v42 = vpop.permute.xlu0 %1682 }
 0x2bb   : > { %v8815_v27 = vsel %vm7066_vm12, 4294967295, %v8814_v27  ;;  %vm1558_vm8 = vmor %vm7006_vm4, %vm1430_vm1  ;;  %vm388_vm4 = vcmp.eq.s32.totalorder %v3971_v15, %v8818_v58  ;;  %vm384_vm1 = vcmp.eq.s32.totalorder %v3971_v15, %v8819_v57  ;;  %vm1436_vm12 = vcmp.eq.s32.totalorder %v3971_v15, %v5671_v41 }
 0x2bc   : > { %vm7078_vm14 = vmor %vm7022_vm5, %vm1432_vm10  ;;  %vm1784_vm10 = vcmp.eq.s32.totalorder %v3971_v15, %v6843_v56 }
 0x2bd   : > { %v8817_v10 = vsel %vm7078_vm14, 4294967295, %v8816_v10  ;;  %vm1562_vm6 = vmor %vm7042_vm0, %vm1434_vm3  ;;  %vm1788_vm0 = vcmp.eq.s32.totalorder %v3971_v15, %v6899_v11  ;;  %vm8822_vm14 = vcmp.eq.s32.totalorder %v3971_v15, 500 }
 0x2be   : > { %vm7093_vm5 = vmor %vm7014_vm11, %vm1431_vm13  ;;  %vm8825_vm11 = vnez %v8811_v31  ;;  %vm1781_vm13 = vcmp.eq.s32.totalorder %v3963_v30, %v6843_v56 }
 0x2bf   : > { %vm1910_vm2 = vmor %vm1558_vm8, %vm1782_vm9 }
 0x2c0   : > { %vm1914_vm3 = vmor %vm1562_vm6, %vm1786_vm15  ;;  %v3033_v39 = vsel %vm1910_vm2, 1.0, %v8263_v0  ;;  %vm1785_vm6 = vcmp.eq.s32.totalorder %v3963_v30, %v6899_v11 }
 0x2c1   : > { %vm7106_vm7 = vmor %vm8822_vm14, %vm388_vm4  ;;  %v3037_v50 = vsel %vm1914_vm3, 1.0, %v8263_v0  ;;  %vm1787_vm4 = vcmp.eq.s32.totalorder %v3985_v46, %v6899_v11  ;;  %v8893_v11 = vmov 0 }
 0x2c2   : > { %vm1564_vm9 = vmor %vm8825_vm11, %vm1436_vm12  ;;  %v2250_v4 = vpack.c.bf16 %v3037_v50, %v3033_v39  ;;  %vm1433_vm12 = vcmp.eq.s32.totalorder %v3963_v30, %v5671_v41  ;;  %vm737_vm11 = vcmp.eq.s32.totalorder %v3963_v30, %v8830_v34 }
 0x2c3   : > { %vm8826_vm8 = vmmov %vm8822_vm14  ;;  %vm8829_vm14 = vnez %v8817_v10 }
 0x2c4   : > { %vm7120_vm15 = vmor %vm8826_vm8, %vm384_vm1  ;;  %2645 = vmatprep.mubr.bf16.mxu0 %v2250_v4 }
 0x2c5   : > { %vm1912_vm2 = vmor %vm8829_vm14, %vm1784_vm10  ;;  %vm8831_vm10 = vnez %v8807_v5  ;;  %vm385_vm14 = vcmp.eq.s32.totalorder %v3963_v30, %v8818_v58  ;;  %v2745_v5 = vadd.f32 %v3254_v49, %v3142_v36 }
 0x2c6   : > { %vm1916_vm3 = vmor %vm1564_vm9, %vm1788_vm0  ;;  %v3035_v55 = vsel %vm1912_vm2, 1.0, %v8263_v0  ;;  %vm738_vm0 = vcmp.eq.s32.totalorder %v3976_v14, %v8830_v34  ;;  %vm8832_vm2 = vnez %v8815_v27 }
 0x2c7   : > { %v3039_v24 = vsel %vm1916_vm3, 1.0, %v8263_v0  ;;  %vm1561_vm8 = vmor %vm8831_vm10, %vm1433_vm12  ;;  %vm386_vm3 = vcmp.eq.s32.totalorder %v3976_v14, %v8818_v58  ;;  %vm1435_vm10 = vcmp.eq.s32.totalorder %v3985_v46, %v5671_v41  ;;  %2853 = vst [vmem:[%s6346_s5 + $0x30] sm:$0xff] %v2745_v5 }
 0x2c8   : > { %v2252_v20 = vpack.c.bf16 %v3039_v24, %v3035_v55  ;;  %vm1909_vm1 = vmor %vm8832_vm2, %vm1781_vm13  ;;  %vm740_vm2 = vcmp.eq.s32.totalorder %v3971_v15, %v8830_v34  ;;  %vm734_vm13 = vcmp.eq.s32.totalorder %v3976_v14, %v8833_v40  ;;  %v8875_v55 = vld [vmem:[#allocation15_spill] sm:$0xff] }
 0x2c9   : > { %vm1913_vm9 = vmor %vm1561_vm8, %vm1785_vm6  ;;  %v3032_v41 = vsel %vm1909_vm1, 1.0, %v8263_v0  ;;  %vm8836_vm6 = vnez %v8813_v2 }
 0x2ca   : > { %vm7169_vm12 = vmor %vm385_vm14, %vm737_vm11  ;;  %2806 = vmatprep.mubr.bf16.mxu1 %v2252_v20  ;;  %v3036_v51 = vsel %vm1913_vm9, 1.0, %v8263_v0  ;;  %vm387_vm11 = vcmp.eq.s32.totalorder %v3985_v46, %v8818_v58  ;;  %vm8839_vm14 = vcmp.eq.s32.totalorder %v3985_v46, %v6843_v56  ;;  %v3144_v56 = vpop.f32.mrb[15].mxu0 }
 0x2cb   : > { %vm1563_vm8 = vmor %vm8836_vm6, %vm1435_vm10  ;;  %v2249_v23 = vpack.c.bf16 %v3036_v51, %v3032_v41  ;;  %vm735_vm6 = vcmp.eq.s32.totalorder %v3985_v46, %v8833_v40  ;;  %v3145_v60 = vadd.f32 %v3144_v56, %v3143_v22  ;;  %v8882_v41 = vmov 0 }
 0x2cc   : > { %vm7189_vm1 = vmor %vm386_vm3, %vm738_vm0  ;;  %vm8840_vm0 = vcmp.eq.s32.totalorder %v3985_v46, %v8830_v34  ;;  %v8884_v51 = vmov 0  ;;  %v8950_v22 = vmov 0 }
 0x2cd   : > { %vm1911_vm9 = vmor %vm7093_vm5, %vm8839_vm14  ;;  %vm736_vm14 = vcmp.eq.s32.totalorder %v3971_v15, %v8833_v40  ;;  %2646 = vmatmul.mubr.bf16.gmra.mrb[44].mxu0 %v2249_v23  ;;  %v2748_v12 = vadd.f32 %v3257_v59, %v3145_v60  ;;  %v3146_v23 = vpop.f32.mrb[16].mxu0 }
 0x2ce   : > { %vm7205_vm3 = vmor %vm387_vm11, %vm8840_vm0  ;;  %vm8845_vm11 = vcmp.eq.s32.totalorder %v3963_v30, %v8833_v40  ;;  %vm8846_vm0 = vcmp.eq.s32.totalorder %v3963_v30, %v8819_v57  ;;  %v3034_v17 = vsel %vm1911_vm9, 1.0, %v8263_v0  ;;  %vm8850_vm9 = vcmp.eq.s32.totalorder %v3985_v46, %v8819_v57  ;;  %v8879_v40 = vld [vmem:[#allocation12_spill] sm:$0xff]  ;;  %v3147_v36 = vpop.f32.mrb[17].mxu0 }
 0x2cf   : > { %vm1915_vm5 = vmor %vm1563_vm8, %vm1787_vm4  ;;  %vm1086_vm8 = vcmp.eq.s32.totalorder %v3976_v14, %v7002_v29  ;;  %2854 = vst [vmem:[%s6346_s5 + $0x38] sm:$0xff] %v2748_v12  ;;  %v3148_v56 = vadd.f32 %v3147_v36, %v3146_v23  ;;  %v3149_v3 = vpop.f32.mrb[18].mxu0  ;;  %v8909_v12 = vld [vmem:[#allocation17_spill] sm:$0xff] }
 0x2d0   : > { %vm7221_vm10 = vmor %vm7106_vm7, %vm740_vm2  ;;  %v3038_v33 = vsel %vm1915_vm5, 1.0, %v8263_v0  ;;  %vm8849_vm7 = vcmp.eq.s32.totalorder %v3976_v14, %v8819_v57 }
 0x2d1   : > { %vm7231_vm4 = vmor %vm8846_vm0, %vm8845_vm11  ;;  %v2251_v16 = vpack.c.bf16 %v3038_v33, %v3034_v17  ;;  %vm1088_vm11 = vcmp.eq.s32.totalorder %v3971_v15, %v7002_v29  ;;  %vm1089_vm0 = vcmp.eq.s32.totalorder %v3963_v30, %v7054_v63  ;;  %v3150_v17 = vpop.f32.mrb[19].mxu0 }
 0x2d2   : > { %vm862_vm2 = vmor %vm8849_vm7, %vm734_vm13  ;;  %vm1090_vm7 = vcmp.eq.s32.totalorder %v3976_v14, %v7054_v63  ;;  %v3151_v60 = vadd.f32 %v3150_v17, %v3149_v3  ;;  %v3152_v17 = vpop.f32.mrb[20].mxu0 }
 0x2d3   : > { %vm7251_vm5 = vmor %vm8850_vm9, %vm735_vm6  ;;  %2807 = vmatmul.mubr.bf16.gmra.mrb[44].mxu1 %v2251_v16  ;;  %vm1091_vm9 = vcmp.eq.s32.totalorder %v3985_v46, %v7054_v63  ;;  %v8897_v16 = vmov 0 }
 0x2d4   : > { %vm864_vm13 = vmor %vm7120_vm15, %vm736_vm14  ;;  %vm1085_vm15 = vcmp.eq.s32.totalorder %v3963_v30, %v7002_v29 }
 0x2d5   : > { %vm7263_vm6 = vmor %vm862_vm2, %vm1086_vm8  ;;  %vm1092_vm2 = vcmp.eq.s32.totalorder %v3971_v15, %v7054_v63  ;;  %v8863_v63 = vmov 0 }
 0x2d6   : > { %v8854_v7 = vsel %vm7263_vm6, 4294967295, %v8853_v7  ;;  %vm7273_vm14 = vmor %vm864_vm13, %vm1088_vm11  ;;  %vm1441_vm11 = vcmp.eq.s32.totalorder %v3963_v30, %v7114_v8  ;;  %vm1087_vm13 = vcmp.eq.s32.totalorder %v3985_v46, %v7002_v29  ;;  %v7312_v29 = vpop.permute.xlu1 %623 }
 0x2d7   : > { %v8856_v54 = vsel %vm7273_vm14, 4294967295, %v8855_v54  ;;  %vm1217_vm8 = vmor %vm7169_vm12, %vm1089_vm0 }
 0x2d8   : > { %vm7285_vm6 = vmor %vm7189_vm1, %vm1090_vm7  ;;  %vm1442_vm1 = vcmp.eq.s32.totalorder %v3976_v14, %v7114_v8  ;;  %vm1444_vm7 = vcmp.eq.s32.totalorder %v3971_v15, %v7114_v8 }
 0x2d9   : > { %vm7296_vm14 = vmor %vm7231_vm4, %vm1085_vm15  ;;  %vm1443_vm4 = vcmp.eq.s32.totalorder %v3985_v46, %v7114_v8 }
 0x2da   : > { %vm7302_vm12 = vmor %vm7205_vm3, %vm1091_vm9  ;;  %vm1790_vm9 = vcmp.eq.s32.totalorder %v3976_v14, %v7177_v47  ;;  %v7352_v44 = vpop.permute.xlu1 %975 }
 0x2db   : > { %vm1220_vm0 = vmor %vm7221_vm10, %vm1092_vm2  ;;  %vm1438_vm2 = vcmp.eq.s32.totalorder %v3976_v14, %v5763_v48 }
 0x2dc   : > { %vm7317_vm15 = vmor %vm1217_vm8, %vm1441_vm11  ;;  %vm1794_vm8 = vcmp.eq.s32.totalorder %v3976_v14, %v1674_v9 }
 0x2dd   : > { %v8864_v63 = vsel %vm7317_vm15, 4294967295, %v8863_v63  ;;  %vm7323_vm3 = vmor %vm7251_vm5, %vm1087_vm13  ;;  %vm1440_vm15 = vcmp.eq.s32.totalorder %v3971_v15, %v5763_v48 }
 0x2de   : > { %v8866_v25 = vsel %vm7323_vm3, 4294967295, %v8865_v25  ;;  %vm1570_vm10 = vmor %vm7285_vm6, %vm1442_vm1  ;;  %vm8871_vm6 = vnez %v8854_v7  ;;  %vm1792_vm1 = vcmp.eq.s32.totalorder %v3971_v15, %v7177_v47  ;;  %v7376_v8 = vpop.permute.xlu1 %1324  ;;  %v8905_v7 = vmov 0 }
 0x2df   : > { %vm7334_vm11 = vmor %vm1220_vm0, %vm1444_vm7  ;;  %vm1796_vm0 = vcmp.eq.s32.totalorder %v3971_v15, %v1674_v9 }
 0x2e0   : > { %vm7340_vm5 = vmor %vm7302_vm12, %vm1443_vm4  ;;  %vm8872_vm12 = vnez %v8856_v54 }
 0x2e1   : > { %vm1566_vm13 = vmor %vm8871_vm6, %vm1438_vm2  ;;  %vm1789_vm2 = vcmp.eq.s32.totalorder %v3963_v30, %v7177_v47  ;;  %vm1437_vm6 = vcmp.eq.s32.totalorder %v3963_v30, %v5763_v48 }
 0x2e2   : > { %vm1918_vm3 = vmor %vm1566_vm13, %vm1790_vm9  ;;  %vm1793_vm13 = vcmp.eq.s32.totalorder %v3963_v30, %v1674_v9  ;;  %v7389_v20 = vpop.permute.xlu1 %1676 }
 0x2e3   : > { %vm1922_vm7 = vmor %vm1570_vm10, %vm1794_vm8  ;;  %v3041_v10 = vsel %vm1918_vm3, 1.0, %v8263_v0  ;;  %vm1791_vm10 = vcmp.eq.s32.totalorder %v3985_v46, %v7177_v47 }
 0x2e4   : > { %v3045_v58 = vsel %vm1922_vm7, 1.0, %v8263_v0  ;;  %vm1568_vm4 = vmor %vm8872_vm12, %vm1440_vm15  ;;  %vm1795_vm7 = vcmp.eq.s32.totalorder %v3985_v46, %v1674_v9 }
 0x2e5   : > { %v2254_v57 = vpack.c.bf16 %v3045_v58, %v3041_v10  ;;  %vm1920_vm9 = vmor %vm1568_vm4, %vm1792_vm1  ;;  %vm1439_vm1 = vcmp.eq.s32.totalorder %v3985_v46, %v5763_v48 }
 0x2e6   : > { %vm1924_vm3 = vmor %vm7334_vm11, %vm1796_vm0  ;;  %v3043_v21 = vsel %vm1920_vm9, 1.0, %v8263_v0  ;;  %vm8873_vm11 = vnez %v8864_v63  ;;  %vm392_vm9 = vcmp.eq.s32.totalorder %v3971_v15, %v8875_v55  ;;  %v7427_v47 = vpop.permute.xlu1 %1679  ;;  %v627_v63 = vpop.permute.xlu0 %626 }
 0x2e7   : > { %2653 = vmatprep.mubr.bf16.mxu0 %v2254_v57  ;;  %v3047_v53 = vsel %vm1924_vm3, 1.0, %v8263_v0  ;;  %vm1565_vm15 = vmor %vm7296_vm14, %vm1437_vm6  ;;  %vm8874_vm14 = vnez %v8866_v25  ;;  %vm741_vm6 = vcmp.eq.s32.totalorder %v3963_v30, %v7261_v43  ;;  %vm8876_vm3 = vcmp.eq.s32.totalorder %v3971_v15, 500 }
 0x2e8   : > { %v2256_v39 = vpack.c.bf16 %v3047_v53, %v3043_v21  ;;  %vm1917_vm8 = vmor %vm1565_vm15, %vm1789_vm2  ;;  %v8921_v53 = vld [vmem:[#allocation14_spill] sm:$0xff] }
 0x2e9   : > { %vm1921_vm0 = vmor %vm8873_vm11, %vm1793_vm13  ;;  %v3040_v50 = vsel %vm1917_vm8, 1.0, %v8263_v0  ;;  %vm742_vm13 = vcmp.eq.s32.totalorder %v3976_v14, %v7261_v43  ;;  %vm390_vm8 = vcmp.eq.s32.totalorder %v3976_v14, %v8875_v55  ;;  %vm396_vm11 = vcmp.eq.s32.totalorder %v3971_v15, %v8879_v40 }
 0x2ea   : > { %2814 = vmatprep.mubr.bf16.mxu1 %v2256_v39  ;;  %v3044_v18 = vsel %vm1921_vm0, 1.0, %v8263_v0  ;;  %vm1567_vm12 = vmor %vm8874_vm14, %vm1439_vm1  ;;  %vm744_vm1 = vcmp.eq.s32.totalorder %v3971_v15, %v7261_v43  ;;  %vm391_vm0 = vcmp.eq.s32.totalorder %v3985_v46, %v8875_v55  ;;  %v7463_v37 = vpop.permute.xlu1 %629  ;;  %v7747_v36 = vpop.permute.xlu0 %635 }
 0x2eb   : > { %v2253_v4 = vpack.c.bf16 %v3044_v18, %v3040_v50  ;;  %vm1919_vm4 = vmor %vm1567_vm12, %vm1791_vm10  ;;  %vm743_vm10 = vcmp.eq.s32.totalorder %v3985_v46, %v7261_v43 }
 0x2ec   : > { %vm1923_vm2 = vmor %vm7340_vm5, %vm1795_vm7  ;;  %v3042_v48 = vsel %vm1919_vm4, 1.0, %v8263_v0  ;;  %vm389_vm5 = vcmp.eq.s32.totalorder %v3963_v30, %v8875_v55  ;;  %vm745_vm4 = vcmp.eq.s32.totalorder %v3963_v30, %v7312_v29 }
 0x2ed   : > { %2654 = vmatmul.mubr.bf16.gmra.mrb[48].mxu0 %v2253_v4  ;;  %v3046_v34 = vsel %vm1923_vm2, 1.0, %v8263_v0  ;;  %vm520_vm15 = vmor %vm8876_vm3, %vm392_vm9  ;;  %vm746_vm9 = vcmp.eq.s32.totalorder %v3976_v14, %v7312_v29  ;;  %v8985_v4 = vmov 0 }
 0x2ee   : > { %v2255_v24 = vpack.c.bf16 %v3046_v34, %v3042_v48  ;;  %vm7403_vm7 = vmor %vm389_vm5, %vm741_vm6  ;;  %vm393_vm6 = vcmp.eq.s32.totalorder %v3963_v30, %v8879_v40  ;;  %v7521_v6 = vpop.permute.xlu1 %978  ;;  %v1337_v39 = vpop.permute.xlu0 %1336 }
 0x2ef   : > { %vm7411_vm14 = vmor %vm390_vm8, %vm742_vm13 }
 0x2f0   : > { %2815 = vmatmul.mubr.bf16.gmra.mrb[48].mxu1 %v2255_v24  ;;  %vm7415_vm12 = vmor %vm391_vm0, %vm743_vm10  ;;  %vm748_vm10 = vcmp.eq.s32.totalorder %v3971_v15, %v7312_v29  ;;  %v8992_v24 = vmov 0 }
 0x2f1   : > { %v8883_v41 = vsel %vm7415_vm12, 4294967295, %v8882_v41  ;;  %vm7421_vm2 = vmor %vm520_vm15, %vm744_vm1  ;;  %vm394_vm15 = vcmp.eq.s32.totalorder %v3976_v14, %v8879_v40  ;;  %vm395_vm1 = vcmp.eq.s32.totalorder %v3985_v46, %v8879_v40  ;;  %vm1094_vm12 = vcmp.eq.s32.totalorder %v3976_v14, %v7209_v32 }
 0x2f2   : > { %v8885_v51 = vsel %vm7421_vm2, 4294967295, %v8884_v51  ;;  %vm8886_vm13 = vmmov %vm8876_vm3  ;;  %vm747_vm3 = vcmp.eq.s32.totalorder %v3985_v46, %v7312_v29  ;;  %vm1100_vm2 = vcmp.eq.s32.totalorder %v3971_v15, %v7352_v44  ;;  %v7566_v27 = vpop.permute.xlu1 %1330 }
 0x2f3   : > { %vm524_vm5 = vmor %vm8886_vm13, %vm396_vm11  ;;  %vm1098_vm11 = vcmp.eq.s32.totalorder %v3976_v14, %v7352_v44 }
 0x2f4   : > { %vm7439_vm8 = vmor %vm393_vm6, %vm745_vm4  ;;  %vm1093_vm4 = vcmp.eq.s32.totalorder %v3963_v30, %v7209_v32 }
 0x2f5   : > { %vm874_vm0 = vmor %vm394_vm15, %vm746_vm9  ;;  %vm1097_vm9 = vcmp.eq.s32.totalorder %v3963_v30, %v7352_v44 }
 0x2f6   : > { %vm7447_vm13 = vmor %vm395_vm1, %vm747_vm3  ;;  %vm1095_vm3 = vcmp.eq.s32.totalorder %v3985_v46, %v7209_v32 }
 0x2f7   : > { %vm876_vm6 = vmor %vm524_vm5, %vm748_vm10  ;;  %vm1096_vm5 = vcmp.eq.s32.totalorder %v3971_v15, %v7209_v32  ;;  %v3258_v32 = vpop.f32.mrb[16].mxu1 }
 0x2f8   : > { %vm7459_vm15 = vmor %vm874_vm0, %vm1098_vm11  ;;  %vm1099_vm0 = vcmp.eq.s32.totalorder %v3985_v46, %v7352_v44  ;;  %v3259_v38 = vpop.f32.mrb[17].mxu1 }
 0x2f9   : > { %vm7467_vm1 = vmor %vm876_vm6, %vm1100_vm2  ;;  %vm1445_vm6 = vcmp.eq.s32.totalorder %v3963_v30, %v7376_v8  ;;  %v3260_v43 = vadd.f32 %v3259_v38, %v3258_v32  ;;  %v3261_v49 = vpop.f32.mrb[18].mxu1  ;;  %v8965_v38 = vld [vmem:[#allocation18_spill] sm:$0xff] }
 0x2fa   : > { %v8894_v11 = vsel %vm7467_vm1, 4294967295, %v8893_v11  ;;  %vm7475_vm10 = vmor %vm7403_vm7, %vm1093_vm4  ;;  %vm1446_vm7 = vcmp.eq.s32.totalorder %v3976_v14, %v7376_v8  ;;  %vm8899_vm4 = vnez %v8883_v41  ;;  %v3262_v54 = vpop.f32.mrb[19].mxu1  ;;  %v9006_v41 = vmov 0 }
 0x2fb   : > { %vm7483_vm2 = vmor %vm7439_vm8, %vm1097_vm9  ;;  %vm1448_vm8 = vcmp.eq.s32.totalorder %v3971_v15, %v7376_v8  ;;  %v2753_v59 = vadd.f32 %v3260_v43, %v3148_v56  ;;  %v3263_v45 = vadd.f32 %v3262_v54, %v3261_v49  ;;  %v8955_v56 = vld [vmem:[#allocation16_spill] sm:$0xff]  ;;  %v3264_v49 = vpop.f32.mrb[20].mxu1 }
 0x2fc   : > { %v8898_v16 = vsel %vm7483_vm2, 4294967295, %v8897_v16  ;;  %vm1222_vm11 = vmor %vm7411_vm14, %vm1094_vm12  ;;  %vm8902_vm14 = vnez %v8885_v51 }
 0x2fd   : > { %vm7495_vm1 = vmor %vm8899_vm4, %vm1095_vm3  ;;  %vm1447_vm3 = vcmp.eq.s32.totalorder %v3985_v46, %v7376_v8  ;;  %2855 = vst [vmem:[%s6346_s5 + $0x40] sm:$0xff] %v2753_v59  ;;  %v2756_v31 = vadd.f32 %v3263_v45, %v3151_v60  ;;  %v7623_v8 = vpop.permute.xlu1 %1333  ;;  %v3153_v60 = vpop.f32.mrb[21].mxu0 }
 0x2fe   : > { %vm1224_vm12 = vmor %vm8902_vm14, %vm1096_vm5  ;;  %vm1798_vm5 = vcmp.eq.s32.totalorder %v3976_v14, %v7389_v20  ;;  %v3154_v32 = vadd.f32 %v3153_v60, %v3152_v17  ;;  %v3155_v13 = vpop.f32.mrb[22].mxu0  ;;  %v3265_v59 = vpop.f32.mrb[21].mxu1 }
 0x2ff   : > { %vm7507_vm9 = vmor %vm7447_vm13, %vm1099_vm0  ;;  %vm1450_vm13 = vcmp.eq.s32.totalorder %v3976_v14, %v5853_v62  ;;  %2856 = vst [vmem:[%s6346_s5 + $0x48] sm:$0xff] %v2756_v31  ;;  %v3266_v61 = vadd.f32 %v3265_v59, %v3264_v49  ;;  %v3267_v31 = vpop.f32.mrb[22].mxu1 }
 0x300   : > { %v8904_v19 = vsel %vm7507_vm9, 4294967295, %v8903_v19  ;;  %vm7515_vm4 = vmor %vm7475_vm10, %vm1445_vm6  ;;  %vm1802_vm10 = vcmp.eq.s32.totalorder %v3976_v14, %v7427_v47  ;;  %vm1804_vm9 = vcmp.eq.s32.totalorder %v3971_v15, %v7427_v47 }
 0x301   : > { %v8906_v7 = vsel %vm7515_vm4, 4294967295, %v8905_v7  ;;  %vm1574_vm2 = vmor %vm1222_vm11, %vm1446_vm7  ;;  %vm400_vm11 = vcmp.eq.s32.totalorder %v3971_v15, %v8909_v12  ;;  %v7679_v40 = vpop.permute.xlu1 %1685 }
 0x302   : > { %vm7525_vm0 = vmor %vm1224_vm12, %vm1448_vm8  ;;  %vm1800_vm8 = vcmp.eq.s32.totalorder %v3971_v15, %v7389_v20  ;;  %vm1452_vm12 = vcmp.eq.s32.totalorder %v3971_v15, %v5853_v62 }
 0x303   : > { %vm1578_vm6 = vmor %vm7459_vm15, %vm1450_vm13  ;;  %vm8912_vm15 = vcmp.eq.s32.totalorder %v3971_v15, 500 }
 0x304   : > { %vm7537_vm7 = vmor %vm7495_vm1, %vm1447_vm3  ;;  %vm8915_vm1 = vnez %v8894_v11  ;;  %vm1797_vm3 = vcmp.eq.s32.totalorder %v3963_v30, %v7389_v20 }
 0x305   : > { %vm1926_vm14 = vmor %vm1574_vm2, %vm1798_vm5  ;;  %v7715_v52 = vpop.permute.xlu1 %632 }
 0x306   : > { %vm1930_vm4 = vmor %vm1578_vm6, %vm1802_vm10  ;;  %v3049_v9 = vsel %vm1926_vm14, 1.0, %v8263_v0  ;;  %vm1449_vm10 = vcmp.eq.s32.totalorder %v3963_v30, %v5853_v62  ;;  %vm749_vm6 = vcmp.eq.s32.totalorder %v3963_v30, %v627_v63  ;;  %vm8916_vm14 = vnez %v8898_v16 }
 0x307   : > { %vm7550_vm13 = vmor %vm8912_vm15, %vm400_vm11  ;;  %v3053_v25 = vsel %vm1930_vm4, 1.0, %v8263_v0  ;;  %vm1801_vm4 = vcmp.eq.s32.totalorder %v3963_v30, %v7427_v47 }
 0x308   : > { %vm1580_vm2 = vmor %vm8915_vm1, %vm1452_vm12  ;;  %v2258_v2 = vpack.c.bf16 %v3053_v25, %v3049_v9  ;;  %vm397_vm1 = vcmp.eq.s32.totalorder %v3963_v30, %v8909_v12  ;;  %v3268_v9 = vpop.f32.mrb[23].mxu1  ;;  %v8978_v25 = vmov 0 }
 0x309   : > { %vm1928_vm5 = vmor %vm7525_vm0, %vm1800_vm8  ;;  %vm750_vm0 = vcmp.eq.s32.totalorder %v3976_v14, %v627_v63  ;;  %vm1799_vm8 = vcmp.eq.s32.totalorder %v3985_v46, %v7389_v20  ;;  %v8996_v20 = vmov 0 }
 0x30a   : > { %vm1932_vm11 = vmor %vm1580_vm2, %vm1804_vm9  ;;  %2661 = vmatprep.mubr.bf16.mxu0 %v2258_v2  ;;  %v3051_v10 = vsel %vm1928_vm5, 1.0, %v8263_v0  ;;  %vm8917_vm9 = vnez %v8906_v7  ;;  %vm1451_vm2 = vcmp.eq.s32.totalorder %v3985_v46, %v5853_v62 }
 0x30b   : > { %v3055_v44 = vsel %vm1932_vm11, 1.0, %v8263_v0  ;;  %vm1577_vm12 = vmor %vm8916_vm14, %vm1449_vm10  ;;  %vm398_vm14 = vcmp.eq.s32.totalorder %v3976_v14, %v8909_v12  ;;  %vm8920_vm10 = vnez %v8904_v19  ;;  %v3156_v19 = vpop.f32.mrb[23].mxu0 }
 0x30c   : > { %v2260_v58 = vpack.c.bf16 %v3055_v44, %v3051_v10  ;;  %vm1925_vm15 = vmor %vm8917_vm9, %vm1797_vm3  ;;  %vm752_vm3 = vcmp.eq.s32.totalorder %v3971_v15, %v627_v63  ;;  %v3157_v45 = vadd.f32 %v3156_v19, %v3155_v13  ;;  %v3269_v10 = vadd.f32 %v3268_v9, %v3267_v31 }
 0x30d   : > { %vm1929_vm11 = vmor %vm1577_vm12, %vm1801_vm4  ;;  %v3048_v62 = vsel %vm1925_vm15, 1.0, %v8263_v0  ;;  %vm404_vm4 = vcmp.eq.s32.totalorder %v3971_v15, %v8921_v53  ;;  %vm399_vm12 = vcmp.eq.s32.totalorder %v3985_v46, %v8909_v12 }
 0x30e   : > { %vm7600_vm9 = vmor %vm397_vm1, %vm749_vm6  ;;  %2822 = vmatprep.mubr.bf16.mxu1 %v2260_v58  ;;  %v3052_v21 = vsel %vm1929_vm11, 1.0, %v8263_v0  ;;  %vm8924_vm1 = vcmp.eq.s32.totalorder %v3985_v46, %v627_v63 }
 0x30f   : > { %vm1579_vm5 = vmor %vm8920_vm10, %vm1451_vm2  ;;  %v2257_v50 = vpack.c.bf16 %v3052_v21, %v3048_v62  ;;  %vm8927_vm10 = vcmp.eq.s32.totalorder %v3985_v46, %v7427_v47  ;;  %v2764_v62 = vadd.f32 %v3269_v10, %v3157_v45 }
 0x310   : > { %vm7614_vm6 = vmor %vm398_vm14, %vm750_vm0  ;;  %vm753_vm0 = vcmp.eq.s32.totalorder %v3963_v30, %v7463_v37  ;;  %vm401_vm14 = vcmp.eq.s32.totalorder %v3963_v30, %v8921_v53 }
 0x311   : > { %vm1927_vm15 = vmor %vm7537_vm7, %vm1799_vm8  ;;  %vm754_vm8 = vcmp.eq.s32.totalorder %v3976_v14, %v7463_v37  ;;  %2662 = vmatmul.mubr.bf16.gmra.mrb[52].mxu0 %v2257_v50  ;;  %2858 = vst [vmem:[%s6346_s5 + $0x58] sm:$0xff] %v2764_v62 }
 0x312   : > { %vm7627_vm2 = vmor %vm399_vm12, %vm8924_vm1  ;;  %v3050_v48 = vsel %vm1927_vm15, 1.0, %v8263_v0  ;;  %vm402_vm12 = vcmp.eq.s32.totalorder %v3976_v14, %v8921_v53  ;;  %vm756_vm15 = vcmp.eq.s32.totalorder %v3971_v15, %v7463_v37 }
 0x313   : > { %vm1931_vm11 = vmor %vm1579_vm5, %vm8927_vm10  ;;  %vm8930_vm5 = vcmp.eq.s32.totalorder %v3971_v15, 500  ;;  %vm403_vm10 = vcmp.eq.s32.totalorder %v3985_v46, %v8921_v53 }
 0x314   : > { %vm7640_vm7 = vmor %vm7550_vm13, %vm752_vm3  ;;  %v3054_v34 = vsel %vm1931_vm11, 1.0, %v8263_v0  ;;  %vm755_vm3 = vcmp.eq.s32.totalorder %v3985_v46, %v7463_v37  ;;  %v7765_v37 = vpop.permute.xlu1 %984 }
 0x315   : > { %vm532_vm13 = vmor %vm8930_vm5, %vm404_vm4  ;;  %v2259_v55 = vpack.c.bf16 %v3054_v34, %v3050_v48  ;;  %vm1101_vm4 = vcmp.eq.s32.totalorder %v3963_v30, %v7521_v6  ;;  %v8987_v48 = vmov 0  ;;  %v8989_v34 = vmov 0 }
 0x316   : > { %vm7661_vm1 = vmor %vm401_vm14, %vm753_vm0  ;;  %vm1102_vm0 = vcmp.eq.s32.totalorder %v3976_v14, %v7521_v6 }
 0x317   : > { %vm7667_vm11 = vmor %vm402_vm12, %vm754_vm8  ;;  %2823 = vmatmul.mubr.bf16.gmra.mrb[52].mxu1 %v2259_v55  ;;  %vm1103_vm8 = vcmp.eq.s32.totalorder %v3985_v46, %v7521_v6  ;;  %vm1104_vm12 = vcmp.eq.s32.totalorder %v3971_v15, %v7521_v6  ;;  %v1692_v55 = vpop.permute.xlu0 %1691 }
 0x318   : > { %vm7673_vm5 = vmor %vm403_vm10, %vm755_vm3  ;;  %v988_v5 = vpop.permute.xlu1 %987 }
 0x319   : > { %v8936_v35 = vsel %vm7673_vm5, 4294967295, %v8935_v35  ;;  %vm7681_vm14 = vmor %vm532_vm13, %vm756_vm15  ;;  %vm1454_vm13 = vcmp.eq.s32.totalorder %v3976_v14, %v7566_v27 }
 0x31a   : > { %v8938_v26 = vsel %vm7681_vm14, 4294967295, %v8937_v26  ;;  %vm7691_vm3 = vmor %vm7600_vm9, %vm1101_vm4  ;;  %vm1456_vm14 = vcmp.eq.s32.totalorder %v3971_v15, %v7566_v27  ;;  %vm1453_vm4 = vcmp.eq.s32.totalorder %v3963_v30, %v7566_v27 }
 0x31b   : > { %vm1230_vm10 = vmor %vm7614_vm6, %vm1102_vm0  ;;  %vm1105_vm6 = vcmp.eq.s32.totalorder %v3963_v30, %v7269_v1  ;;  %vm1106_vm0 = vcmp.eq.s32.totalorder %v3976_v14, %v7269_v1 }
 0x31c   : > { %vm7701_vm15 = vmor %vm7627_vm2, %vm1103_vm8  ;;  %v1340_v50 = vpop.permute.xlu1 %1339 }
 0x31d   : > { %vm1232_vm9 = vmor %vm7640_vm7, %vm1104_vm12  ;;  %vm1455_vm7 = vcmp.eq.s32.totalorder %v3985_v46, %v7566_v27  ;;  %vm1107_vm12 = vcmp.eq.s32.totalorder %v3985_v46, %v7269_v1  ;;  %v2761_v27 = vadd.f32 %v3266_v61, %v3154_v32 }
 0x31e   : > { %vm7711_vm5 = vmor %vm1230_vm10, %vm1454_vm13  ;;  %vm1457_vm13 = vcmp.eq.s32.totalorder %v3963_v30, %v7623_v8 }
 0x31f   : > { %vm7719_vm2 = vmor %vm1232_vm9, %vm1456_vm14  ;;  %vm1108_vm9 = vcmp.eq.s32.totalorder %v3971_v15, %v7269_v1  ;;  %2857 = vst [vmem:[%s6346_s5 + $0x50] sm:$0xff] %v2761_v27 }
 0x320   : > { %v8946_v28 = vsel %vm7719_vm2, 4294967295, %v8945_v28  ;;  %vm1233_vm8 = vmor %vm7661_vm1, %vm1105_vm6  ;;  %vm8949_vm1 = vnez %v8936_v35  ;;  %vm1458_vm2 = vcmp.eq.s32.totalorder %v3976_v14, %v7623_v8  ;;  %v8999_v35 = vmov 0  ;;  %v1689_v51 = vpop.permute.xlu1 %1688 }
 0x321   : > { %vm7733_vm10 = vmor %vm7691_vm3, %vm1453_vm4 }
 0x322   : > { %vm1234_vm14 = vmor %vm7667_vm11, %vm1106_vm0  ;;  %vm8952_vm11 = vnez %v8938_v26  ;;  %vm1459_vm0 = vcmp.eq.s32.totalorder %v3985_v46, %v7623_v8  ;;  %v9003_v26 = vmov 0 }
 0x323   : > { %vm1235_vm6 = vmor %vm8949_vm1, %vm1107_vm12  ;;  %vm1460_vm12 = vcmp.eq.s32.totalorder %v3971_v15, %v7623_v8 }
 0x324   : > { %vm7751_vm3 = vmor %vm7701_vm15, %vm1455_vm7  ;;  %vm412_vm15 = vcmp.eq.s32.totalorder %v3971_v15, %v8955_v56  ;;  %vm1806_vm7 = vcmp.eq.s32.totalorder %v3976_v14, %v7501_v42 }
 0x325   : > { %v8951_v22 = vsel %vm7751_vm3, 4294967295, %v8950_v22  ;;  %vm1236_vm4 = vmor %vm8952_vm11, %vm1108_vm9 }
 0x326   : > { %vm7761_vm1 = vmor %vm1233_vm8, %vm1457_vm13  ;;  %vm1812_vm13 = vcmp.eq.s32.totalorder %v3971_v15, %v7679_v40 }
 0x327   : > { %vm7771_vm3 = vmor %vm1234_vm14, %vm1458_vm2 }
 0x328   : > { %vm7777_vm11 = vmor %vm1235_vm6, %vm1459_vm0  ;;  %vm409_vm6 = vcmp.eq.s32.totalorder %v3963_v30, %v8955_v56  ;;  %vm8962_vm0 = vcmp.eq.s32.totalorder %v3971_v15, 500 }
 0x329   : > { %vm7787_vm14 = vmor %vm1236_vm4, %vm1460_vm12  ;;  %vm8970_vm4 = vcmp.eq.s32.totalorder %v3976_v14, %v7747_v36 }
 0x32a   : > { %vm7795_vm9 = vmor %vm8962_vm0, %vm412_vm15  ;;  %vm410_vm15 = vcmp.eq.s32.totalorder %v3976_v14, %v8955_v56  ;;  %vm8966_vm0 = vcmp.eq.s32.totalorder %v3963_v30, %v7747_v36 }
 0x32b   : > { %vm1934_vm2 = vmor %vm7711_vm5, %vm1806_vm7  ;;  %vm8969_vm5 = vcmp.eq.s32.totalorder %v3976_v14, %v7679_v40 }
 0x32c   : > { %vm7812_vm8 = vmor %vm409_vm6, %vm8966_vm0  ;;  %vm1809_vm6 = vcmp.eq.s32.totalorder %v3963_v30, %v7679_v40  ;;  %v3057_v6 = vsel %vm1934_vm2, 1.0, %v8263_v0  ;;  %vm8973_vm0 = vcmp.eq.s32.totalorder %v3971_v15, %v7501_v42 }
 0x32d   : > { %vm1938_vm7 = vmor %vm7771_vm3, %vm8969_vm5  ;;  %vm8974_vm3 = vnez %v8946_v28 }
 0x32e   : > { %vm7824_vm12 = vmor %vm410_vm15, %vm8970_vm4  ;;  %v3061_v54 = vsel %vm1938_vm7, 1.0, %v8263_v0  ;;  %vm1807_vm4 = vcmp.eq.s32.totalorder %v3985_v46, %v7501_v42  ;;  %vm1811_vm15 = vcmp.eq.s32.totalorder %v3985_v46, %v7679_v40  ;;  %vm8975_vm7 = vcmp.eq.s32.totalorder %v3963_v30, %v7501_v42 }
 0x32f   : > { %vm1936_vm5 = vmor %vm8974_vm3, %vm8973_vm0  ;;  %v2262_v12 = vpack.c.bf16 %v3061_v54, %v3057_v6  ;;  %vm8976_vm3 = vcmp.eq.s32.totalorder %v3971_v15, %v8965_v38  ;;  %v9001_v40 = vmov 0 }
 0x330   : > { %vm1940_vm2 = vmor %vm7787_vm14, %vm1812_vm13  ;;  %v3059_v29 = vsel %vm1936_vm5, 1.0, %v8263_v0  ;;  %vm8977_vm13 = vcmp.eq.s32.totalorder %v3971_v15, 500  ;;  %vm763_vm5 = vcmp.eq.s32.totalorder %v3985_v46, %v7747_v36 }
 0x331   : > { %v3063_v63 = vsel %vm1940_vm2, 1.0, %v8263_v0  ;;  %vm1933_vm0 = vmor %vm7733_vm10, %vm8975_vm7  ;;  %2669 = vmatprep.mubr.bf16.mxu0 %v2262_v12  ;;  %vm764_vm2 = vcmp.eq.s32.totalorder %v3971_v15, %v7747_v36  ;;  %vm8980_vm7 = vnez %v8951_v22 }
 0x332   : > { %vm7858_vm14 = vmor %vm8977_vm13, %vm8976_vm3  ;;  %v2264_v2 = vpack.c.bf16 %v3063_v63, %v3059_v29  ;;  %v3056_v44 = vsel %vm1933_vm0, 1.0, %v8263_v0  ;;  %vm411_vm13 = vcmp.eq.s32.totalorder %v3985_v46, %v8955_v56  ;;  %vm757_vm0 = vcmp.eq.s32.totalorder %v3963_v30, %v7715_v52 }
 0x333   : > { %v8979_v25 = vsel %vm7858_vm14, 4294967295, %v8978_v25  ;;  %vm1937_vm10 = vmor %vm7761_vm1, %vm1809_vm6  ;;  %vm1113_vm6 = vcmp.eq.s32.totalorder %v3963_v30, %v988_v5 }
 0x334   : > { %v3060_v58 = vsel %vm1937_vm10, 1.0, %v8263_v0  ;;  %vm1935_vm3 = vmor %vm8980_vm7, %vm1807_vm4  ;;  %2830 = vmatprep.mubr.bf16.mxu1 %v2264_v2  ;;  %vm405_vm7 = vcmp.eq.s32.totalorder %v3963_v30, %v8965_v38 }
 0x335   : > { %v2261_v57 = vpack.c.bf16 %v3060_v58, %v3056_v44  ;;  %vm1939_vm1 = vmor %vm7777_vm11, %vm1811_vm15  ;;  %v3058_v21 = vsel %vm1935_vm3, 1.0, %v8263_v0  ;;  %vm1114_vm11 = vcmp.eq.s32.totalorder %v3976_v14, %v988_v5  ;;  %vm759_vm3 = vcmp.eq.s32.totalorder %v3985_v46, %v7715_v52 }
 0x336   : > { %vm7890_vm4 = vmor %vm411_vm13, %vm763_vm5  ;;  %v3062_v53 = vsel %vm1939_vm1, 1.0, %v8263_v0  ;;  %vm758_vm5 = vcmp.eq.s32.totalorder %v3976_v14, %v7715_v52  ;;  %vm760_vm1 = vcmp.eq.s32.totalorder %v3971_v15, %v7715_v52  ;;  %vm1465_vm13 = vcmp.eq.s32.totalorder %v3963_v30, %v1340_v50  ;;  %v3158_v52 = vpop.f32.mrb[24].mxu0 }
 0x337   : > { %vm7904_vm15 = vmor %vm7795_vm9, %vm764_vm2  ;;  %2670 = vmatmul.mubr.bf16.gmra.mrb[56].mxu0 %v2261_v57  ;;  %v2263_v18 = vpack.c.bf16 %v3062_v53, %v3058_v21  ;;  %vm406_vm2 = vcmp.eq.s32.totalorder %v3976_v14, %v8965_v38  ;;  %v3159_v28 = vpop.f32.mrb[25].mxu0 }
 0x338   : > { %vm7921_vm9 = vmor %vm7812_vm8, %vm1113_vm6  ;;  %vm407_vm6 = vcmp.eq.s32.totalorder %v3985_v46, %v8965_v38  ;;  %v3160_v36 = vadd.f32 %v3159_v28, %v3158_v52 }
 0x339   : > { %v8986_v4 = vsel %vm7921_vm9, 4294967295, %v8985_v4  ;;  %vm7932_vm10 = vmor %vm405_vm7, %vm757_vm0  ;;  %2831 = vmatmul.mubr.bf16.gmra.mrb[56].mxu1 %v2263_v18  ;;  %vm1466_vm0 = vcmp.eq.s32.totalorder %v3976_v14, %v1340_v50  ;;  %vm8991_vm7 = vcmp.eq.s32.totalorder %v3985_v46, %v988_v5 }
 0x33a   : > { %v8988_v48 = vsel %vm7932_vm10, 4294967295, %v8987_v48  ;;  %vm1242_vm8 = vmor %vm7824_vm12, %vm1114_vm11  ;;  %vm1467_vm12 = vcmp.eq.s32.totalorder %v3985_v46, %v1340_v50  ;;  %vm8994_vm11 = vcmp.eq.s32.totalorder %v3971_v15, %v988_v5 }
 0x33b   : > { %vm7946_vm9 = vmor %vm406_vm2, %vm758_vm5  ;;  %vm8995_vm2 = vnez %v8979_v25 }
 0x33c   : > { %v8990_v34 = vsel %vm7946_vm9, 4294967295, %v8989_v34  ;;  %vm1243_vm10 = vmor %vm7890_vm4, %vm8991_vm7  ;;  %vm1468_vm4 = vcmp.eq.s32.totalorder %v3971_v15, %v1340_v50 }
 0x33d   : > { %vm7955_vm14 = vmor %vm407_vm6, %vm759_vm3  ;;  %vm8998_vm3 = vnez %v8986_v4 }
 0x33e   : > { %v8993_v24 = vsel %vm7955_vm14, 4294967295, %v8992_v24  ;;  %vm1244_vm5 = vmor %vm7904_vm15, %vm8994_vm11  ;;  %vm1817_vm14 = vcmp.eq.s32.totalorder %v3963_v30, %v1692_v55  ;;  %vm1818_vm15 = vcmp.eq.s32.totalorder %v3976_v14, %v1692_v55 }
 0x33f   : > { %vm7966_vm9 = vmor %vm8995_vm2, %vm760_vm1  ;;  %vm1109_vm1 = vcmp.eq.s32.totalorder %v3963_v30, %v7765_v37 }
 0x340   : > { %v8997_v20 = vsel %vm7966_vm9, 4294967295, %v8996_v20  ;;  %vm1593_vm6 = vmor %vm8998_vm3, %vm1465_vm13  ;;  %vm1819_vm9 = vcmp.eq.s32.totalorder %v3985_v46, %v1692_v55  ;;  %vm1110_vm3 = vcmp.eq.s32.totalorder %v3976_v14, %v7765_v37  ;;  %vm1820_vm13 = vcmp.eq.s32.totalorder %v3971_v15, %v1692_v55 }
 0x341   : > { %vm1594_vm7 = vmor %vm1242_vm8, %vm1466_vm0 }
 0x342   : > { %vm1595_vm11 = vmor %vm1243_vm10, %vm1467_vm12  ;;  %vm1111_vm10 = vcmp.eq.s32.totalorder %v3985_v46, %v7765_v37  ;;  %vm1112_vm12 = vcmp.eq.s32.totalorder %v3971_v15, %v7765_v37 }
 0x343   : > { %vm1596_vm2 = vmor %vm1244_vm5, %vm1468_vm4  ;;  %vm9005_vm4 = vnez %v8988_v48 }
 0x344   : > { %vm7981_vm0 = vmor %vm1593_vm6, %vm1817_vm14  ;;  %vm1461_vm6 = vcmp.eq.s32.totalorder %v3963_v30, %v1337_v39 }
 0x345   : > { %v9000_v35 = vsel %vm7981_vm0, 4294967295, %v8999_v35  ;;  %vm7987_vm8 = vmor %vm1594_vm7, %vm1818_vm15  ;;  %vm9008_vm7 = vnez %v8990_v34 }
 0x346   : > { %v9002_v40 = vsel %vm7987_vm8, 4294967295, %v9001_v40  ;;  %vm7993_vm5 = vmor %vm1595_vm11, %vm1819_vm9  ;;  %vm1462_vm8 = vcmp.eq.s32.totalorder %v3976_v14, %v1337_v39  ;;  %vm9009_vm9 = vnez %v8993_v24 }
 0x347   : > { %v9004_v26 = vsel %vm7993_vm5, 4294967295, %v9003_v26  ;;  %vm1237_vm14 = vmor %vm9005_vm4, %vm1109_vm1  ;;  %vm1463_vm5 = vcmp.eq.s32.totalorder %v3985_v46, %v1337_v39  ;;  %vm9010_vm1 = vnez %v8997_v20 }
 0x348   : > { %vm8000_vm0 = vmor %vm1596_vm2, %vm1820_vm13  ;;  %vm1464_vm2 = vcmp.eq.s32.totalorder %v3971_v15, %v1337_v39 }
 0x349   : > { %v9007_v41 = vsel %vm8000_vm0, 4294967295, %v9006_v41  ;;  %vm1238_vm15 = vmor %vm9008_vm7, %vm1110_vm3  ;;  %vm1813_vm3 = vcmp.eq.s32.totalorder %v3963_v30, %v1689_v51 }
 0x34a   : > { %vm1239_vm11 = vmor %vm9009_vm9, %vm1111_vm10  ;;  %vm1814_vm9 = vcmp.eq.s32.totalorder %v3976_v14, %v1689_v51  ;;  %v3161_v14 = vpop.f32.mrb[26].mxu0 }
 0x34b   : > { %vm1240_vm4 = vmor %vm9010_vm1, %vm1112_vm12  ;;  %vm1815_vm1 = vcmp.eq.s32.totalorder %v3985_v46, %v1689_v51  ;;  %vm1816_vm12 = vcmp.eq.s32.totalorder %v3971_v15, %v1689_v51  ;;  %v3270_v15 = vpop.f32.mrb[24].mxu1  ;;  %v3162_v37 = vpop.f32.mrb[27].mxu0 }
 0x34c   : > { %vm1589_vm13 = vmor %vm1237_vm14, %vm1461_vm6  ;;  %v3271_v17 = vpop.f32.mrb[25].mxu1  ;;  %v3163_v33 = vadd.f32 %v3162_v37, %v3161_v14  ;;  %v3164_v54 = vpop.f32.mrb[28].mxu0 }
 0x34d   : > { %vm1590_vm0 = vmor %vm1238_vm15, %vm1462_vm8  ;;  %vm9013_vm8 = vnez %v9000_v35  ;;  %vm9014_vm15 = vnez %v9002_v40  ;;  %v3272_v13 = vadd.f32 %v3271_v17, %v3270_v15  ;;  %v3273_v38 = vpop.f32.mrb[26].mxu1  ;;  %v3165_v5 = vpop.f32.mrb[29].mxu0 }
 0x34e   : > { %vm1591_vm7 = vmor %vm1239_vm11, %vm1463_vm5  ;;  %v3068_v30 = vsel %vm9013_vm8, 1.0, %v8263_v0  ;;  %v3069_v46 = vsel %vm9014_vm15, 1.0, %v8263_v0  ;;  %vm9015_vm11 = vnez %v9004_v26  ;;  %v3274_v49 = vpop.f32.mrb[27].mxu1  ;;  %v3166_v59 = vadd.f32 %v3165_v5, %v3164_v54 }
 0x34f   : > { %vm8015_vm10 = vmor %vm1240_vm4, %vm1464_vm2  ;;  %v3070_v11 = vsel %vm9015_vm11, 1.0, %v8263_v0  ;;  %vm9016_vm4 = vnez %v9007_v41  ;;  %v2769_v19 = vadd.f32 %v3272_v13, %v3160_v36  ;;  %v3275_v7 = vadd.f32 %v3274_v49, %v3273_v38  ;;  %v3276_v45 = vpop.f32.mrb[28].mxu1 }
 0x350   : > { %vm1941_vm6 = vmor %vm1589_vm13, %vm1813_vm3  ;;  %v3071_v16 = vsel %vm9016_vm4, 1.0, %v8263_v0  ;;  %v3277_v61 = vpop.f32.mrb[29].mxu1 }
 0x351   : > { %vm1942_vm14 = vmor %vm1590_vm0, %vm1814_vm9  ;;  %v3064_v23 = vsel %vm1941_vm6, 1.0, %v8263_v0  ;;  %2859 = vst [vmem:[%s6346_s5 + $0x60] sm:$0xff] %v2769_v19  ;;  %v2772_v6 = vadd.f32 %v3275_v7, %v3163_v33  ;;  %v3278_v29 = vadd.f32 %v3277_v61, %v3276_v45  ;;  %v3279_v63 = vpop.f32.mrb[30].mxu1 }
 0x352   : > { %vm1943_vm5 = vmor %vm1591_vm7, %vm1815_vm1  ;;  %v3065_v22 = vsel %vm1942_vm14, 1.0, %v8263_v0  ;;  %v2265_v1 = vpack.c.bf16 %v3068_v30, %v3064_v23  ;;  %v3280_v9 = vpop.f32.mrb[31].mxu1 }
 0x353   : > { %vm1944_vm0 = vmor %vm8015_vm10, %vm1816_vm12  ;;  %v2266_v56 = vpack.c.bf16 %v3069_v46, %v3065_v22  ;;  %v3066_v3 = vsel %vm1943_vm5, 1.0, %v8263_v0  ;;  %2860 = vst [vmem:[%s6346_s5 + $0x68] sm:$0xff] %v2772_v6  ;;  %v2777_v25 = vadd.f32 %v3278_v29, %v3166_v59  ;;  %v3281_v2 = vadd.f32 %v3280_v9, %v3279_v63  ;;  %v3282_v62 = vpop.f32.mrb[32].mxu1 }
 0x354   : > { %v3067_v60 = vsel %vm1944_vm0, 1.0, %v8263_v0  ;;  %v2267_v32 = vpack.c.bf16 %v3070_v11, %v3066_v3  ;;  %v3167_v0 = vpop.f32.mrb[30].mxu0  ;;  %v3283_v21 = vpop.f32.mrb[33].mxu1 }
 0x355   : > { %2677 = vmatprep.mubr.bf16.mxu0 %v2266_v56  ;;  %v2268_v43 = vpack.c.bf16 %v3071_v16, %v3067_v60  ;;  %v3168_v12 = vpop.f32.mrb[31].mxu0  ;;  %2861 = vst [vmem:[%s6346_s5 + $0x70] sm:$0xff] %v2777_v25  ;;  %v3284_v39 = vadd.f32 %v3283_v21, %v3282_v62  ;;  %v3285_v50 = vpop.f32.mrb[34].mxu1 }
 0x356   : > { %2678 = vmatmul.mubr.bf16.gmra.mrb[60].mxu0 %v2265_v1  ;;  %v3169_v31 = vadd.f32 %v3168_v12, %v3167_v0  ;;  %v3170_v10 = vpop.f32.mrb[32].mxu0  ;;  %v3286_v8 = vpop.f32.mrb[35].mxu1 }
 0x357   : > { %2838 = vmatprep.mubr.bf16.mxu1 %v2268_v43  ;;  %v3171_v44 = vpop.f32.mrb[33].mxu0  ;;  %v3287_v4 = vadd.f32 %v3286_v8, %v3285_v50 }
 0x358   : > { %2839 = vmatmul.mubr.bf16.gmra.mrb[60].mxu1 %v2267_v32  ;;  %v2780_v27 = vadd.f32 %v3281_v2, %v3169_v31  ;;  %v3172_v58 = vadd.f32 %v3171_v44, %v3170_v10  ;;  %v3173_v57 = vpop.f32.mrb[34].mxu0 }
 0x359   : > { %v3174_v42 = vpop.f32.mrb[35].mxu0 }
 0x35a   : > { %2862 = vst [vmem:[%s6346_s5 + $0x78] sm:$0xff] %v2780_v27  ;;  %v3175_v53 = vadd.f32 %v3174_v42, %v3173_v57  ;;  %v2785_v18 = vadd.f32 %v3284_v39, %v3172_v58 }
 0x35c   : > { %2863 = vst [vmem:[%s6346_s5 + $0x80] sm:$0xff] %v2785_v18  ;;  %v2788_v48 = vadd.f32 %v3287_v4, %v3175_v53 }
 0x35e   : > { %2864 = vst [vmem:[%s6346_s5 + $0x88] sm:$0xff] %v2788_v48 }
 0x361   : > { %v3176_v34 = vpop.f32.mrb[36].mxu0 }
 0x362   : > { %v3177_v55 = vpop.f32.mrb[37].mxu0 }
 0x363   : > { %v3178_v24 = vadd.f32 %v3177_v55, %v3176_v34  ;;  %v3179_v20 = vpop.f32.mrb[38].mxu0 }
 0x364   : > { %v3180_v40 = vpop.f32.mrb[39].mxu0 }
 0x365   : > { %v3181_v41 = vadd.f32 %v3180_v40, %v3179_v20 }
 0x366   : > { %v3288_v35 = vpop.f32.mrb[36].mxu1 }
 0x367   : > { %v3289_v26 = vpop.f32.mrb[37].mxu1 }
 0x368   : > { %v3290_v51 = vadd.f32 %v3289_v26, %v3288_v35  ;;  %v3291_v47 = vpop.f32.mrb[38].mxu1 }
 0x369   : > { %v3292_v52 = vpop.f32.mrb[39].mxu1 }
 0x36a   : > { %v2793_v28 = vadd.f32 %v3290_v51, %v3178_v24  ;;  %v3293_v23 = vadd.f32 %v3292_v52, %v3291_v47 }
 0x36c   : > { %2865 = vst [vmem:[%s6346_s5 + $0x90] sm:$0xff] %v2793_v28  ;;  %v2796_v30 = vadd.f32 %v3293_v23, %v3181_v41 }
 0x36e   : > { %2866 = vst [vmem:[%s6346_s5 + $0x98] sm:$0xff] %v2796_v30 }
 0x37d   : > { %v3182_v36 = vpop.f32.mrb[40].mxu0 }
 0x37e   : > { %v3183_v14 = vpop.f32.mrb[41].mxu0 }
 0x37f   : > { %v3184_v22 = vadd.f32 %v3183_v14, %v3182_v36  ;;  %v3185_v46 = vpop.f32.mrb[42].mxu0 }
 0x380   : > { %v3186_v15 = vpop.f32.mrb[43].mxu0 }
 0x381   : > { %v3294_v1 = vpop.f32.mrb[40].mxu1  ;;  %v3187_v56 = vadd.f32 %v3186_v15, %v3185_v46 }
 0x382   : > { %v3295_v37 = vpop.f32.mrb[41].mxu1 }
 0x383   : > { %v3296_v3 = vadd.f32 %v3295_v37, %v3294_v1  ;;  %v3297_v11 = vpop.f32.mrb[42].mxu1 }
 0x384   : > { %v3298_v17 = vpop.f32.mrb[43].mxu1 }
 0x385   : > { %v2801_v33 = vadd.f32 %v3296_v3, %v3184_v22  ;;  %v3299_v60 = vadd.f32 %v3298_v17, %v3297_v11 }
 0x387   : > { %2867 = vst [vmem:[%s6346_s5 + $0xa0] sm:$0xff] %v2801_v33  ;;  %v2804_v16 = vadd.f32 %v3299_v60, %v3187_v56 }
 0x389   : > { %2868 = vst [vmem:[%s6346_s5 + $0xa8] sm:$0xff] %v2804_v16 }
 0x3a0   : > { %v3188_v32 = vpop.f32.mrb[44].mxu0 }
 0x3a1   : > { %v3189_v13 = vpop.f32.mrb[45].mxu0 }
 0x3a2   : > { %v3190_v38 = vadd.f32 %v3189_v13, %v3188_v32  ;;  %v3191_v43 = vpop.f32.mrb[46].mxu0 }
 0x3a3   : > { %v3192_v19 = vpop.f32.mrb[47].mxu0 }
 0x3a4   : > { %v3193_v6 = vadd.f32 %v3192_v19, %v3191_v43 }
 0x3a6   : > { %v3300_v49 = vpop.f32.mrb[44].mxu1 }
 0x3a7   : > { %v3301_v7 = vpop.f32.mrb[45].mxu1 }
 0x3a8   : > { %v3302_v54 = vadd.f32 %v3301_v7, %v3300_v49  ;;  %v3303_v5 = vpop.f32.mrb[46].mxu1 }
 0x3a9   : > { %v3304_v59 = vpop.f32.mrb[47].mxu1 }
 0x3aa   : > { %v2809_v0 = vadd.f32 %v3302_v54, %v3190_v38  ;;  %v3305_v45 = vadd.f32 %v3304_v59, %v3303_v5 }
 0x3ac   : > { %2869 = vst [vmem:[%s6346_s5 + $0xb0] sm:$0xff] %v2809_v0  ;;  %v2812_v12 = vadd.f32 %v3305_v45, %v3193_v6 }
 0x3ae   : > { %2870 = vst [vmem:[%s6346_s5 + $0xb8] sm:$0xff] %v2812_v12 }
 0x3c0   : > { %v3194_v61 = vpop.f32.mrb[48].mxu0 }
 0x3c1   : > { %v3195_v31 = vpop.f32.mrb[49].mxu0 }
 0x3c2   : > { %v3196_v29 = vadd.f32 %v3195_v31, %v3194_v61  ;;  %v3197_v63 = vpop.f32.mrb[50].mxu0 }
 0x3c3   : > { %v3306_v9 = vpop.f32.mrb[48].mxu1  ;;  %v3198_v25 = vpop.f32.mrb[51].mxu0 }
 0x3c4   : > { %v3307_v2 = vpop.f32.mrb[49].mxu1  ;;  %v3199_v27 = vadd.f32 %v3198_v25, %v3197_v63 }
 0x3c5   : > { %v3308_v10 = vadd.f32 %v3307_v2, %v3306_v9  ;;  %v3309_v44 = vpop.f32.mrb[50].mxu1 }
 0x3c6   : > { %v3310_v58 = vpop.f32.mrb[51].mxu1 }
 0x3c7   : > { %v2817_v57 = vadd.f32 %v3308_v10, %v3196_v29  ;;  %v3311_v62 = vadd.f32 %v3310_v58, %v3309_v44 }
 0x3c9   : > { %2871 = vst [vmem:[%s6346_s5 + $0xc0] sm:$0xff] %v2817_v57  ;;  %v2820_v42 = vadd.f32 %v3311_v62, %v3199_v27 }
 0x3cb   : > { %2872 = vst [vmem:[%s6346_s5 + $0xc8] sm:$0xff] %v2820_v42 }
 0x3e4   : > { %v3200_v21 = vpop.f32.mrb[52].mxu0 }
 0x3e5   : > { %v3201_v53 = vpop.f32.mrb[53].mxu0 }
 0x3e6   : > { %v3202_v39 = vadd.f32 %v3201_v53, %v3200_v21  ;;  %v3203_v50 = vpop.f32.mrb[54].mxu0 }
 0x3e7   : > { %v3204_v18 = vpop.f32.mrb[55].mxu0 }
 0x3e8   : > { %v3205_v48 = vadd.f32 %v3204_v18, %v3203_v50 }
 0x3ea   : > { %v3312_v8 = vpop.f32.mrb[52].mxu1 }
 0x3eb   : > { %v3313_v4 = vpop.f32.mrb[53].mxu1 }
 0x3ec   : > { %v3314_v34 = vadd.f32 %v3313_v4, %v3312_v8  ;;  %v3315_v55 = vpop.f32.mrb[54].mxu1 }
 0x3ed   : > { %v3316_v24 = vpop.f32.mrb[55].mxu1 }
 0x3ee   : > { %v2825_v20 = vadd.f32 %v3314_v34, %v3202_v39  ;;  %v3317_v35 = vadd.f32 %v3316_v24, %v3315_v55 }
 0x3f0   : > { %2873 = vst [vmem:[%s6346_s5 + $0xd0] sm:$0xff] %v2825_v20  ;;  %v2828_v40 = vadd.f32 %v3317_v35, %v3205_v48 }
 0x3f2   : > { %2874 = vst [vmem:[%s6346_s5 + $0xd8] sm:$0xff] %v2828_v40 }
 0x40a   : > { %v3206_v26 = vpop.f32.mrb[56].mxu0 }
 0x40b   : > { %v3207_v41 = vpop.f32.mrb[57].mxu0 }
 0x40c   : > { %v3318_v51 = vpop.f32.mrb[56].mxu1  ;;  %v3208_v47 = vadd.f32 %v3207_v41, %v3206_v26  ;;  %v3209_v52 = vpop.f32.mrb[58].mxu0 }
 0x40d   : > { %v3319_v28 = vpop.f32.mrb[57].mxu1  ;;  %v3210_v23 = vpop.f32.mrb[59].mxu0 }
 0x40e   : > { %v3320_v30 = vadd.f32 %v3319_v28, %v3318_v51  ;;  %v3321_v36 = vpop.f32.mrb[58].mxu1  ;;  %v3211_v14 = vadd.f32 %v3210_v23, %v3209_v52 }
 0x40f   : > { %v3322_v22 = vpop.f32.mrb[59].mxu1 }
 0x410   : > { %v2833_v46 = vadd.f32 %v3320_v30, %v3208_v47  ;;  %v3323_v1 = vadd.f32 %v3322_v22, %v3321_v36 }
 0x412   : > { %2875 = vst [vmem:[%s6346_s5 + $0xe0] sm:$0xff] %v2833_v46  ;;  %v2836_v15 = vadd.f32 %v3323_v1, %v3211_v14 }
 0x414   : > { %2876 = vst [vmem:[%s6346_s5 + $0xe8] sm:$0xff] %v2836_v15 }
 0x429   : > { %v3212_v37 = vpop.f32.mrb[60].mxu0 }
 0x42a   : > { %v3213_v56 = vpop.f32.mrb[61].mxu0 }
 0x42b   : > { %v3324_v3 = vpop.f32.mrb[60].mxu1  ;;  %v3214_v11 = vadd.f32 %v3213_v56, %v3212_v37  ;;  %v3215_v17 = vpop.f32.mrb[62].mxu0 }
 0x42c   : > { %v3325_v33 = vpop.f32.mrb[61].mxu1  ;;  %v3216_v60 = vpop.f32.mrb[63].mxu0 }
 0x42d   : > { %v3326_v16 = vadd.f32 %v3325_v33, %v3324_v3  ;;  %v3327_v32 = vpop.f32.mrb[62].mxu1  ;;  %v3217_v13 = vadd.f32 %v3216_v60, %v3215_v17 }
 0x42e   : > { %v3328_v38 = vpop.f32.mrb[63].mxu1 }
 0x42f   : > { %v2841_v43 = vadd.f32 %v3326_v16, %v3214_v11  ;;  %v3329_v49 = vadd.f32 %v3328_v38, %v3327_v32 }
 0x431   : > { %2877 = vst [vmem:[%s6346_s5 + $0xf0] sm:$0xff] %v2841_v43  ;;  %v2844_v19 = vadd.f32 %v3329_v49, %v3217_v13 }
 0x433   : > { %2878 = vst [vmem:[%s6346_s5 + $0xf8] sm:$0xff] %v2844_v19 }
 0x434 PF: > { %s12_s9 = sadd.s32 1, %s3453_s9  }
 0x435   : > { %p9_p4 = scmp.ge.s32.totalorder %s12_s9, 4  }
 0x437   :  { %11 = sbr.rel (!%p9_p4) target bundleno = 1 (0x1), region = 58 }

</bundles_post_ra>
